<compile_context>
chip_gen: v6e
topology: v6e:2x2x1
jax: 0.10.0
libtpu: 0.0.40
codegen_flags: <defaults>
</compile_context>

<pallas_src>
import jax
import jax.numpy as jnp
from jax.experimental import pallas as pl
from jax.experimental.pallas import tpu as pltpu

_VMEM_LIMIT = 48 * 1024 * 1024  # raise scoped VMEM (safe on v5e/v6e 128MiB and v7x 64MiB)


# ----------------------------------------------------------------------------
# Pallas kernels
# ----------------------------------------------------------------------------
def _sage_layer_kernel(adj_ref, xe_ref, h_ref, deg_ref,
                       wm_ref, bm_ref, wa_h_ref, wa_n_ref, ba_ref,
                       out_ref, acc_ref):
    """grid = (node_blocks, edge_blocks); edge axis is the reduction axis."""
    j = pl.program_id(1)

    @pl.when(j == 0)
    def _():
        acc_ref[...] = jnp.zeros_like(acc_ref)

    # Per-edge messages for this edge tile (fused [h_src ; e] concat -> single K):
    #   m_e = [h_src ; e] @ W_msg + b_msg          (TE, dhid), bf16 inputs, f32 acc
    m = (jnp.dot(xe_ref[...], wm_ref[...], preferred_element_type=jnp.float32)
         + bm_ref[...])

    # Partial sum over in-edges of this node block:  acc += A_blk @ m
    # (A is the raw 0/1 incidence, exactly representable in bf16.)
    acc_ref[...] += jnp.dot(adj_ref[...], m.astype(jnp.bfloat16),
                            preferred_element_type=jnp.float32)

    @pl.when(j == pl.num_programs(1) - 1)
    def _():
        # mean = sum * (1 / in-degree); reciprocal runs on the EUP slot (~free).
        inv = pl.reciprocal(jnp.maximum(deg_ref[...], 1.0), approx=True)
        h_neigh = (acc_ref[...] * inv).astype(jnp.bfloat16)
        # apply:  relu([h ; h_neigh] @ W_apply + b_apply)   (split matmuls == concat)
        z = (jnp.dot(h_ref[...], wa_h_ref[...], preferred_element_type=jnp.float32)
             + jnp.dot(h_neigh, wa_n_ref[...], preferred_element_type=jnp.float32)
             + ba_ref[...])
        out_ref[...] = jnp.maximum(z, 0.0).astype(out_ref.dtype)


def _predictor_kernel(huv_ref, w1_ref, b1_ref, w2_ref, b2_ref, out_ref):
    # embed = relu([h_u ; h_v] @ W1 + b1)   (concat fused in the operand)
    z = (jnp.dot(huv_ref[...], w1_ref[...], preferred_element_type=jnp.float32)
         + b1_ref[...])
    z = jnp.maximum(z, 0.0).astype(jnp.bfloat16)
    # score = embed @ W2 + b2
    out_ref[...] = (jnp.dot(z, w2_ref[...], preferred_element_type=jnp.float32)
                    + b2_ref[...]).astype(out_ref.dtype)


# ----------------------------------------------------------------------------
# pallas_call wrappers
# ----------------------------------------------------------------------------
def sage_layer(adj, xe, h, indeg, p, *, tn=128, te=256):
    n, din = h.shape
    e, dxe = xe.shape
    dhid = p["wm"].shape[1]
    dout = p["wa_h"].shape[1]
    grid = (n // tn, e // te)
    return pl.pallas_call(
        _sage_layer_kernel,
        out_shape=jax.ShapeDtypeStruct((n, dout), jnp.bfloat16),
        grid_spec=pltpu.PrefetchScalarGridSpec(
            num_scalar_prefetch=0,
            grid=grid,
            in_specs=[
                pl.BlockSpec((tn, te), lambda i, j: (i, j)),       # 0/1 incidence
                pl.BlockSpec((te, dxe), lambda i, j: (j, 0)),      # [h_src ; e]
                pl.BlockSpec((tn, din), lambda i, j: (i, 0)),      # h
                pl.BlockSpec((tn, 1), lambda i, j: (i, 0)),        # in-degree
                pl.BlockSpec(p["wm"].shape, lambda i, j: (0, 0)),
                pl.BlockSpec(p["bm"].shape, lambda i, j: (0, 0)),
                pl.BlockSpec(p["wa_h"].shape, lambda i, j: (0, 0)),
                pl.BlockSpec(p["wa_n"].shape, lambda i, j: (0, 0)),
                pl.BlockSpec(p["ba"].shape, lambda i, j: (0, 0)),
            ],
            out_specs=pl.BlockSpec((tn, dout), lambda i, j: (i, 0)),
            scratch_shapes=[pltpu.VMEM((tn, dhid), jnp.float32)],
        ),
        compiler_params=pltpu.CompilerParams(
            dimension_semantics=("parallel", "arbitrary"),
            vmem_limit_bytes=_VMEM_LIMIT),
    )(adj, xe, h, indeg, p["wm"], p["bm"], p["wa_h"], p["wa_n"], p["ba"])


def edge_predictor(huv, p, *, te=256):
    e, duv = huv.shape
    nclass = p["w2"].shape[1]
    return pl.pallas_call(
        _predictor_kernel,
        out_shape=jax.ShapeDtypeStruct((e, nclass), jnp.float32),
        grid_spec=pltpu.PrefetchScalarGridSpec(
            num_scalar_prefetch=0,
            grid=(e // te,),
            in_specs=[
                pl.BlockSpec((te, duv), lambda i: (i, 0)),
                pl.BlockSpec(p["w1"].shape, lambda i: (0, 0)),
                pl.BlockSpec(p["b1"].shape, lambda i: (0, 0)),
                pl.BlockSpec(p["w2"].shape, lambda i: (0, 0)),
                pl.BlockSpec(p["b2"].shape, lambda i: (0, 0)),
            ],
            out_specs=pl.BlockSpec((te, nclass), lambda i: (i, 0)),
        ),
        compiler_params=pltpu.CompilerParams(
            dimension_semantics=("parallel",),
            vmem_limit_bytes=_VMEM_LIMIT),
    )(huv, p["w1"], p["b1"], p["w2"], p["b2"])


# ----------------------------------------------------------------------------
# Parameter init (deterministic, PyTorch-Linear-style U(-1/sqrt(fan_in), ..))
# Weights stored in bf16 (MXU inputs), biases in f32 (added post-accumulation).
# ----------------------------------------------------------------------------
def _linear(key, din, dout):
    bound = 1.0 / (din ** 0.5)
    kw, kb = jax.random.split(key)
    w = jax.random.uniform(kw, (din, dout), jnp.float32, -bound, bound)
    b = jax.random.uniform(kb, (1, dout), jnp.float32, -bound, bound)
    return w.astype(jnp.bfloat16), b


def init_params(key, ndim_in, edim, ndim_out, embedim, n_classes, hidden=128):
    k1, k2, k3, k4, k5, k6 = jax.random.split(key, 6)
    # SAGE layer 1: W_msg: (ndim_in+edim)->hidden ; W_apply: (ndim_in+hidden)->hidden
    wm1, bm1 = _linear(k1, ndim_in + edim, hidden)
    wa1, ba1 = _linear(k2, ndim_in + hidden, hidden)
    l1 = dict(wm=wm1, bm=bm1, wa_h=wa1[:ndim_in], wa_n=wa1[ndim_in:], ba=ba1)
    # SAGE layer 2: W_msg: (hidden+edim)->ndim_out ; W_apply: (hidden+ndim_out)->ndim_out
    wm2, bm2 = _linear(k3, hidden + edim, ndim_out)
    wa2, ba2 = _linear(k4, hidden + ndim_out, ndim_out)
    l2 = dict(wm=wm2, bm=bm2, wa_h=wa2[:hidden], wa_n=wa2[hidden:], ba=ba2)
    # MLPPredictorEmbed: W1: (2*ndim_out)->embedim ; W2: embedim->n_classes
    w1, b1 = _linear(k5, 2 * ndim_out, embedim)
    w2, b2 = _linear(k6, embedim, n_classes)
    pred = dict(w1=w1, b1=b1, w2=w2, b2=b2)
    return dict(l1=l1, l2=l2, pred=pred)


# ----------------------------------------------------------------------------
# Model forward
# ----------------------------------------------------------------------------
def model_forward(params, src, dst, nfeats, efeats, num_nodes, *, tn=128, te=256):
    # nfeats: (N, 1, ndim_in), efeats: (E, 1, edim) — squeeze dim 1, cast to bf16.
    h = nfeats[:, 0, :].astype(jnp.bfloat16)
    e = efeats[:, 0, :].astype(jnp.bfloat16)
    num_edges = src.shape[0]

    # Pad node / edge rows to tile multiples (no-op when already aligned).
    n_pad = (-num_nodes) % tn
    e_pad = (-num_edges) % te
    n_tot = num_nodes + n_pad
    e_tot = num_edges + e_pad
    h = jnp.pad(h, ((0, n_pad), (0, 0)))
    e = jnp.pad(e, ((0, e_pad), (0, 0)))
    src_p = jnp.pad(src, (0, e_pad))          # padded edges point at node 0; their
    dst_p = jnp.pad(dst, (0, e_pad))          # incidence columns stay 0 -> no effect.

    # 0/1 incidence (bf16, unscaled) + per-node in-degree.  The 1/deg scale happens
    # inside the kernel.
    # TODO(synk): dense (N,E) incidence is the blocked-dense "minimum fix"; a
    # dst-sorted CSR segment aggregation would make this O(E*hidden).
    adj = jnp.zeros((n_tot, e_tot), jnp.bfloat16)
    adj = adj.at[dst, jnp.arange(num_edges)].set(1.0)
    indeg = jnp.zeros((n_tot, 1), jnp.float32).at[dst, 0].add(1.0)

    # TODO(synk): h[src]/h[dst] gathers stay in XLA glue; an in-kernel scalar-prefetch
    # gather would avoid the HBM round-trip of these gathered copies.
    # SAGE layer 1 (fused message + mean-agg + apply/relu in one pallas_call)
    xe1 = jnp.concatenate([h[src_p], e], axis=-1)
    h1 = sage_layer(adj, xe1, h, indeg, params["l1"], tn=tn, te=te)
    # TODO(synk): dropout between the SAGE layers is identity (deterministic eval mode).
    # SAGE layer 2
    xe2 = jnp.concatenate([h1[src_p], e], axis=-1)
    h2 = sage_layer(adj, xe2, h1, indeg, params["l2"], tn=tn, te=te)
    # h.sum(dim=1) in torch (the size-1 middle dim) is already folded in.

    # Edge predictor on fused [h_u ; h_v]
    huv = jnp.concatenate([h2[src_p], h2[dst_p]], axis=-1)
    scores = edge_predictor(huv, params["pred"], te=te)
    return scores[:num_edges]


# ----------------------------------------------------------------------------
if __name__ == "__main__":
    key = jax.random.PRNGKey(0)
    k_graph, k_nf, k_ef, k_par = jax.random.split(key, 4)

    # Small synthetic graph + features (sizes chosen to exercise the (2,4) grid).
    N, E = 256, 1024
    NDIM_IN, EDIM, NDIM_OUT, EMBEDIM = 16, 16, 32, 32
    N_CLASSES = 2            # bin=True
    HIDDEN = 128             # hard-coded hidden width of the first SAGE layer

    ks, kd = jax.random.split(k_graph)
    src = jax.random.randint(ks, (E,), 0, N, dtype=jnp.int32)
    dst = jax.random.randint(kd, (E,), 0, N, dtype=jnp.int32)
    nfeats = jax.random.normal(k_nf, (N, 1, NDIM_IN), jnp.float32)
    efeats = jax.random.normal(k_ef, (E, 1, EDIM), jnp.float32)

    params = init_params(k_par, NDIM_IN, EDIM, NDIM_OUT, EMBEDIM, N_CLASSES, HIDDEN)

    fwd = jax.jit(lambda p, s, d, nf, ef: model_forward(p, s, d, nf, ef, N))
    scores = fwd(params, src, dst, nfeats, efeats)
    jax.block_until_ready(scores)

    assert scores.shape == (E, N_CLASSES), scores.shape
    assert scores.dtype == jnp.float32
    print("KERNEL_OK")
</pallas_src>

<mosaic_0001>
module attributes {stable_mosaic.version = 11 : i64} {
  func.func private @main(%arg0: i32) attributes {dimension_semantics = [#tpu.dimension_semantics<core_parallel>], iteration_bounds = array<i64: 2>, tpu.core_type = #tpu.core_type<sc_scalar_subcore>, window_params = []} {
    return
  }
}

module attributes {stable_mosaic.version = 11 : i64} {
  func.func private @main(%arg0: i32) attributes {dimension_semantics = [#tpu.dimension_semantics<core_parallel>], iteration_bounds = array<i64: 2>, tpu.core_type = #tpu.core_type<sc_scalar_subcore>, window_params = []} {
    return
  }
}

module attributes {stable_mosaic.version = 11 : i64} {
  func.func @_sage_layer_kernel(%arg0: i32, %arg1: i32, %arg2: memref<128x256xbf16, #tpu.memory_space<vmem>>, %arg3: memref<256x32xbf16, #tpu.memory_space<vmem>>, %arg4: memref<128x16xbf16, #tpu.memory_space<vmem>>, %arg5: memref<128x1xf32, #tpu.memory_space<vmem>>, %arg6: memref<32x128xbf16, #tpu.memory_space<vmem>>, %arg7: memref<1x128xf32, #tpu.memory_space<vmem>>, %arg8: memref<16x128xbf16, #tpu.memory_space<vmem>>, %arg9: memref<128x128xbf16, #tpu.memory_space<vmem>>, %arg10: memref<1x128xf32, #tpu.memory_space<vmem>>, %arg11: memref<128x128xbf16, #tpu.memory_space<vmem>>, %arg12: memref<128x128xf32, #tpu.memory_space<vmem>>) attributes {dimension_semantics = [#tpu.dimension_semantics<parallel>, #tpu.dimension_semantics<arbitrary>], iteration_bounds = array<i64: 2, 4>, scalar_prefetch = 0 : i64, scratch_operands = 1 : i64, tpu.core_type = #tpu.core_type<tc>, window_params = [{transform_indices = @transform_0, window_bounds = array<i64: 128, 256>}, {transform_indices = @transform_1, window_bounds = array<i64: 256, 32>}, {transform_indices = @transform_2, window_bounds = array<i64: 128, 16>}, {transform_indices = @transform_3, window_bounds = array<i64: 128, 1>}, {pipeline_mode = #tpu.pipeline_mode<synchronous>, transform_indices = @transform_4, window_bounds = array<i64: 32, 128>}, {pipeline_mode = #tpu.pipeline_mode<synchronous>, transform_indices = @transform_5, window_bounds = array<i64: 1, 128>}, {pipeline_mode = #tpu.pipeline_mode<synchronous>, transform_indices = @transform_6, window_bounds = array<i64: 16, 128>}, {pipeline_mode = #tpu.pipeline_mode<synchronous>, transform_indices = @transform_7, window_bounds = array<i64: 128, 128>}, {pipeline_mode = #tpu.pipeline_mode<synchronous>, transform_indices = @transform_8, window_bounds = array<i64: 1, 128>}, {transform_indices = @transform_9, window_bounds = array<i64: 128, 128>}]} {
    %c0_i32 = arith.constant 0 : i32
    %0 = arith.cmpi eq, %arg1, %c0_i32 : i32
    %1 = arith.extui %0 : i1 to i32
    %c0_i32_0 = arith.constant 0 : i32
    %2 = arith.cmpi ne, %1, %c0_i32_0 : i32
    scf.if %2 {
      %cst_14 = arith.constant 0.000000e+00 : f32
      %18 = vector.broadcast %cst_14 : f32 to vector<128x128xf32>
      %c0_15 = arith.constant 0 : index
      %c0_16 = arith.constant 0 : index
      %19 = vector.load %arg12[%c0_15, %c0_16] : memref<128x128xf32, #tpu.memory_space<vmem>>, vector<128x128xf32>
      tpu.vector_store %arg12[%c0_15, %c0_16], %18 {strides = array<i32>} : memref<128x128xf32, #tpu.memory_space<vmem>>, vector<128x128xf32>,
    } else {
    }
    %c0 = arith.constant 0 : index
    %c0_1 = arith.constant 0 : index
    %3 = vector.load %arg3[%c0, %c0_1] : memref<256x32xbf16, #tpu.memory_space<vmem>>, vector<256x32xbf16>
    %c0_2 = arith.constant 0 : index
    %c0_3 = arith.constant 0 : index
    %4 = vector.load %arg6[%c0_2, %c0_3] : memref<32x128xbf16, #tpu.memory_space<vmem>>, vector<32x128xbf16>
    %cst = arith.constant dense<0.000000e+00> : vector<256x128xf32>
    %5 = tpu.matmul %3, %4, %cst {dimension_numbers = #tpu.dot_dimension_numbers<[1], [0], [0], [1], [0, 0, 1, 1], [], []>} : vector<256x32xbf16>, vector<32x128xbf16>, vector<256x128xf32> -> vector<256x128xf32>
    %c0_4 = arith.constant 0 : index
    %c0_5 = arith.constant 0 : index
    %6 = vector.load %arg7[%c0_4, %c0_5] : memref<1x128xf32, #tpu.memory_space<vmem>>, vector<1x128xf32>
    %7 = vector.broadcast %6 : vector<1x128xf32> to vector<256x128xf32>
    %8 = arith.addf %5, %7 : vector<256x128xf32>
    %c0_6 = arith.constant 0 : index
    %c0_7 = arith.constant 0 : index
    %9 = vector.load %arg12[%c0_6, %c0_7] : memref<128x128xf32, #tpu.memory_space<vmem>>, vector<128x128xf32>
    %c0_8 = arith.constant 0 : index
    %c0_9 = arith.constant 0 : index
    %10 = vector.load %arg2[%c0_8, %c0_9] : memref<128x256xbf16, #tpu.memory_space<vmem>>, vector<128x256xbf16>
    %11 = arith.truncf %8 : vector<256x128xf32> to vector<256x128xbf16>
    %cst_10 = arith.constant dense<0.000000e+00> : vector<128x128xf32>
    %12 = tpu.matmul %10, %11, %cst_10 {dimension_numbers = #tpu.dot_dimension_numbers<[1], [0], [0], [1], [0, 0, 1, 1], [], []>} : vector<128x256xbf16>, vector<256x128xbf16>, vector<128x128xf32> -> vector<128x128xf32>
    %13 = arith.addf %9, %12 : vector<128x128xf32>
    %c0_11 = arith.constant 0 : index
    %c0_12 = arith.constant 0 : index
    %14 = vector.load %arg12[%c0_11, %c0_12] : memref<128x128xf32, #tpu.memory_space<vmem>>, vector<128x128xf32>
    tpu.vector_store %arg12[%c0_11, %c0_12], %13 {strides = array<i32>} : memref<128x128xf32, #tpu.memory_space<vmem>>, vector<128x128xf32>,
    %c3_i32 = arith.constant 3 : i32
    %15 = arith.cmpi eq, %arg1, %c3_i32 : i32
    %16 = arith.extui %15 : i1 to i32
    %c0_i32_13 = arith.constant 0 : i32
    %17 = arith.cmpi ne, %16, %c0_i32_13 : i32
    scf.if %17 {
      %c0_14 = arith.constant 0 : index
      %c0_15 = arith.constant 0 : index
      %18 = vector.load %arg5[%c0_14, %c0_15] : memref<128x1xf32, #tpu.memory_space<vmem>>, vector<128x1xf32>
      %cst_16 = arith.constant 1.000000e+00 : f32
      %19 = vector.broadcast %cst_16 : f32 to vector<128x1xf32>
      %20 = arith.maximumf %18, %19 : vector<128x1xf32>
      %21 = tpu.reciprocal %20 {approx = true} : vector<128x1xf32> -> vector<128x1xf32>
      %c0_17 = arith.constant 0 : index
      %c0_18 = arith.constant 0 : index
      %22 = vector.load %arg12[%c0_17, %c0_18] : memref<128x128xf32, #tpu.memory_space<vmem>>, vector<128x128xf32>
      %23 = vector.broadcast %21 : vector<128x1xf32> to vector<128x128xf32>
      %24 = arith.mulf %22, %23 : vector<128x128xf32>
      %25 = arith.truncf %24 : vector<128x128xf32> to vector<128x128xbf16>
      %c0_19 = arith.constant 0 : index
      %c0_20 = arith.constant 0 : index
      %26 = vector.load %arg4[%c0_19, %c0_20] : memref<128x16xbf16, #tpu.memory_space<vmem>>, vector<128x16xbf16>
      %c0_21 = arith.constant 0 : index
      %c0_22 = arith.constant 0 : index
      %27 = vector.load %arg8[%c0_21, %c0_22] : memref<16x128xbf16, #tpu.memory_space<vmem>>, vector<16x128xbf16>
      %cst_23 = arith.constant dense<0.000000e+00> : vector<128x128xf32>
      %28 = tpu.matmul %26, %27, %cst_23 {dimension_numbers = #tpu.dot_dimension_numbers<[1], [0], [0], [1], [0, 0, 1, 1], [], []>} : vector<128x16xbf16>, vector<16x128xbf16>, vector<128x128xf32> -> vector<128x128xf32>
      %c0_24 = arith.constant 0 : index
      %c0_25 = arith.constant 0 : index
      %29 = vector.load %arg9[%c0_24, %c0_25] : memref<128x128xbf16, #tpu.memory_space<vmem>>, vector<128x128xbf16>
      %cst_26 = arith.constant dense<0.000000e+00> : vector<128x128xf32>
      %30 = tpu.matmul %25, %29, %cst_26 {dimension_numbers = #tpu.dot_dimension_numbers<[1], [0], [0], [1], [0, 0, 1, 1], [], []>} : vector<128x128xbf16>, vector<128x128xbf16>, vector<128x128xf32> -> vector<128x128xf32>
      %31 = arith.addf %28, %30 : vector<128x128xf32>
      %c0_27 = arith.constant 0 : index
      %c0_28 = arith.constant 0 : index
      %32 = vector.load %arg10[%c0_27, %c0_28] : memref<1x128xf32, #tpu.memory_space<vmem>>, vector<1x128xf32>
      %33 = vector.broadcast %32 : vector<1x128xf32> to vector<128x128xf32>
      %34 = arith.addf %31, %33 : vector<128x128xf32>
      %cst_29 = arith.constant 0.000000e+00 : f32
      %35 = vector.broadcast %cst_29 : f32 to vector<128x128xf32>
      %36 = arith.maximumf %34, %35 : vector<128x128xf32>
      %37 = arith.truncf %36 : vector<128x128xf32> to vector<128x128xbf16>
      %c0_30 = arith.constant 0 : index
      %c0_31 = arith.constant 0 : index
      %38 = vector.load %arg11[%c0_30, %c0_31] : memref<128x128xbf16, #tpu.memory_space<vmem>>, vector<128x128xbf16>
      tpu.vector_store %arg11[%c0_30, %c0_31], %37 {strides = array<i32>} : memref<128x128xbf16, #tpu.memory_space<vmem>>, vector<128x128xbf16>,
    } else {
    }
    return
  }
  func.func @transform_0(%arg0: i32, %arg1: i32) -> (i32, i32) {
    %c0_i32 = arith.constant 0 : i32
    return %arg0, %arg1 : i32, i32
  }
  func.func @transform_1(%arg0: i32, %arg1: i32) -> (i32, i32) {
    %c0_i32 = arith.constant 0 : i32
    %c0_i32_0 = arith.constant 0 : i32
    return %arg1, %c0_i32 : i32, i32
  }
  func.func @transform_2(%arg0: i32, %arg1: i32) -> (i32, i32) {
    %c0_i32 = arith.constant 0 : i32
    %c0_i32_0 = arith.constant 0 : i32
    return %arg0, %c0_i32 : i32, i32
  }
  func.func @transform_3(%arg0: i32, %arg1: i32) -> (i32, i32) {
    %c0_i32 = arith.constant 0 : i32
    %c0_i32_0 = arith.constant 0 : i32
    return %arg0, %c0_i32 : i32, i32
  }
  func.func @transform_4(%arg0: i32, %arg1: i32) -> (i32, i32) {
    %c0_i32 = arith.constant 0 : i32
    %c0_i32_0 = arith.constant 0 : i32
    %c0_i32_1 = arith.constant 0 : i32
    return %c0_i32, %c0_i32_0 : i32, i32
  }
  func.func @transform_5(%arg0: i32, %arg1: i32) -> (i32, i32) {
    %c0_i32 = arith.constant 0 : i32
    %c0_i32_0 = arith.constant 0 : i32
    %c0_i32_1 = arith.constant 0 : i32
    return %c0_i32, %c0_i32_0 : i32, i32
  }
  func.func @transform_6(%arg0: i32, %arg1: i32) -> (i32, i32) {
    %c0_i32 = arith.constant 0 : i32
    %c0_i32_0 = arith.constant 0 : i32
    %c0_i32_1 = arith.constant 0 : i32
    return %c0_i32, %c0_i32_0 : i32, i32
  }
  func.func @transform_7(%arg0: i32, %arg1: i32) -> (i32, i32) {
    %c0_i32 = arith.constant 0 : i32
    %c0_i32_0 = arith.constant 0 : i32
    %c0_i32_1 = arith.constant 0 : i32
    return %c0_i32, %c0_i32_0 : i32, i32
  }
  func.func @transform_8(%arg0: i32, %arg1: i32) -> (i32, i32) {
    %c0_i32 = arith.constant 0 : i32
    %c0_i32_0 = arith.constant 0 : i32
    %c0_i32_1 = arith.constant 0 : i32
    return %c0_i32, %c0_i32_0 : i32, i32
  }
  func.func @transform_9(%arg0: i32, %arg1: i32) -> (i32, i32) {
    %c0_i32 = arith.constant 0 : i32
    %c0_i32_0 = arith.constant 0 : i32
    return %arg0, %c0_i32 : i32, i32
  }
}

module attributes {stable_mosaic.version = 11 : i64} {
  func.func @_sage_layer_kernel(%arg0: i32, %arg1: i32, %arg2: memref<128x256xbf16, #tpu.memory_space<vmem>>, %arg3: memref<256x144xbf16, #tpu.memory_space<vmem>>, %arg4: memref<128x128xbf16, #tpu.memory_space<vmem>>, %arg5: memref<128x1xf32, #tpu.memory_space<vmem>>, %arg6: memref<144x32xbf16, #tpu.memory_space<vmem>>, %arg7: memref<1x32xf32, #tpu.memory_space<vmem>>, %arg8: memref<128x32xbf16, #tpu.memory_space<vmem>>, %arg9: memref<32x32xbf16, #tpu.memory_space<vmem>>, %arg10: memref<1x32xf32, #tpu.memory_space<vmem>>, %arg11: memref<128x32xbf16, #tpu.memory_space<vmem>>, %arg12: memref<128x32xf32, #tpu.memory_space<vmem>>) attributes {dimension_semantics = [#tpu.dimension_semantics<parallel>, #tpu.dimension_semantics<arbitrary>], iteration_bounds = array<i64: 2, 4>, scalar_prefetch = 0 : i64, scratch_operands = 1 : i64, tpu.core_type = #tpu.core_type<tc>, window_params = [{transform_indices = @transform_0, window_bounds = array<i64: 128, 256>}, {transform_indices = @transform_1, window_bounds = array<i64: 256, 144>}, {transform_indices = @transform_2, window_bounds = array<i64: 128, 128>}, {transform_indices = @transform_3, window_bounds = array<i64: 128, 1>}, {pipeline_mode = #tpu.pipeline_mode<synchronous>, transform_indices = @transform_4, window_bounds = array<i64: 144, 32>}, {pipeline_mode = #tpu.pipeline_mode<synchronous>, transform_indices = @transform_5, window_bounds = array<i64: 1, 32>}, {pipeline_mode = #tpu.pipeline_mode<synchronous>, transform_indices = @transform_6, window_bounds = array<i64: 128, 32>}, {pipeline_mode = #tpu.pipeline_mode<synchronous>, transform_indices = @transform_7, window_bounds = array<i64: 32, 32>}, {pipeline_mode = #tpu.pipeline_mode<synchronous>, transform_indices = @transform_8, window_bounds = array<i64: 1, 32>}, {transform_indices = @transform_9, window_bounds = array<i64: 128, 32>}]} {
    %c0_i32 = arith.constant 0 : i32
    %0 = arith.cmpi eq, %arg1, %c0_i32 : i32
    %1 = arith.extui %0 : i1 to i32
    %c0_i32_0 = arith.constant 0 : i32
    %2 = arith.cmpi ne, %1, %c0_i32_0 : i32
    scf.if %2 {
      %cst_14 = arith.constant 0.000000e+00 : f32
      %18 = vector.broadcast %cst_14 : f32 to vector<128x32xf32>
      %c0_15 = arith.constant 0 : index
      %c0_16 = arith.constant 0 : index
      %19 = vector.load %arg12[%c0_15, %c0_16] : memref<128x32xf32, #tpu.memory_space<vmem>>, vector<128x32xf32>
      tpu.vector_store %arg12[%c0_15, %c0_16], %18 {strides = array<i32>} : memref<128x32xf32, #tpu.memory_space<vmem>>, vector<128x32xf32>,
    } else {
    }
    %c0 = arith.constant 0 : index
    %c0_1 = arith.constant 0 : index
    %3 = vector.load %arg3[%c0, %c0_1] : memref<256x144xbf16, #tpu.memory_space<vmem>>, vector<256x144xbf16>
    %c0_2 = arith.constant 0 : index
    %c0_3 = arith.constant 0 : index
    %4 = vector.load %arg6[%c0_2, %c0_3] : memref<144x32xbf16, #tpu.memory_space<vmem>>, vector<144x32xbf16>
    %cst = arith.constant dense<0.000000e+00> : vector<256x32xf32>
    %5 = tpu.matmul %3, %4, %cst {dimension_numbers = #tpu.dot_dimension_numbers<[1], [0], [0], [1], [0, 0, 1, 1], [], []>} : vector<256x144xbf16>, vector<144x32xbf16>, vector<256x32xf32> -> vector<256x32xf32>
    %c0_4 = arith.constant 0 : index
    %c0_5 = arith.constant 0 : index
    %6 = vector.load %arg7[%c0_4, %c0_5] : memref<1x32xf32, #tpu.memory_space<vmem>>, vector<1x32xf32>
    %7 = vector.broadcast %6 : vector<1x32xf32> to vector<256x32xf32>
    %8 = arith.addf %5, %7 : vector<256x32xf32>
    %c0_6 = arith.constant 0 : index
    %c0_7 = arith.constant 0 : index
    %9 = vector.load %arg12[%c0_6, %c0_7] : memref<128x32xf32, #tpu.memory_space<vmem>>, vector<128x32xf32>
    %c0_8 = arith.constant 0 : index
    %c0_9 = arith.constant 0 : index
    %10 = vector.load %arg2[%c0_8, %c0_9] : memref<128x256xbf16, #tpu.memory_space<vmem>>, vector<128x256xbf16>
    %11 = arith.truncf %8 : vector<256x32xf32> to vector<256x32xbf16>
    %cst_10 = arith.constant dense<0.000000e+00> : vector<128x32xf32>
    %12 = tpu.matmul %10, %11, %cst_10 {dimension_numbers = #tpu.dot_dimension_numbers<[1], [0], [0], [1], [0, 0, 1, 1], [], []>} : vector<128x256xbf16>, vector<256x32xbf16>, vector<128x32xf32> -> vector<128x32xf32>
    %13 = arith.addf %9, %12 : vector<128x32xf32>
    %c0_11 = arith.constant 0 : index
    %c0_12 = arith.constant 0 : index
    %14 = vector.load %arg12[%c0_11, %c0_12] : memref<128x32xf32, #tpu.memory_space<vmem>>, vector<128x32xf32>
    tpu.vector_store %arg12[%c0_11, %c0_12], %13 {strides = array<i32>} : memref<128x32xf32, #tpu.memory_space<vmem>>, vector<128x32xf32>,
    %c3_i32 = arith.constant 3 : i32
    %15 = arith.cmpi eq, %arg1, %c3_i32 : i32
    %16 = arith.extui %15 : i1 to i32
    %c0_i32_13 = arith.constant 0 : i32
    %17 = arith.cmpi ne, %16, %c0_i32_13 : i32
    scf.if %17 {
      %c0_14 = arith.constant 0 : index
      %c0_15 = arith.constant 0 : index
      %18 = vector.load %arg5[%c0_14, %c0_15] : memref<128x1xf32, #tpu.memory_space<vmem>>, vector<128x1xf32>
      %cst_16 = arith.constant 1.000000e+00 : f32
      %19 = vector.broadcast %cst_16 : f32 to vector<128x1xf32>
      %20 = arith.maximumf %18, %19 : vector<128x1xf32>
      %21 = tpu.reciprocal %20 {approx = true} : vector<128x1xf32> -> vector<128x1xf32>
      %c0_17 = arith.constant 0 : index
      %c0_18 = arith.constant 0 : index
      %22 = vector.load %arg12[%c0_17, %c0_18] : memref<128x32xf32, #tpu.memory_space<vmem>>, vector<128x32xf32>
      %23 = vector.broadcast %21 : vector<128x1xf32> to vector<128x32xf32>
      %24 = arith.mulf %22, %23 : vector<128x32xf32>
      %25 = arith.truncf %24 : vector<128x32xf32> to vector<128x32xbf16>
      %c0_19 = arith.constant 0 : index
      %c0_20 = arith.constant 0 : index
      %26 = vector.load %arg4[%c0_19, %c0_20] : memref<128x128xbf16, #tpu.memory_space<vmem>>, vector<128x128xbf16>
      %c0_21 = arith.constant 0 : index
      %c0_22 = arith.constant 0 : index
      %27 = vector.load %arg8[%c0_21, %c0_22] : memref<128x32xbf16, #tpu.memory_space<vmem>>, vector<128x32xbf16>
      %cst_23 = arith.constant dense<0.000000e+00> : vector<128x32xf32>
      %28 = tpu.matmul %26, %27, %cst_23 {dimension_numbers = #tpu.dot_dimension_numbers<[1], [0], [0], [1], [0, 0, 1, 1], [], []>} : vector<128x128xbf16>, vector<128x32xbf16>, vector<128x32xf32> -> vector<128x32xf32>
      %c0_24 = arith.constant 0 : index
      %c0_25 = arith.constant 0 : index
      %29 = vector.load %arg9[%c0_24, %c0_25] : memref<32x32xbf16, #tpu.memory_space<vmem>>, vector<32x32xbf16>
      %cst_26 = arith.constant dense<0.000000e+00> : vector<128x32xf32>
      %30 = tpu.matmul %25, %29, %cst_26 {dimension_numbers = #tpu.dot_dimension_numbers<[1], [0], [0], [1], [0, 0, 1, 1], [], []>} : vector<128x32xbf16>, vector<32x32xbf16>, vector<128x32xf32> -> vector<128x32xf32>
      %31 = arith.addf %28, %30 : vector<128x32xf32>
      %c0_27 = arith.constant 0 : index
      %c0_28 = arith.constant 0 : index
      %32 = vector.load %arg10[%c0_27, %c0_28] : memref<1x32xf32, #tpu.memory_space<vmem>>, vector<1x32xf32>
      %33 = vector.broadcast %32 : vector<1x32xf32> to vector<128x32xf32>
      %34 = arith.addf %31, %33 : vector<128x32xf32>
      %cst_29 = arith.constant 0.000000e+00 : f32
      %35 = vector.broadcast %cst_29 : f32 to vector<128x32xf32>
      %36 = arith.maximumf %34, %35 : vector<128x32xf32>
      %37 = arith.truncf %36 : vector<128x32xf32> to vector<128x32xbf16>
      %c0_30 = arith.constant 0 : index
      %c0_31 = arith.constant 0 : index
      %38 = vector.load %arg11[%c0_30, %c0_31] : memref<128x32xbf16, #tpu.memory_space<vmem>>, vector<128x32xbf16>
      tpu.vector_store %arg11[%c0_30, %c0_31], %37 {strides = array<i32>} : memref<128x32xbf16, #tpu.memory_space<vmem>>, vector<128x32xbf16>,
    } else {
    }
    return
  }
  func.func @transform_0(%arg0: i32, %arg1: i32) -> (i32, i32) {
    %c0_i32 = arith.constant 0 : i32
    return %arg0, %arg1 : i32, i32
  }
  func.func @transform_1(%arg0: i32, %arg1: i32) -> (i32, i32) {
    %c0_i32 = arith.constant 0 : i32
    %c0_i32_0 = arith.constant 0 : i32
    return %arg1, %c0_i32 : i32, i32
  }
  func.func @transform_2(%arg0: i32, %arg1: i32) -> (i32, i32) {
    %c0_i32 = arith.constant 0 : i32
    %c0_i32_0 = arith.constant 0 : i32
    return %arg0, %c0_i32 : i32, i32
  }
  func.func @transform_3(%arg0: i32, %arg1: i32) -> (i32, i32) {
    %c0_i32 = arith.constant 0 : i32
    %c0_i32_0 = arith.constant 0 : i32
    return %arg0, %c0_i32 : i32, i32
  }
  func.func @transform_4(%arg0: i32, %arg1: i32) -> (i32, i32) {
    %c0_i32 = arith.constant 0 : i32
    %c0_i32_0 = arith.constant 0 : i32
    %c0_i32_1 = arith.constant 0 : i32
    return %c0_i32, %c0_i32_0 : i32, i32
  }
  func.func @transform_5(%arg0: i32, %arg1: i32) -> (i32, i32) {
    %c0_i32 = arith.constant 0 : i32
    %c0_i32_0 = arith.constant 0 : i32
    %c0_i32_1 = arith.constant 0 : i32
    return %c0_i32, %c0_i32_0 : i32, i32
  }
  func.func @transform_6(%arg0: i32, %arg1: i32) -> (i32, i32) {
    %c0_i32 = arith.constant 0 : i32
    %c0_i32_0 = arith.constant 0 : i32
    %c0_i32_1 = arith.constant 0 : i32
    return %c0_i32, %c0_i32_0 : i32, i32
  }
  func.func @transform_7(%arg0: i32, %arg1: i32) -> (i32, i32) {
    %c0_i32 = arith.constant 0 : i32
    %c0_i32_0 = arith.constant 0 : i32
    %c0_i32_1 = arith.constant 0 : i32
    return %c0_i32, %c0_i32_0 : i32, i32
  }
  func.func @transform_8(%arg0: i32, %arg1: i32) -> (i32, i32) {
    %c0_i32 = arith.constant 0 : i32
    %c0_i32_0 = arith.constant 0 : i32
    %c0_i32_1 = arith.constant 0 : i32
    return %c0_i32, %c0_i32_0 : i32, i32
  }
  func.func @transform_9(%arg0: i32, %arg1: i32) -> (i32, i32) {
    %c0_i32 = arith.constant 0 : i32
    %c0_i32_0 = arith.constant 0 : i32
    return %arg0, %c0_i32 : i32, i32
  }
}

module attributes {stable_mosaic.version = 11 : i64} {
  func.func @_predictor_kernel(%arg0: i32, %arg1: memref<256x64xbf16, #tpu.memory_space<vmem>>, %arg2: memref<64x32xbf16, #tpu.memory_space<vmem>>, %arg3: memref<1x32xf32, #tpu.memory_space<vmem>>, %arg4: memref<32x2xbf16, #tpu.memory_space<vmem>>, %arg5: memref<1x2xf32, #tpu.memory_space<vmem>>, %arg6: memref<256x2xf32, #tpu.memory_space<vmem>>) attributes {dimension_semantics = [#tpu.dimension_semantics<parallel>], iteration_bounds = array<i64: 4>, scalar_prefetch = 0 : i64, scratch_operands = 0 : i64, tpu.core_type = #tpu.core_type<tc>, window_params = [{transform_indices = @transform_0, window_bounds = array<i64: 256, 64>}, {pipeline_mode = #tpu.pipeline_mode<synchronous>, transform_indices = @transform_1, window_bounds = array<i64: 64, 32>}, {pipeline_mode = #tpu.pipeline_mode<synchronous>, transform_indices = @transform_2, window_bounds = array<i64: 1, 32>}, {pipeline_mode = #tpu.pipeline_mode<synchronous>, transform_indices = @transform_3, window_bounds = array<i64: 32, 2>}, {pipeline_mode = #tpu.pipeline_mode<synchronous>, transform_indices = @transform_4, window_bounds = array<i64: 1, 2>}, {transform_indices = @transform_5, window_bounds = array<i64: 256, 2>}]} {
    %c0 = arith.constant 0 : index
    %c0_0 = arith.constant 0 : index
    %0 = vector.load %arg1[%c0, %c0_0] : memref<256x64xbf16, #tpu.memory_space<vmem>>, vector<256x64xbf16>
    %c0_1 = arith.constant 0 : index
    %c0_2 = arith.constant 0 : index
    %1 = vector.load %arg2[%c0_1, %c0_2] : memref<64x32xbf16, #tpu.memory_space<vmem>>, vector<64x32xbf16>
    %cst = arith.constant dense<0.000000e+00> : vector<256x32xf32>
    %2 = tpu.matmul %0, %1, %cst {dimension_numbers = #tpu.dot_dimension_numbers<[1], [0], [0], [1], [0, 0, 1, 1], [], []>} : vector<256x64xbf16>, vector<64x32xbf16>, vector<256x32xf32> -> vector<256x32xf32>
    %c0_3 = arith.constant 0 : index
    %c0_4 = arith.constant 0 : index
    %3 = vector.load %arg3[%c0_3, %c0_4] : memref<1x32xf32, #tpu.memory_space<vmem>>, vector<1x32xf32>
    %4 = vector.broadcast %3 : vector<1x32xf32> to vector<256x32xf32>
    %5 = arith.addf %2, %4 : vector<256x32xf32>
    %cst_5 = arith.constant 0.000000e+00 : f32
    %6 = vector.broadcast %cst_5 : f32 to vector<256x32xf32>
    %7 = arith.maximumf %5, %6 : vector<256x32xf32>
    %8 = arith.truncf %7 : vector<256x32xf32> to vector<256x32xbf16>
    %c0_6 = arith.constant 0 : index
    %c0_7 = arith.constant 0 : index
    %9 = vector.load %arg4[%c0_6, %c0_7] : memref<32x2xbf16, #tpu.memory_space<vmem>>, vector<32x2xbf16>
    %cst_8 = arith.constant dense<0.000000e+00> : vector<256x2xf32>
    %10 = tpu.matmul %8, %9, %cst_8 {dimension_numbers = #tpu.dot_dimension_numbers<[1], [0], [0], [1], [0, 0, 1, 1], [], []>} : vector<256x32xbf16>, vector<32x2xbf16>, vector<256x2xf32> -> vector<256x2xf32>
    %c0_9 = arith.constant 0 : index
    %c0_10 = arith.constant 0 : index
    %11 = vector.load %arg5[%c0_9, %c0_10] : memref<1x2xf32, #tpu.memory_space<vmem>>, vector<1x2xf32>
    %12 = vector.broadcast %11 : vector<1x2xf32> to vector<256x2xf32>
    %13 = arith.addf %10, %12 : vector<256x2xf32>
    %c0_11 = arith.constant 0 : index
    %c0_12 = arith.constant 0 : index
    %14 = vector.load %arg6[%c0_11, %c0_12] : memref<256x2xf32, #tpu.memory_space<vmem>>, vector<256x2xf32>
    tpu.vector_store %arg6[%c0_11, %c0_12], %13 {strides = array<i32>} : memref<256x2xf32, #tpu.memory_space<vmem>>, vector<256x2xf32>,
    return
  }
  func.func @transform_0(%arg0: i32) -> (i32, i32) {
    %c0_i32 = arith.constant 0 : i32
    %c0_i32_0 = arith.constant 0 : i32
    return %arg0, %c0_i32 : i32, i32
  }
  func.func @transform_1(%arg0: i32) -> (i32, i32) {
    %c0_i32 = arith.constant 0 : i32
    %c0_i32_0 = arith.constant 0 : i32
    %c0_i32_1 = arith.constant 0 : i32
    return %c0_i32, %c0_i32_0 : i32, i32
  }
  func.func @transform_2(%arg0: i32) -> (i32, i32) {
    %c0_i32 = arith.constant 0 : i32
    %c0_i32_0 = arith.constant 0 : i32
    %c0_i32_1 = arith.constant 0 : i32
    return %c0_i32, %c0_i32_0 : i32, i32
  }
  func.func @transform_3(%arg0: i32) -> (i32, i32) {
    %c0_i32 = arith.constant 0 : i32
    %c0_i32_0 = arith.constant 0 : i32
    %c0_i32_1 = arith.constant 0 : i32
    return %c0_i32, %c0_i32_0 : i32, i32
  }
  func.func @transform_4(%arg0: i32) -> (i32, i32) {
    %c0_i32 = arith.constant 0 : i32
    %c0_i32_0 = arith.constant 0 : i32
    %c0_i32_1 = arith.constant 0 : i32
    return %c0_i32, %c0_i32_0 : i32, i32
  }
  func.func @transform_5(%arg0: i32) -> (i32, i32) {
    %c0_i32 = arith.constant 0 : i32
    %c0_i32_0 = arith.constant 0 : i32
    return %arg0, %c0_i32 : i32, i32
  }
}

</mosaic_0001>

<bundles_post_ra>
// kernel: _lambda_.3
= control target key start
LH: loop header
LB: loop body
LE: loop exit
PB: predicated region body
PF: predicated region fallthrough
CT: control target
= control target key end

     0   :  { %s2869_s0 = inlined_call_operand.vmem [shape: bf16[256,1024], index: 0, kind: input, shape index: {}]   ;;  %s2870_s1 = inlined_call_operand.vmem [shape: bf16[1024,32], index: 1, kind: input, shape index: {}]   ;;  %s2871_s2 = inlined_call_operand.vmem [shape: bf16[256,16], index: 2, kind: input, shape index: {}]   ;;  %s2872_s3 = inlined_call_operand.vmem [shape: f32[256,1], index: 3, kind: input, shape index: {}]   ;;  %s2873_s4 = inlined_call_operand.vmem [shape: bf16[32,128], index: 4, kind: input, shape index: {}]   ;;  %s2874_s5 = inlined_call_operand.vmem [shape: f32[1,128], index: 5, kind: input, shape index: {}]   ;;  %s2875_s6 = inlined_call_operand.vmem [shape: bf16[16,128], index: 6, kind: input, shape index: {}]   ;;  %s2876_s7 = inlined_call_operand.vmem [shape: bf16[128,128], index: 7, kind: input, shape index: {}]   ;;  %s2877_s8 = inlined_call_operand.vmem [shape: f32[1,128], index: 8, kind: input, shape index: {}]   ;;  %s2878_s9 = inlined_call_operand.vmem [shape: bf16[256,128], index: 9, kind: output, shape index: {}]  }
   0x1   :  { %2882 = sst [smem:[#allocation7_spill]] %s2869_s0 }
   0x2   :  { %s2537_s30 = smov 0   ;;  %s2539_s10 = smov 0  }
   0x3   :  { %s2541_s11 = smov 0   ;;  %s2543_s12 = smov 0  }
   0x4   :  { %s2545_s13 = smov 0   ;;  %s2547_s14 = smov 0  }
   0x5   :  { %s2549_s15 = smov 0  }
   0x6 LB: > { %2883 = sst [smem:[#allocation4_spill]] %s2479_s14  ;;  %s28_s16 = sadd.s32 1, %s2475_s13  ;;  %s2483_s15 = sphi %s2549_s15, %s19_s15   ;;  %s2479_s14 = sphi %s2547_s14, %s2889_s14   ;;  %s2475_s13 = sphi %s2545_s13, %s2893_s13   ;;  %s2471_s12 = sphi %s2543_s12, %s2887_s12   ;;  %s2467_s11 = sphi %s2541_s11, %s2892_s11   ;;  %s2463_s10 = sphi %s2539_s10, %s2891_s10   ;;  %s2459_s30 = sphi %s2537_s30, %s2890_s30  }
   0x7   : > { %p29_p0 = scmp.ge.s32.totalorder %s28_s16, 4  ;;  %s31_s17 = sadd.s32 1, %s2479_s14 }
   0x8   : > { %p47_p1 = scmp.ne.s32.totalorder %s2463_s10, %s2459_s30  ;;  %p48_p2 = scmp.eq.s32.totalorder %s2483_s15, 0 }
   0x9   : > { %s2895_s16 = smov (%p29_p0, %s28_s16), 0  ;;  %s2897_s17 = smov (!%p29_p0, %s31_s17), %s2479_s14 }
   0xa   : > { %2884 = sst [smem:[#allocation5_spill]] %s2895_s16  ;;  %p49_p3 = por %p48_p2, %p47_p1 }
   0xb   : > { %p33_p4 = scmp.ge.s32.totalorder %s2897_s17, 2  ;;  %s36_s18 = ssub.s32 %s2475_s13, %s2895_s16 }
   0xc   : > { %s40_s21 = sadd.s32 1, %s2463_s10  ;;  %p1892_p6 = scmp.ge.s32.totalorder %s2483_s15, 8 }
   0xd   : > { %s2899_s17 = smov (%p33_p4, %s2897_s17), 0 }
   0xe   : > { %2885 = sst [smem:[#allocation6_spill]] %s2899_s17  ;;  %s35_s19 = ssub.s32 %s2479_s14, %s2899_s17 }
   0xf   : > { %s37_s20 = sor.u32 %s36_s18, %s35_s19  ;;  %297 = sbr.rel (%p1892_p6) target bundleno = 46 (0x2e), region = 36 }
  0x10   : > { %p38_p5 = scmp.eq.s32.totalorder %s37_s20, 0 }
  0x12   : > { %s2588_s22 = scalar_select %p38_p5, %s2463_s10, %s40_s21  }
  0x14   : > { %300 = sbr.rel (!%p49_p3) target bundleno = 46 (0x2e), region = 40  ;;  %s302_s23 = sand.u32 (%p49_p3), 1, %s2463_s10  }
  0x15   : > { %s1895_s24 = sshll.u32 (%p49_p3), %s2475_s13, 1  ;;  %s1893_s25 = sshll.u32 (%p49_p3), %s302_s23, 7 }
  0x16   : > { %s2005_s26 = sshll.u32 (%p49_p3), %s2479_s14, 7  ;;  %s2886_s0 = sld [smem:[#allocation7_spill]] (%p49_p3) }
  0x17   : > { %s308_s27 = sadd.s32 (%p49_p3), %s2005_s26, %s1895_s24  ;;  %s304_s19 = scalar_lea.vmem (%p49_p3), [#allocation3], %s1893_s25 }
  0x18   : > { %s1897_s28 = sshll.u32 (%p49_p3), %s308_s27, 2 }
  0x1c   : > { %s2597_s18 = scalar_lea.vmem %s2886_s0, %s1897_s28 }
  0x1d   : > { %v369_v0 = vld [vmem:[%s2597_s18] sm:$0xff] }
  0x1e   : > { %v371_v1 = vld [vmem:[%s2597_s18 + $0x20] sm:$0xff]  ;;  %370 = vst [vmem:[%s304_s19] sm:$0xff] %v369_v0 }
  0x1f   : > { %v373_v2 = vld [vmem:[%s2597_s18 + $0x40] sm:$0xff]  ;;  %372 = vst [vmem:[%s304_s19 + $0x8] sm:$0xff] %v371_v1 }
  0x20   : > { %374 = vst [vmem:[%s304_s19 + $0x10] sm:$0xff] %v373_v2  ;;  %v375_v3 = vld [vmem:[%s2597_s18 + $0x60] sm:$0xff] }
  0x21   : > { %v377_v4 = vld [vmem:[%s2597_s18 + $0x80] sm:$0xff]  ;;  %376 = vst [vmem:[%s304_s19 + $0x18] sm:$0xff] %v375_v3 }
  0x22   : > { %v379_v5 = vld [vmem:[%s2597_s18 + $0xa0] sm:$0xff]  ;;  %378 = vst [vmem:[%s304_s19 + $0x20] sm:$0xff] %v377_v4 }
  0x23   : > { %380 = vst [vmem:[%s304_s19 + $0x28] sm:$0xff] %v379_v5  ;;  %v381_v6 = vld [vmem:[%s2597_s18 + $0xc0] sm:$0xff] }
  0x24   : > { %v383_v7 = vld [vmem:[%s2597_s18 + $0xe0] sm:$0xff]  ;;  %382 = vst [vmem:[%s304_s19 + $0x30] sm:$0xff] %v381_v6 }
  0x25   : > { %v385_v8 = vld [vmem:[%s2597_s18 + $0x100] sm:$0xff]  ;;  %384 = vst [vmem:[%s304_s19 + $0x38] sm:$0xff] %v383_v7 }
  0x26   : > { %386 = vst [vmem:[%s304_s19 + $0x40] sm:$0xff] %v385_v8  ;;  %v387_v9 = vld [vmem:[%s2597_s18 + $0x120] sm:$0xff] }
  0x27   : > { %v389_v10 = vld [vmem:[%s2597_s18 + $0x140] sm:$0xff]  ;;  %388 = vst [vmem:[%s304_s19 + $0x48] sm:$0xff] %v387_v9 }
  0x28   : > { %v391_v11 = vld [vmem:[%s2597_s18 + $0x160] sm:$0xff]  ;;  %390 = vst [vmem:[%s304_s19 + $0x50] sm:$0xff] %v389_v10 }
  0x29   : > { %392 = vst [vmem:[%s304_s19 + $0x58] sm:$0xff] %v391_v11  ;;  %v393_v12 = vld [vmem:[%s2597_s18 + $0x180] sm:$0xff] }
  0x2a   : > { %v395_v13 = vld [vmem:[%s2597_s18 + $0x1a0] sm:$0xff]  ;;  %394 = vst [vmem:[%s304_s19 + $0x60] sm:$0xff] %v393_v12 }
  0x2b   : > { %v397_v14 = vld [vmem:[%s2597_s18 + $0x1c0] sm:$0xff]  ;;  %396 = vst [vmem:[%s304_s19 + $0x68] sm:$0xff] %v395_v13 }
  0x2c   : > { %398 = vst [vmem:[%s304_s19 + $0x70] sm:$0xff] %v397_v14  ;;  %v399_v15 = vld [vmem:[%s2597_s18 + $0x1e0] sm:$0xff] }
  0x2d   : > { %400 = vst [vmem:[%s304_s19 + $0x78] sm:$0xff] %v399_v15 }
  0x2e PF: > { %p1898_p7 = scmp.ge.s32.totalorder %s2483_s15, 1  ;;  %p432_p8 = scmp.lt.s32.totalorder %s2483_s15, 9 }
  0x30   : > { %p433_p9 = pnand %p1898_p7, %p432_p8 }
  0x31   : > { %s439_s17 = sand.u32 (!%p433_p9), 1, %s2459_s30   ;;  %s1900_s20 = sshll.u32 (!%p433_p9), %s2467_s11, 5 }
  0x32   : > { %436 = sbr.rel (%p433_p9) target bundleno = 1007 (0x3ef), region = 90  ;;  %s1899_s21 = sshll.u32 (!%p433_p9), %s439_s17, 7 }
  0x33   : > { %p492_p10 = scmp.lt.s32.totalorder (!%p433_p9), %s1900_s20, 127  ;;  %s1902_s23 = sshll.u32 (!%p433_p9), %s2471_s12, 4 }
  0x34   : > { %p498_p11 = scmp.lt.s32.totalorder (!%p433_p9), %s1902_s23, 31  ;;  %p1908_p12 = scmp.ne.s32.totalorder (!%p433_p9), %s2467_s11, 0 }
  0x37   : > { %s2901_s20 = smov (!%p492_p10, %s1900_s20), 127  ;;  %s2903_s23 = smov (!%p498_p11, %s1902_s23), 31 }
  0x38   : > { %s1901_s24 = sshll.u32 %s2901_s20, 2  ;;  %s1903_s28 = sshll.u32 %s2903_s23, 2 }
  0x39   : > { %s2623_s27 = scalar_lea.vmem %s2870_s1, %s1901_s24  ;;  %s1905_s29 = sshll.u32 %s2903_s23, 3 }
  0x3a   : > { %s2628_s0 = scalar_lea.vmem %s2871_s2, %s1903_s28  ;;  %s2633_s12 = scalar_lea.vmem %s2872_s3, %s1905_s29 }
  0x3b   : > { %s2638_s14 = scalar_lea.vmem %s2878_s9, %s1903_s28  ;;  %s2640_s24 = scalar_lea.vmem [#allocation3], %s1899_s21 }
  0x3c   : > { %519 = sbr.rel (%p1908_p12) target bundleno = 74 (0x4a), region = 98 }
  0x41   : > { %v2485_v16 = vmov 0.0  }
  0x42   : > { %520 = vst [vmem:[#allocation2 + $0x30] sm:$0xff] %v2485_v16  ;;  %521 = vst [vmem:[#allocation2] sm:$0xff] %v2485_v16 }
  0x43   : > { %522 = vst [vmem:[#allocation2 + $0x58] sm:$0xff] %v2485_v16  ;;  %523 = vst [vmem:[#allocation2 + $0x18] sm:$0xff] %v2485_v16 }
  0x44   : > { %524 = vst [vmem:[#allocation2 + $0x50] sm:$0xff] %v2485_v16  ;;  %525 = vst [vmem:[#allocation2 + $0x68] sm:$0xff] %v2485_v16 }
  0x45   : > { %526 = vst [vmem:[#allocation2 + $0x8] sm:$0xff] %v2485_v16  ;;  %527 = vst [vmem:[#allocation2 + $0x48] sm:$0xff] %v2485_v16 }
  0x46   : > { %528 = vst [vmem:[#allocation2 + $0x40] sm:$0xff] %v2485_v16  ;;  %529 = vst [vmem:[#allocation2 + $0x20] sm:$0xff] %v2485_v16 }
  0x47   : > { %530 = vst [vmem:[#allocation2 + $0x10] sm:$0xff] %v2485_v16  ;;  %531 = vst [vmem:[#allocation2 + $0x38] sm:$0xff] %v2485_v16 }
  0x48   : > { %532 = vst [vmem:[#allocation2 + $0x60] sm:$0xff] %v2485_v16  ;;  %533 = vst [vmem:[#allocation2 + $0x70] sm:$0xff] %v2485_v16 }
  0x49   : > { %534 = vst [vmem:[#allocation2 + $0x78] sm:$0xff] %v2485_v16  ;;  %535 = vst [vmem:[#allocation2 + $0x28] sm:$0xff] %v2485_v16 }
  0x4a PF: > { %v2336_v17 = vld [vmem:[%s2873_s4 + $0x8] sm:$0xff]   ;;  %v2337_v18 = vld [vmem:[%s2873_s4] sm:$0xff]   ;;  %vm671_vm0 = vcmask 261120   ;;  %v2340_v21 = vld [vmem:[%s2623_s27 + $0x10] sm:$0xff]   ;;  %p1960_p13 = scmp.ne.s32.totalorder %s2467_s11, 3 }
  0x4b   : > { %2176 = vmatprep.subr.bf16.mxu0 %v2336_v17  ;;  %v2338_v19 = vld [vmem:[%s2623_s27] sm:$0xff]   ;;  %v2339_v20 = vld [vmem:[%s2623_s27 + $0x8] sm:$0xff]   ;;  %v2341_v22 = vld [vmem:[%s2623_s27 + $0x18] sm:$0xff]  }
  0x4c   : > { %2177 = vmatpush3.bf16.msra.mxu0 %v2336_v17  ;;  %2180 = vmatprep.mubr.msk.bf16.mxu0 %vm671_vm0, %v2338_v19  ;;  %v2342_v23 = vld [vmem:[%s2623_s27 + $0x20] sm:$0xff]   ;;  %v2343_v24 = vld [vmem:[%s2623_s27 + $0x28] sm:$0xff]   ;;  %v2344_v25 = vld [vmem:[%s2623_s27 + $0x30] sm:$0xff]  }
  0x4d   : > { %2178 = vmatprep.subr.bf16.mxu0 %v2337_v18  ;;  %v2345_v26 = vld [vmem:[%s2623_s27 + $0x38] sm:$0xff]   ;;  %v2346_v27 = vld [vmem:[%s2623_s27 + $0x40] sm:$0xff]   ;;  %v2347_v28 = vld [vmem:[%s2623_s27 + $0x48] sm:$0xff]  }
  0x4e   : > { %v2348_v29 = vld [vmem:[%s2623_s27 + $0x50] sm:$0xff]   ;;  %v2349_v30 = vld [vmem:[%s2623_s27 + $0x58] sm:$0xff]   ;;  %v2350_v31 = vld [vmem:[%s2623_s27 + $0x60] sm:$0xff]  }
  0x4f   : > { %v2351_v32 = vld [vmem:[%s2623_s27 + $0x68] sm:$0xff]   ;;  %v2352_v33 = vld [vmem:[%s2623_s27 + $0x70] sm:$0xff]   ;;  %v2353_v34 = vld [vmem:[%s2623_s27 + $0x78] sm:$0xff]  }
  0x50   : > { %2179 = vmatpush3.bf16.msra.mxu0 %v2337_v18  ;;  %v2356_v35 = vld [vmem:[%s2640_s24 + $0x14] ss:$8 sps:$4 sm:$0xff]   ;;  %v2685_v37 = vld [vmem:[%s2874_s5] ss:$0 sm:$0xff]  ;;  %v2374_v47 = vld [vmem:[%s2640_s24 + $0x4] ss:$8 sps:$4 sm:$0xff]  }
  0x51   : > { %1049 = vmatprep.mubr.bf16.mxu1 %v2356_v35 }
  0x53   : > { %2181 = vmatmul.mubr.msk.bf16.vlgmr.msra.gmra.mxu0 %vm671_vm0, %v2339_v20 }
  0x54   : > { %2184 = vmatprep.mubr.msk.bf16.mxu0 %vm671_vm0, %v2340_v21 }
  0x5b   : > { %2185 = vmatmul.mubr.msk.bf16.gmra.mxu0 %vm671_vm0, %v2341_v22 }
  0x5c   : > { %2188 = vmatprep.mubr.msk.bf16.mxu0 %vm671_vm0, %v2342_v23 }
  0x63   : > { %2189 = vmatmul.mubr.msk.bf16.gmra.mxu0 %vm671_vm0, %v2343_v24 }
  0x64   : > { %2192 = vmatprep.mubr.msk.bf16.mxu0 %vm671_vm0, %v2344_v25 }
  0x6b   : > { %2193 = vmatmul.mubr.msk.bf16.gmra.mxu0 %vm671_vm0, %v2345_v26 }
  0x6c   : > { %2196 = vmatprep.mubr.msk.bf16.mxu0 %vm671_vm0, %v2346_v27 }
  0x73   : > { %2197 = vmatmul.mubr.msk.bf16.gmra.mxu0 %vm671_vm0, %v2347_v28 }
  0x74   : > { %2200 = vmatprep.mubr.msk.bf16.mxu0 %vm671_vm0, %v2348_v29 }
  0x7b   : > { %2201 = vmatmul.mubr.msk.bf16.gmra.mxu0 %vm671_vm0, %v2349_v30 }
  0x7c   : > { %2204 = vmatprep.mubr.msk.bf16.mxu0 %vm671_vm0, %v2350_v31 }
  0x83   : > { %2205 = vmatmul.mubr.msk.bf16.gmra.mxu0 %vm671_vm0, %v2351_v32 }
  0x84   : > { %2208 = vmatprep.mubr.msk.bf16.mxu0 %vm671_vm0, %v2352_v33 }
  0x8b   : > { %2209 = vmatmul.mubr.msk.bf16.gmra.mxu0 %vm671_vm0, %v2353_v34 }
  0x8c   : > { %1041 = vmatprep.mubr.bf16.mxu0 %v2374_v47 }
 0x113   : > { %v2182_v36 = vpop.f32.mrf.mxu0 }
 0x114   : > { %v763_v40 = vadd.f32 %v2182_v36, %v2685_v37 }
 0x115   : > { %v754_v38 = vpop.f32.mrf.mxu0 }
 0x116   : > { %v755_v43 = vadd.f32 %v2685_v37, %v754_v38 }
 0x117   : > { %v2183_v39 = vpop.f32.mrf.mxu0 }
 0x118   : > { %v766_v41 = vadd.f32 %v2183_v39, %v2685_v37 }
 0x119   : > { %v757_v42 = vpop.f32.mrf.mxu0 }
 0x11a   : > { %v2690_v44 = vpack.c.bf16 %v766_v41, %v763_v40  ;;  %v758_v45 = vadd.f32 %v2685_v37, %v757_v42 }
 0x11b   : > { %v2186_v46 = vpop.f32.mrf.mxu0 }
 0x11c   : > { %v2694_v48 = vpack.c.bf16 %v758_v45, %v755_v43  ;;  %v779_v51 = vadd.f32 %v2186_v46, %v2685_v37 }
 0x11d   : > { %v770_v49 = vpop.f32.mrf.mxu0 }
 0x11e   : > { %v771_v54 = vadd.f32 %v2685_v37, %v770_v49 }
 0x11f   : > { %v2187_v50 = vpop.f32.mrf.mxu0 }
 0x120   : > { %v782_v52 = vadd.f32 %v2187_v50, %v2685_v37 }
 0x121   : > { %v773_v53 = vpop.f32.mrf.mxu0 }
 0x122   : > { %v2699_v55 = vpack.c.bf16 %v782_v52, %v779_v51  ;;  %v774_v56 = vadd.f32 %v2685_v37, %v773_v53 }
 0x123   : > { %v2190_v57 = vpop.f32.mrf.mxu0 }
 0x124   : > { %v2702_v58 = vpack.c.bf16 %v774_v56, %v771_v54  ;;  %v795_v35 = vadd.f32 %v2190_v57, %v2685_v37  ;;  %v2354_v57 = vld [vmem:[%s2640_s24 + $0x10] ss:$8 sps:$4 sm:$0xff]  }
 0x125   : > { %v786_v59 = vpop.f32.mrf.mxu0 }
 0x126   : > { %v787_v42 = vadd.f32 %v2685_v37, %v786_v59  ;;  %v2372_v59 = vld [vmem:[%s2640_s24] ss:$8 sps:$4 sm:$0xff]  }
 0x127   : > { %v2191_v60 = vpop.f32.mrf.mxu0 }
 0x128   : > { %v798_v31 = vadd.f32 %v2191_v60, %v2685_v37  ;;  %v2362_v60 = vld [vmem:[%s2640_s24 + $0x30] ss:$8 sps:$4 sm:$0xff]  }
 0x129   : > { %v789_v61 = vpop.f32.mrf.mxu0 }
 0x12a   : > { %v918_v38 = vpack.c.bf16 %v798_v31, %v795_v35  ;;  %v790_v39 = vadd.f32 %v2685_v37, %v789_v61  ;;  %v2363_v61 = vld [vmem:[%s2640_s24 + $0x44] ss:$8 sps:$4 sm:$0xff]  }
 0x12b   : > { %v2194_v62 = vpop.f32.mrf.mxu0  ;;  %v887_v35 = vld [vmem:[#allocation2 + $0x8] sm:$0xff] }
 0x12c   : > { %v811_v20 = vadd.f32 %v2194_v62, %v2685_v37  ;;  %v917_v45 = vpack.c.bf16 %v790_v39, %v787_v42  ;;  %v2365_v62 = vld [vmem:[%s2640_s24 + $0x40] ss:$8 sps:$4 sm:$0xff]  }
 0x12d   : > { %v802_v63 = vpop.f32.mrf.mxu0 }
 0x12e   : > { %v803_v29 = vadd.f32 %v2685_v37, %v802_v63  ;;  %v2366_v63 = vld [vmem:[%s2640_s24 + $0x54] ss:$8 sps:$4 sm:$0xff]  }
 0x12f   : > { %v2195_v0 = vpop.f32.mrf.mxu0 }
 0x130   : > { %v814_v16 = vadd.f32 %v2195_v0, %v2685_v37  ;;  %v2369_v0 = vld [vmem:[%s2640_s24 + $0x64] ss:$8 sps:$4 sm:$0xff]  }
 0x131   : > { %v805_v1 = vpop.f32.mrf.mxu0 }
 0x132   : > { %v920_v25 = vpack.c.bf16 %v814_v16, %v811_v20  ;;  %v806_v26 = vadd.f32 %v2685_v37, %v805_v1  ;;  %v2371_v1 = vld [vmem:[%s2640_s24 + $0x60] ss:$8 sps:$4 sm:$0xff]   ;;  %v884_v16 = vld [vmem:[#allocation2 + $0x18] sm:$0xff] }
 0x133   : > { %v2704_v2 = vpop.f32.mrf.mxu0 }
 0x134   : > { %v919_v32 = vpack.c.bf16 %v806_v26, %v803_v29  ;;  %v827_v52 = vadd.f32 %v2704_v2, %v2685_v37  ;;  %v2375_v2 = vld [vmem:[%s2640_s24 + $0x74] ss:$8 sps:$4 sm:$0xff]  }
 0x135   : > { %v2706_v3 = vpop.f32.mrf.mxu0 }
 0x136   : > { %v819_v56 = vadd.f32 %v2685_v37, %v2706_v3  ;;  %v2377_v3 = vld [vmem:[%s2640_s24 + $0x70] ss:$8 sps:$4 sm:$0xff]  }
 0x137   : > { %v2199_v4 = vpop.f32.mrf.mxu0 }
 0x138   : > { %v830_v50 = vadd.f32 %v2199_v4, %v2685_v37 }
 0x139   : > { %v2708_v5 = vpop.f32.mrf.mxu0 }
 0x13a   : > { %v922_v53 = vpack.c.bf16 %v830_v50, %v827_v52  ;;  %v822_v54 = vadd.f32 %v2685_v37, %v2708_v5 }
 0x13b   : > { %v2202_v6 = vpop.f32.mrf.mxu0 }
 0x13c   : > { %v843_v43 = vadd.f32 %v2202_v6, %v2685_v37  ;;  %v883_v6 = vld [vmem:[#allocation2 + $0x58] sm:$0xff] }
 0x13d   : > { %v834_v7 = vpop.f32.mrf.mxu0 }
 0x13e   : > { %v835_v49 = vadd.f32 %v2685_v37, %v834_v7 }
 0x13f   : > { %v2203_v8 = vpop.f32.mrf.mxu0 }
 0x140   : > { %v846_v40 = vadd.f32 %v2203_v8, %v2685_v37  ;;  %v881_v8 = vld [vmem:[#allocation2 + $0x30] sm:$0xff] }
 0x141   : > { %v837_v9 = vpop.f32.mrf.mxu0 }
 0x142   : > { %v924_v46 = vpack.c.bf16 %v846_v40, %v843_v43  ;;  %v838_v47 = vadd.f32 %v2685_v37, %v837_v9 }
 0x143   : > { %v2206_v10 = vpop.f32.mrf.mxu0 }
 0x144   : > { %v859_v30 = vadd.f32 %v2206_v10, %v2685_v37  ;;  %v923_v51 = vpack.c.bf16 %v838_v47, %v835_v49  ;;  %v889_v47 = vld [vmem:[#allocation2 + $0x40] sm:$0xff] }
 0x145   : > { %v850_v11 = vpop.f32.mrf.mxu0 }
 0x146   : > { %v851_v36 = vadd.f32 %v2685_v37, %v850_v11 }
 0x147   : > { %v2207_v12 = vpop.f32.mrf.mxu0 }
 0x148   : > { %v862_v27 = vadd.f32 %v2207_v12, %v2685_v37 }
 0x149   : > { %v853_v13 = vpop.f32.mrf.mxu0 }
 0x14a   : > { %v926_v33 = vpack.c.bf16 %v862_v27, %v859_v30  ;;  %v854_v34 = vadd.f32 %v2685_v37, %v853_v13  ;;  %v886_v30 = vld [vmem:[#allocation2 + $0x68] sm:$0xff] }
 0x14b   : > { %v2210_v14 = vpop.f32.mrf.mxu0 }
 0x14c   : > { %v875_v18 = vadd.f32 %v2210_v14, %v2685_v37  ;;  %v925_v41 = vpack.c.bf16 %v854_v34, %v851_v36 }
 0x14d   : > { %v866_v15 = vpop.f32.mrf.mxu0 }
 0x14e   : > { %v867_v22 = vadd.f32 %v2685_v37, %v866_v15 }
 0x14f   : > { %v2211_v17 = vpop.f32.mrf.mxu0 }
 0x150   : > { %v878_v19 = vadd.f32 %v2211_v17, %v2685_v37 }
 0x151   : > { %v869_v21 = vpop.f32.mrf.mxu0 }
 0x152   : > { %v928_v23 = vpack.c.bf16 %v878_v19, %v875_v18  ;;  %v870_v24 = vadd.f32 %v2685_v37, %v869_v21  ;;  %v2357_v37 = vld [vmem:[%s2640_s24 + $0x24] ss:$8 sps:$4 sm:$0xff]  }
 0x153   : > { %v882_v18 = vld [vmem:[#allocation2] sm:$0xff] }
 0x154   : > { %v927_v28 = vpack.c.bf16 %v870_v24, %v867_v22  ;;  %2087 = vmatprep.subr.bf16.mxu0 %v928_v23  ;;  %2262 = vmatprep.subr.bf16.mxu1 %v928_v23 }
 0x155   : > { %2088 = vmatpush3.bf16.msra.mxu0 %v920_v25  ;;  %2270 = vmatpush3.bf16.msra.mxu1 %v920_v25  ;;  %v885_v25 = vld [vmem:[#allocation2 + $0x50] sm:$0xff] }
 0x156   : > { %2089 = vmatprep.subr.bf16.mxu0 %v927_v28  ;;  %2263 = vmatprep.subr.bf16.mxu1 %v927_v28 }
 0x159   : > { %2090 = vmatpush3.bf16.msra.mxu0 %v919_v32  ;;  %2271 = vmatpush3.bf16.msra.mxu1 %v919_v32 }
 0x15a   : > { %2091 = vmatprep.subr.bf16.mxu0 %v926_v33  ;;  %2264 = vmatprep.subr.bf16.mxu1 %v926_v33 }
 0x15d   : > { %2092 = vmatpush3.bf16.msra.mxu0 %v918_v38  ;;  %2272 = vmatpush3.bf16.msra.mxu1 %v918_v38 }
 0x15e   : > { %2093 = vmatprep.subr.bf16.mxu0 %v925_v41  ;;  %2265 = vmatprep.subr.bf16.mxu1 %v925_v41  ;;  %v888_v41 = vld [vmem:[#allocation2 + $0x48] sm:$0xff] }
 0x161   : > { %2094 = vmatpush3.bf16.msra.mxu0 %v917_v45  ;;  %2273 = vmatpush3.bf16.msra.mxu1 %v917_v45 }
 0x162   : > { %2095 = vmatprep.subr.bf16.mxu0 %v924_v46  ;;  %2266 = vmatprep.subr.bf16.mxu1 %v924_v46 }
 0x165   : > { %2096 = vmatpush3.bf16.msra.mxu0 %v2699_v55  ;;  %2274 = vmatpush3.bf16.msra.mxu1 %v2699_v55  ;;  %v921_v55 = vpack.c.bf16 %v822_v54, %v819_v56 }
 0x166   : > { %2097 = vmatprep.subr.bf16.mxu0 %v923_v51  ;;  %2267 = vmatprep.subr.bf16.mxu1 %v923_v51 }
 0x169   : > { %2098 = vmatpush3.bf16.msra.mxu0 %v2702_v58  ;;  %2275 = vmatpush3.bf16.msra.mxu1 %v2702_v58  ;;  %v2359_v58 = vld [vmem:[%s2640_s24 + $0x20] ss:$8 sps:$4 sm:$0xff]  }
 0x16a   : > { %2099 = vmatprep.subr.bf16.mxu0 %v922_v53  ;;  %2268 = vmatprep.subr.bf16.mxu1 %v922_v53  ;;  %v890_v53 = vld [vmem:[#allocation2 + $0x20] sm:$0xff] }
 0x16d   : > { %2100 = vmatpush3.bf16.msra.mxu0 %v2690_v44  ;;  %2276 = vmatpush3.bf16.msra.mxu1 %v2690_v44  ;;  %v2360_v44 = vld [vmem:[%s2640_s24 + $0x34] ss:$8 sps:$4 sm:$0xff]  }
 0x16e   : > { %2101 = vmatprep.subr.bf16.mxu0 %v921_v55  ;;  %2269 = vmatprep.subr.bf16.mxu1 %v921_v55 }
 0x171   : > { %2102 = vmatpush3.bf16.msra.mxu0 %v2694_v48  ;;  %2277 = vmatpush3.bf16.msra.mxu1 %v2694_v48  ;;  %v2368_v48 = vld [vmem:[%s2640_s24 + $0x50] ss:$8 sps:$4 sm:$0xff]  }
 0x174   : > { %1050 = vmatmul.mubr.bf16.vlgmr.msra.gmra.mxu1 %v2354_v57  ;;  %1042 = vmatmul.mubr.bf16.vlgmr.msra.gmra.mxu0 %v2372_v59  ;;  %v891_v59 = vld [vmem:[#allocation2 + $0x10] sm:$0xff] }
 0x175   : > { %1057 = vmatprep.mubr.bf16.mxu1 %v2357_v37 }
 0x17c   : > { %1058 = vmatmul.mubr.bf16.gmra.mxu1 %v2359_v58 }
 0x17d   : > { %1065 = vmatprep.mubr.bf16.mxu1 %v2360_v44 }
 0x184   : > { %1066 = vmatmul.mubr.bf16.gmra.mxu1 %v2362_v60 }
 0x185   : > { %1073 = vmatprep.mubr.bf16.mxu1 %v2363_v61  ;;  %v892_v61 = vld [vmem:[#allocation2 + $0x38] sm:$0xff] }
 0x18c   : > { %1074 = vmatmul.mubr.bf16.gmra.mxu1 %v2365_v62 }
 0x18d   : > { %1081 = vmatprep.mubr.bf16.mxu1 %v2366_v63 }
 0x194   : > { %1082 = vmatmul.mubr.bf16.gmra.mxu1 %v2368_v48 }
 0x195   : > { %1089 = vmatprep.mubr.bf16.mxu1 %v2369_v0 }
 0x19c   : > { %1090 = vmatmul.mubr.bf16.gmra.mxu1 %v2371_v1  ;;  %v893_v1 = vld [vmem:[#allocation2 + $0x60] sm:$0xff] }
 0x19d   : > { %1097 = vmatprep.mubr.bf16.mxu1 %v2375_v2 }
 0x1a4   : > { %1098 = vmatmul.mubr.bf16.gmra.mxu1 %v2377_v3 }
 0x234   : > { %v2109_v4 = vpop.f32.mrf.mxu1  ;;  %v2103_v5 = vpop.f32.mrf.mxu0 }
 0x236   : > { %v2110_v7 = vpop.f32.mrf.mxu1  ;;  %v2104_v9 = vpop.f32.mrf.mxu0 }
 0x237   : > { %v2111_v10 = vadd.f32 %v2110_v7, %v2109_v4  ;;  %v2105_v11 = vadd.f32 %v2104_v9, %v2103_v5 }
 0x238   : > { %v2112_v12 = vpop.f32.mrf.mxu1  ;;  %v2106_v13 = vpop.f32.mrf.mxu0 }
 0x239   : > { %v1108_v14 = vadd.f32 %v2111_v10, %v883_v6  ;;  %v1106_v15 = vadd.f32 %v2105_v11, %v881_v8  ;;  %v894_v6 = vld [vmem:[#allocation2 + $0x70] sm:$0xff]  ;;  %v895_v11 = vld [vmem:[#allocation2 + $0x78] sm:$0xff] }
 0x23a   : > { %v2113_v17 = vpop.f32.mrf.mxu1  ;;  %v2107_v19 = vpop.f32.mrf.mxu0 }
 0x23b   : > { %1124 = vst [vmem:[#allocation2 + $0x58] sm:$0xff] %v1108_v14  ;;  %v2114_v20 = vadd.f32 %v2113_v17, %v2112_v12  ;;  %1122 = vst [vmem:[#allocation2 + $0x30] sm:$0xff] %v1106_v15  ;;  %v2108_v21 = vadd.f32 %v2107_v19, %v2106_v13 }
 0x23c   : > { %v2115_v22 = vpop.f32.mrf.mxu1 }
 0x23d   : > { %v1109_v23 = vadd.f32 %v2114_v20, %v884_v16  ;;  %v1107_v24 = vadd.f32 %v2108_v21, %v882_v18  ;;  %v896_v16 = vld [vmem:[#allocation2 + $0x28] sm:$0xff] }
 0x23e   : > { %v2116_v26 = vpop.f32.mrf.mxu1 }
 0x23f   : > { %1125 = vst [vmem:[#allocation2 + $0x18] sm:$0xff] %v1109_v23  ;;  %v2117_v27 = vadd.f32 %v2116_v26, %v2115_v22  ;;  %1123 = vst [vmem:[#allocation2] sm:$0xff] %v1107_v24 }
 0x240   : > { %v2118_v28 = vpop.f32.mrf.mxu1 }
 0x241   : > { %v1110_v29 = vadd.f32 %v2117_v27, %v885_v25 }
 0x242   : > { %v2119_v31 = vpop.f32.mrf.mxu1 }
 0x243   : > { %1126 = vst [vmem:[#allocation2 + $0x50] sm:$0xff] %v1110_v29  ;;  %v2120_v32 = vadd.f32 %v2119_v31, %v2118_v28 }
 0x244   : > { %v2121_v33 = vpop.f32.mrf.mxu1 }
 0x245   : > { %v1111_v34 = vadd.f32 %v2120_v32, %v886_v30 }
 0x246   : > { %v2122_v36 = vpop.f32.mrf.mxu1 }
 0x247   : > { %1127 = vst [vmem:[#allocation2 + $0x68] sm:$0xff] %v1111_v34  ;;  %v2123_v38 = vadd.f32 %v2122_v36, %v2121_v33 }
 0x248   : > { %v2124_v39 = vpop.f32.mrf.mxu1 }
 0x249   : > { %v1112_v40 = vadd.f32 %v2123_v38, %v887_v35 }
 0x24a   : > { %v2125_v42 = vpop.f32.mrf.mxu1 }
 0x24b   : > { %1128 = vst [vmem:[#allocation2 + $0x8] sm:$0xff] %v1112_v40  ;;  %v2126_v43 = vadd.f32 %v2125_v42, %v2124_v39 }
 0x24c   : > { %v2127_v45 = vpop.f32.mrf.mxu1 }
 0x24d   : > { %v1113_v46 = vadd.f32 %v2126_v43, %v888_v41 }
 0x24e   : > { %v2128_v49 = vpop.f32.mrf.mxu1 }
 0x24f   : > { %1129 = vst [vmem:[#allocation2 + $0x48] sm:$0xff] %v1113_v46  ;;  %v2129_v50 = vadd.f32 %v2128_v49, %v2127_v45 }
 0x250   : > { %v2130_v51 = vpop.f32.mrf.mxu1 }
 0x251   : > { %v1114_v52 = vadd.f32 %v2129_v50, %v889_v47 }
 0x252   : > { %v2131_v54 = vpop.f32.mrf.mxu1 }
 0x253   : > { %1130 = vst [vmem:[#allocation2 + $0x40] sm:$0xff] %v1114_v52  ;;  %v2132_v56 = vadd.f32 %v2131_v54, %v2130_v51 }
 0x254   : > { %v2133_v55 = vpop.f32.mrf.mxu1 }
 0x255   : > { %v1115_v57 = vadd.f32 %v2132_v56, %v890_v53 }
 0x256   : > { %v2134_v37 = vpop.f32.mrf.mxu1 }
 0x257   : > { %1131 = vst [vmem:[#allocation2 + $0x20] sm:$0xff] %v1115_v57  ;;  %v2135_v58 = vadd.f32 %v2134_v37, %v2133_v55 }
 0x258   : > { %v2136_v44 = vpop.f32.mrf.mxu1 }
 0x259   : > { %v1116_v60 = vadd.f32 %v2135_v58, %v891_v59 }
 0x25a   : > { %v2137_v62 = vpop.f32.mrf.mxu1 }
 0x25b   : > { %1132 = vst [vmem:[#allocation2 + $0x10] sm:$0xff] %v1116_v60  ;;  %v2138_v63 = vadd.f32 %v2137_v62, %v2136_v44 }
 0x25c   : > { %v2139_v48 = vpop.f32.mrf.mxu1 }
 0x25d   : > { %v1117_v0 = vadd.f32 %v2138_v63, %v892_v61 }
 0x25e   : > { %v2140_v2 = vpop.f32.mrf.mxu1 }
 0x25f   : > { %1133 = vst [vmem:[#allocation2 + $0x38] sm:$0xff] %v1117_v0  ;;  %v2141_v3 = vadd.f32 %v2140_v2, %v2139_v48 }
 0x260   : > { %v2142_v4 = vpop.f32.mrf.mxu1 }
 0x261   : > { %v1118_v5 = vadd.f32 %v2141_v3, %v893_v1 }
 0x262   : > { %v2143_v7 = vpop.f32.mrf.mxu1 }
 0x263   : > { %1134 = vst [vmem:[#allocation2 + $0x60] sm:$0xff] %v1118_v5  ;;  %v2144_v8 = vadd.f32 %v2143_v7, %v2142_v4 }
 0x264   : > { %v2145_v9 = vpop.f32.mrf.mxu1 }
 0x265   : > { %v1119_v10 = vadd.f32 %v2144_v8, %v894_v6 }
 0x266   : > { %v2146_v12 = vpop.f32.mrf.mxu1 }
 0x267   : > { %1135 = vst [vmem:[#allocation2 + $0x70] sm:$0xff] %v1119_v10  ;;  %v2147_v13 = vadd.f32 %v2146_v12, %v2145_v9 }
 0x268   : > { %v2148_v14 = vpop.f32.mrf.mxu1 }
 0x269   : > { %v1120_v15 = vadd.f32 %v2147_v13, %v895_v11 }
 0x26a   : > { %v2149_v17 = vpop.f32.mrf.mxu1 }
 0x26b   : > { %1136 = vst [vmem:[#allocation2 + $0x78] sm:$0xff] %v1120_v15  ;;  %v2150_v18 = vadd.f32 %v2149_v17, %v2148_v14  ;;  %1141 = sbr.rel (%p1960_p13) target bundleno = 1007 (0x3ef), region = 102 }
 0x26d   : > { %v1121_v19 = vadd.f32 %v2150_v18, %v896_v16 }
 0x26f   : > { %1137 = vst [vmem:[#allocation2 + $0x28] sm:$0xff] %v1121_v19 }
 0x270   : > { %v1144_v20 = vld [vmem:[%s2633_s12 + $0x10] sm:$0xff]  ;;  %v1142_v21 = vld [vmem:[%s2633_s12] sm:$0xff]  ;;  %v1145_v22 = vld [vmem:[%s2633_s12 + $0x18] sm:$0xff]  ;;  %v2486_v23 = vmov 0   ;;  %vm1535_vm1 = vcmask 130048  }
 0x271   : > { %2379 = vset.pattern.permute.xlu1 %v2486_v23  ;;  %2378 = vset.pattern.permute.xlu0 %v2486_v23  ;;  %v1160_v24 = vmax.f32 %v1144_v20, 1.0  ;;  %v1158_v25 = vmax.f32 %v1142_v21, 1.0  ;;  %v1161_v26 = vmax.f32 %v1145_v22, 1.0  ;;  %v1143_v27 = vld [vmem:[%s2633_s12 + $0x8] sm:$0xff]  ;;  %v1146_v30 = vld [vmem:[%s2633_s12 + $0x20] sm:$0xff]  ;;  %v1149_v32 = vld [vmem:[%s2633_s12 + $0x38] sm:$0xff] }
 0x272   : > { %v1159_v28 = vmax.f32 %v1143_v27, 1.0  ;;  %v1147_v29 = vld [vmem:[%s2633_s12 + $0x28] sm:$0xff]  ;;  %v1148_v33 = vld [vmem:[%s2633_s12 + $0x30] sm:$0xff]  ;;  %v1162_v34 = vmax.f32 %v1146_v30, 1.0  ;;  %v2380_v35 = vld [vmem:[%s2876_s7 + $0x38] sm:$0xff]   ;;  %v1165_v38 = vmax.f32 %v1149_v32, 1.0 }
 0x273   : > { %2397 = vrcp.f32 %v1160_v24  ;;  %v1163_v31 = vmax.f32 %v1147_v29, 1.0  ;;  %v2381_v36 = vld [vmem:[%s2876_s7 + $0x30] sm:$0xff]   ;;  %2212 = vmatprep.subr.bf16.mxu0 %v2380_v35  ;;  %v1151_v39 = vld [vmem:[%s2633_s12 + $0x48] sm:$0xff]  ;;  %v1164_v40 = vmax.f32 %v1148_v33, 1.0  ;;  %v1150_v42 = vld [vmem:[%s2633_s12 + $0x40] sm:$0xff] }
 0x274   : > { %2399 = vrcp.f32 %v1158_v25  ;;  %2213 = vmatpush3.bf16.msra.mxu0 %v2380_v35  ;;  %v2382_v41 = vld [vmem:[%s2876_s7 + $0x28] sm:$0xff]   ;;  %v1153_v43 = vld [vmem:[%s2633_s12 + $0x58] sm:$0xff]  ;;  %v2386_v45 = vld [vmem:[%s2875_s6] sm:$0xff]   ;;  %v1167_v46 = vmax.f32 %v1151_v39, 1.0  ;;  %v1166_v49 = vmax.f32 %v1150_v42, 1.0 }
 0x275   : > { %2401 = vrcp.f32 %v1161_v26  ;;  %2214 = vmatprep.subr.bf16.mxu0 %v2381_v36  ;;  %v1152_v47 = vld [vmem:[%s2633_s12 + $0x50] sm:$0xff]  ;;  %v2383_v50 = vld [vmem:[%s2876_s7 + $0x20] sm:$0xff]   ;;  %2244 = vmatprep.subr.bf16.mxu1 %v2386_v45  ;;  %v2389_v53 = vld [vmem:[%s2628_s0 + $0x8] sm:$0xff]   ;;  %v1169_v56 = vmax.f32 %v1153_v43, 1.0 }
 0x276   : > { %2403 = vrcp.f32 %v1159_v28  ;;  %2245 = vmatpush3.bf16.msra.mxu1 %v2386_v45  ;;  %v2388_v51 = vld [vmem:[%s2628_s0] sm:$0xff]   ;;  %v1168_v55 = vmax.f32 %v1152_v47, 1.0  ;;  %v1155_v57 = vld [vmem:[%s2633_s12 + $0x68] sm:$0xff]  ;;  %v2384_v59 = vld [vmem:[%s2876_s7 + $0x18] sm:$0xff]  }
 0x277   : > { %2405 = vrcp.f32 %v1163_v31  ;;  %v1154_v44 = vld [vmem:[%s2633_s12 + $0x60] sm:$0xff]  ;;  %2246 = vmatprep.mubr.msk.bf16.mxu1 %vm1535_vm1, %v2388_v51  ;;  %v1157_v60 = vld [vmem:[%s2633_s12 + $0x78] sm:$0xff]  ;;  %v1171_v61 = vmax.f32 %v1155_v57, 1.0  ;;  %v2385_v62 = vld [vmem:[%s2876_s7 + $0x10] sm:$0xff]  }
 0x278   : > { %2407 = vrcp.f32 %v1162_v34  ;;  %2215 = vmatpush3.bf16.msra.mxu0 %v2381_v36  ;;  %v1170_v48 = vmax.f32 %v1154_v44, 1.0  ;;  %v2391_v0 = vld [vmem:[%s2628_s0 + $0x10] sm:$0xff]   ;;  %v2392_v3 = vld [vmem:[%s2628_s0 + $0x18] sm:$0xff]   ;;  %v1173_v4 = vmax.f32 %v1157_v60, 1.0  ;;  %v2387_v7 = vld [vmem:[%s2876_s7 + $0x8] sm:$0xff]  }
 0x279   : > { %2409 = vrcp.f32 %v1165_v38  ;;  %2216 = vmatprep.subr.bf16.mxu0 %v2382_v41  ;;  %2247 = vmatmul.mubr.msk.bf16.vlgmr.msra.gmra.mxu1 %vm1535_vm1, %v2389_v53  ;;  %v1156_v2 = vld [vmem:[%s2633_s12 + $0x70] sm:$0xff]  ;;  %v2390_v10 = vld [vmem:[%s2876_s7] sm:$0xff]   ;;  %v2394_v13 = vld [vmem:[%s2628_s0 + $0x28] sm:$0xff]  }
 0x27a   : > { %2411 = vrcp.f32 %v1164_v40  ;;  %2250 = vmatprep.mubr.msk.bf16.mxu1 %vm1535_vm1, %v2391_v0  ;;  %v1172_v6 = vmax.f32 %v1156_v2, 1.0  ;;  %v2393_v11 = vld [vmem:[%s2628_s0 + $0x20] sm:$0xff]   ;;  %v2395_v17 = vld [vmem:[%s2628_s0 + $0x30] sm:$0xff]   ;;  %v2396_v19 = vld [vmem:[%s2628_s0 + $0x38] sm:$0xff]  }
 0x27b   : > { %2413 = vrcp.f32 %v1167_v46  ;;  %v1192_v24 = vld [vmem:[#allocation2 + $0x58] sm:$0xff]  ;;  %v1190_v26 = vld [vmem:[#allocation2 + $0x30] sm:$0xff]  ;;  %v1191_v27 = vld [vmem:[#allocation2] sm:$0xff] }
 0x27c   : > { %2217 = vmatpush3.bf16.msra.mxu0 %v2382_v41  ;;  %2415 = vrcp.f32 %v1166_v49  ;;  %v1193_v25 = vld [vmem:[#allocation2 + $0x18] sm:$0xff]  ;;  %v1195_v34 = vld [vmem:[#allocation2 + $0x68] sm:$0xff]  ;;  %v1194_v36 = vld [vmem:[#allocation2 + $0x50] sm:$0xff] }
 0x27d   : > { %2218 = vmatprep.subr.bf16.mxu0 %v2383_v50  ;;  %2417 = vrcp.f32 %v1169_v56  ;;  %v1197_v43 = vld [vmem:[#allocation2 + $0x48] sm:$0xff]  ;;  %v1198_v53 = vld [vmem:[#allocation2 + $0x40] sm:$0xff] }
 0x27e   : > { %2419 = vrcp.f32 %v1168_v55  ;;  %v1196_v45 = vld [vmem:[#allocation2 + $0x8] sm:$0xff]  ;;  %v1202_v0 = vld [vmem:[#allocation2 + $0x60] sm:$0xff] }
 0x27f   : > { %2421 = vrcp.f32 %v1171_v61 }
 0x280   : > { %v2398_v52 = vpop.eup %2397  ;;  %2219 = vmatpush3.bf16.msra.mxu0 %v2383_v50  ;;  %2423 = vrcp.f32 %v1170_v48  ;;  %v1203_v48 = vld [vmem:[#allocation2 + $0x70] sm:$0xff] }
 0x281   : > { %v2400_v54 = vpop.eup %2399  ;;  %1218 = vperm.xlu1 %2379, %v2398_v52   ;;  %2220 = vmatprep.subr.bf16.mxu0 %v2384_v59  ;;  %2425 = vrcp.f32 %v1173_v4  ;;  %v1199_v52 = vld [vmem:[#allocation2 + $0x20] sm:$0xff] }
 0x282   : > { %v2402_v37 = vpop.eup %2401  ;;  %1208 = vperm.xlu0 %2378, %v2400_v54   ;;  %2251 = vmatmul.mubr.msk.bf16.gmra.mxu1 %vm1535_vm1, %v2392_v3  ;;  %2427 = vrcp.f32 %v1172_v6  ;;  %v1205_v6 = vld [vmem:[#allocation2 + $0x28] sm:$0xff] }
 0x283   : > { %v2404_v58 = vpop.eup %2403  ;;  %2254 = vmatprep.mubr.msk.bf16.mxu1 %vm1535_vm1, %v2393_v11 }
 0x284   : > { %v2406_v63 = vpop.eup %2405  ;;  %2221 = vmatpush3.bf16.msra.mxu0 %v2384_v59 }
 0x285   : > { %1223 = vperm.xlu1 %2379, %v2402_v37   ;;  %v2408_v1 = vpop.eup %2407  ;;  %2222 = vmatprep.subr.bf16.mxu0 %v2385_v62  ;;  %v1201_v37 = vld [vmem:[#allocation2 + $0x38] sm:$0xff] }
 0x286   : > { %1213 = vperm.xlu0 %2378, %v2404_v58   ;;  %v2410_v5 = vpop.eup %2409  ;;  %v1200_v58 = vld [vmem:[#allocation2 + $0x10] sm:$0xff] }
 0x287   : > { %v2412_v8 = vpop.eup %2411 }
 0x288   : > { %2223 = vmatpush3.bf16.msra.mxu0 %v2385_v62  ;;  %v2414_v9 = vpop.eup %2413 }
 0x289   : > { %1233 = vperm.xlu1 %2379, %v2406_v63   ;;  %2224 = vmatprep.subr.bf16.mxu0 %v2387_v7  ;;  %v2416_v12 = vpop.eup %2415 }
 0x28a   : > { %1228 = vperm.xlu0 %2378, %v2408_v1   ;;  %v2418_v14 = vpop.eup %2417  ;;  %2255 = vmatmul.mubr.msk.bf16.gmra.mxu1 %vm1535_vm1, %v2394_v13 }
 0x28b   : > { %v2420_v15 = vpop.eup %2419  ;;  %2258 = vmatprep.mubr.msk.bf16.mxu1 %vm1535_vm1, %v2395_v17 }
 0x28c   : > { %2225 = vmatpush3.bf16.msra.mxu0 %v2387_v7  ;;  %v2422_v16 = vpop.eup %2421  ;;  %v1204_v7 = vld [vmem:[#allocation2 + $0x78] sm:$0xff] }
 0x28d   : > { %1243 = vperm.xlu1 %2379, %v2410_v5   ;;  %2226 = vmatprep.subr.bf16.mxu0 %v2390_v10  ;;  %v2424_v18 = vpop.eup %2423 }
 0x28e   : > { %1238 = vperm.xlu0 %2378, %v2412_v8   ;;  %v2426_v20 = vpop.eup %2425 }
 0x28f   : > { %v2428_v21 = vpop.eup %2427 }
 0x290   : > { %2227 = vmatpush3.bf16.msra.mxu0 %v2390_v10 }
 0x291   : > { %1253 = vperm.xlu1 %2379, %v2414_v9  }
 0x292   : > { %1248 = vperm.xlu0 %2378, %v2416_v12   ;;  %2259 = vmatmul.mubr.msk.bf16.gmra.mxu1 %vm1535_vm1, %v2396_v19 }
 0x295   : > { %1263 = vperm.xlu1 %2379, %v2418_v14  }
 0x296   : > { %1258 = vperm.xlu0 %2378, %v2420_v15  }
 0x299   : > { %1273 = vperm.xlu1 %2379, %v2422_v16  }
 0x29a   : > { %1268 = vperm.xlu0 %2378, %v2424_v18  }
 0x29d   : > { %1283 = vperm.xlu1 %2379, %v2426_v20  }
 0x29e   : > { %1278 = vperm.xlu0 %2378, %v2428_v21  }
 0x2fc   : > { %v1219_v22 = vpop.permute.xlu1 %1218 }
 0x2fd   : > { %v1209_v23 = vpop.permute.xlu0 %1208  ;;  %v1288_v29 = vmul.f32 %v1219_v22, %v1192_v24  ;;  %v2822_v24 = vld [vmem:[%s2877_s8] ss:$0 sm:$0xff] }
 0x2fe   : > { %v1286_v32 = vmul.f32 %v1209_v23, %v1190_v26 }
 0x300   : > { %v1224_v28 = vpop.permute.xlu1 %1223 }
 0x301   : > { %v1289_v30 = vmul.f32 %v1224_v28, %v1193_v25  ;;  %v1214_v31 = vpop.permute.xlu0 %1213 }
 0x302   : > { %v1287_v33 = vmul.f32 %v1214_v31, %v1191_v27 }
 0x303   : > { %v1303_v35 = vpack.c.bf16 %v1289_v30, %v1288_v29 }
 0x304   : > { %v1234_v38 = vpop.permute.xlu1 %1233  ;;  %v1302_v39 = vpack.c.bf16 %v1287_v33, %v1286_v32 }
 0x305   : > { %v1291_v40 = vmul.f32 %v1234_v38, %v1195_v34  ;;  %v1229_v41 = vpop.permute.xlu0 %1228 }
 0x306   : > { %v1290_v42 = vmul.f32 %v1229_v41, %v1194_v36  ;;  %2228 = vmatprep.mubr.bf16.mxu0 %v1302_v39 }
 0x307   : > { %2229 = vmatmul.mubr.bf16.vlgmr.msra.gmra.mxu0 %v1303_v35 }
 0x308   : > { %v1304_v46 = vpack.c.bf16 %v1291_v40, %v1290_v42  ;;  %v1244_v47 = vpop.permute.xlu1 %1243 }
 0x309   : > { %v1293_v49 = vmul.f32 %v1244_v47, %v1197_v43  ;;  %v1239_v50 = vpop.permute.xlu0 %1238 }
 0x30a   : > { %v1292_v51 = vmul.f32 %v1239_v50, %v1196_v45  ;;  %2232 = vmatprep.mubr.bf16.mxu0 %v1304_v46 }
 0x30c   : > { %v1305_v54 = vpack.c.bf16 %v1293_v49, %v1292_v51  ;;  %v1254_v56 = vpop.permute.xlu1 %1253 }
 0x30d   : > { %v1295_v55 = vmul.f32 %v1254_v56, %v1199_v52  ;;  %v1249_v57 = vpop.permute.xlu0 %1248 }
 0x30e   : > { %v1294_v59 = vmul.f32 %v1249_v57, %v1198_v53 }
 0x30f   : > { %2233 = vmatmul.mubr.bf16.gmra.mxu0 %v1305_v54 }
 0x310   : > { %v1306_v44 = vpack.c.bf16 %v1295_v55, %v1294_v59  ;;  %v1264_v60 = vpop.permute.xlu1 %1263 }
 0x311   : > { %v1297_v61 = vmul.f32 %v1264_v60, %v1201_v37  ;;  %v1259_v62 = vpop.permute.xlu0 %1258 }
 0x312   : > { %v1296_v63 = vmul.f32 %v1259_v62, %v1200_v58  ;;  %2236 = vmatprep.mubr.bf16.mxu0 %v1306_v44 }
 0x314   : > { %v1307_v1 = vpack.c.bf16 %v1297_v61, %v1296_v63  ;;  %v1274_v2 = vpop.permute.xlu1 %1273 }
 0x315   : > { %v1299_v3 = vmul.f32 %v1274_v2, %v1203_v48  ;;  %v1269_v4 = vpop.permute.xlu0 %1268 }
 0x316   : > { %v1298_v5 = vmul.f32 %v1269_v4, %v1202_v0 }
 0x317   : > { %2237 = vmatmul.mubr.bf16.gmra.mxu0 %v1307_v1 }
 0x318   : > { %v1308_v8 = vpack.c.bf16 %v1299_v3, %v1298_v5  ;;  %v1284_v9 = vpop.permute.xlu1 %1283 }
 0x319   : > { %v1301_v10 = vmul.f32 %v1284_v9, %v1205_v6  ;;  %v1279_v11 = vpop.permute.xlu0 %1278 }
 0x31a   : > { %v1300_v12 = vmul.f32 %v1279_v11, %v1204_v7  ;;  %2240 = vmatprep.mubr.bf16.mxu0 %v1308_v8 }
 0x31c   : > { %v1309_v13 = vpack.c.bf16 %v1301_v10, %v1300_v12 }
 0x31f   : > { %2241 = vmatmul.mubr.bf16.gmra.mxu0 %v1309_v13 }
 0x339   : > { %v2248_v14 = vpop.f32.mrf.mxu1 }
 0x33b   : > { %v1594_v15 = vpop.f32.mrf.mxu1 }
 0x33d   : > { %v2249_v16 = vpop.f32.mrf.mxu1 }
 0x33f   : > { %v1597_v17 = vpop.f32.mrf.mxu1 }
 0x342   : > { %v2252_v18 = vpop.f32.mrf.mxu1 }
 0x344   : > { %v1610_v19 = vpop.f32.mrf.mxu1 }
 0x346   : > { %v2253_v20 = vpop.f32.mrf.mxu1 }
 0x348   : > { %v1613_v21 = vpop.f32.mrf.mxu1 }
 0x34a   : > { %v2256_v26 = vpop.f32.mrf.mxu1 }
 0x34c   : > { %v1626_v32 = vpop.f32.mrf.mxu1 }
 0x34e   : > { %v2257_v43 = vpop.f32.mrf.mxu1 }
 0x350   : > { %v1629_v56 = vpop.f32.mrf.mxu1 }
 0x352   : > { %v2260_v63 = vpop.f32.mrf.mxu1 }
 0x354   : > { %v1642_v7 = vpop.f32.mrf.mxu1 }
 0x3c7   : > { %v2230_v22 = vpop.f32.mrf.mxu0 }
 0x3c8   : > { %v1603_v23 = vadd.f32 %v2248_v14, %v2230_v22 }
 0x3c9   : > { %v1426_v25 = vpop.f32.mrf.mxu0 }
 0x3ca   : > { %v1595_v27 = vadd.f32 %v1594_v15, %v1426_v25  ;;  %v1666_v29 = vadd.f32 %v2822_v24, %v1603_v23 }
 0x3cb   : > { %v2231_v28 = vpop.f32.mrf.mxu0 }
 0x3cc   : > { %v1606_v30 = vadd.f32 %v2249_v16, %v2231_v28  ;;  %v1664_v33 = vadd.f32 %v2822_v24, %v1595_v27  ;;  %v1682_v38 = vmax.f32 %v1666_v29, 0.0 }
 0x3cd   : > { %v1429_v31 = vpop.f32.mrf.mxu0 }
 0x3ce   : > { %v1667_v34 = vadd.f32 %v2822_v24, %v1606_v30  ;;  %v1598_v35 = vadd.f32 %v1597_v17, %v1429_v31  ;;  %v1680_v45 = vmax.f32 %v1664_v33, 0.0  ;;  %v2261_v17 = vpop.f32.mrf.mxu1 }
 0x3cf   : > { %v2234_v36 = vpop.f32.mrf.mxu0 }
 0x3d0   : > { %v1683_v39 = vmax.f32 %v1667_v34, 0.0  ;;  %v1665_v40 = vadd.f32 %v2822_v24, %v1598_v35  ;;  %v1619_v41 = vadd.f32 %v2252_v18, %v2234_v36  ;;  %v1645_v28 = vpop.f32.mrf.mxu1 }
 0x3d1   : > { %v1442_v42 = vpop.f32.mrf.mxu0 }
 0x3d2   : > { %v2030_v46 = vpack.c.bf16 %v1683_v39, %v1682_v38  ;;  %v1681_v47 = vmax.f32 %v1665_v40, 0.0  ;;  %v1611_v49 = vadd.f32 %v1610_v19, %v1442_v42  ;;  %v1670_v52 = vadd.f32 %v2822_v24, %v1619_v41 }
 0x3d3   : > { %v2235_v50 = vpop.f32.mrf.mxu0 }
 0x3d4   : > { %2062 = vst [vmem:[%s2638_s14 + $0x8] sm:$0xff] %v2030_v46   ;;  %v2025_v51 = vpack.c.bf16 %v1681_v47, %v1680_v45  ;;  %v1622_v53 = vadd.f32 %v2253_v20, %v2235_v50  ;;  %v1668_v55 = vadd.f32 %v2822_v24, %v1611_v49  ;;  %v1686_v58 = vmax.f32 %v1670_v52, 0.0 }
 0x3d5   : > { %v1445_v54 = vpop.f32.mrf.mxu0 }
 0x3d6   : > { %2026 = vst [vmem:[%s2638_s14] sm:$0xff] %v2025_v51   ;;  %v1671_v57 = vadd.f32 %v2822_v24, %v1622_v53  ;;  %v1614_v59 = vadd.f32 %v1613_v21, %v1445_v54  ;;  %v1684_v48 = vmax.f32 %v1668_v55, 0.0 }
 0x3d7   : > { %v2238_v37 = vpop.f32.mrf.mxu0 }
 0x3d8   : > { %v1687_v44 = vmax.f32 %v1671_v57, 0.0  ;;  %v1669_v60 = vadd.f32 %v2822_v24, %v1614_v59  ;;  %v1635_v61 = vadd.f32 %v2256_v26, %v2238_v37 }
 0x3d9   : > { %v1458_v62 = vpop.f32.mrf.mxu0 }
 0x3da   : > { %v2040_v0 = vpack.c.bf16 %v1687_v44, %v1686_v58  ;;  %v1685_v1 = vmax.f32 %v1669_v60, 0.0  ;;  %v1627_v2 = vadd.f32 %v1626_v32, %v1458_v62  ;;  %v1674_v5 = vadd.f32 %v2822_v24, %v1635_v61 }
 0x3db   : > { %v2239_v3 = vpop.f32.mrf.mxu0 }
 0x3dc   : > { %2064 = vst [vmem:[%s2638_s14 + $0x18] sm:$0xff] %v2040_v0   ;;  %v2035_v4 = vpack.c.bf16 %v1685_v1, %v1684_v48  ;;  %v1638_v6 = vadd.f32 %v2257_v43, %v2239_v3  ;;  %v1672_v9 = vadd.f32 %v2822_v24, %v1627_v2  ;;  %v1690_v13 = vmax.f32 %v1674_v5, 0.0 }
 0x3dd   : > { %v1461_v8 = vpop.f32.mrf.mxu0 }
 0x3de   : > { %2063 = vst [vmem:[%s2638_s14 + $0x10] sm:$0xff] %v2035_v4   ;;  %v1675_v10 = vadd.f32 %v2822_v24, %v1638_v6  ;;  %v1630_v11 = vadd.f32 %v1629_v56, %v1461_v8  ;;  %v1688_v19 = vmax.f32 %v1672_v9, 0.0 }
 0x3df   : > { %v2242_v12 = vpop.f32.mrf.mxu0 }
 0x3e0   : > { %v1691_v14 = vmax.f32 %v1675_v10, 0.0  ;;  %v1673_v15 = vadd.f32 %v2822_v24, %v1630_v11  ;;  %v1651_v16 = vadd.f32 %v2260_v63, %v2242_v12 }
 0x3e1   : > { %v1474_v18 = vpop.f32.mrf.mxu0 }
 0x3e2   : > { %v2050_v20 = vpack.c.bf16 %v1691_v14, %v1690_v13  ;;  %v1689_v21 = vmax.f32 %v1673_v15, 0.0  ;;  %v1643_v22 = vadd.f32 %v1642_v7, %v1474_v18  ;;  %v1678_v26 = vadd.f32 %v2822_v24, %v1651_v16 }
 0x3e3   : > { %v2243_v23 = vpop.f32.mrf.mxu0 }
 0x3e4   : > { %2066 = vst [vmem:[%s2638_s14 + $0x28] sm:$0xff] %v2050_v20   ;;  %v2045_v25 = vpack.c.bf16 %v1689_v21, %v1688_v19  ;;  %v1654_v27 = vadd.f32 %v2261_v17, %v2243_v23  ;;  %v1676_v30 = vadd.f32 %v2822_v24, %v1643_v22  ;;  %v1694_v33 = vmax.f32 %v1678_v26, 0.0 }
 0x3e5   : > { %v1477_v29 = vpop.f32.mrf.mxu0 }
 0x3e6   : > { %2065 = vst [vmem:[%s2638_s14 + $0x20] sm:$0xff] %v2045_v25   ;;  %v1679_v31 = vadd.f32 %v2822_v24, %v1654_v27  ;;  %v1646_v32 = vadd.f32 %v1645_v28, %v1477_v29  ;;  %v1692_v36 = vmax.f32 %v1676_v30, 0.0 }
 0x3e8   : > { %v1695_v34 = vmax.f32 %v1679_v31, 0.0  ;;  %v1677_v35 = vadd.f32 %v2822_v24, %v1646_v32 }
 0x3ea   : > { %v2060_v38 = vpack.c.bf16 %v1695_v34, %v1694_v33  ;;  %v1693_v39 = vmax.f32 %v1677_v35, 0.0 }
 0x3ec   : > { %2068 = vst [vmem:[%s2638_s14 + $0x38] sm:$0xff] %v2060_v38   ;;  %v2055_v40 = vpack.c.bf16 %v1693_v39, %v1692_v36 }
 0x3ee   : > { %2067 = vst [vmem:[%s2638_s14 + $0x30] sm:$0xff] %v2055_v40  }
 0x3ef PF: > { %s19_s15 = sadd.s32 1, %s2483_s15   ;;  %s2887_s12 = sld [smem:[#allocation4_spill]] }
 0x3f0   : > { %p16_p0 = scmp.ge.s32.totalorder %s19_s15, 10   ;;  %s2888_s18 = sld [smem:[#allocation5_spill]] }
 0x3f1   : > { %s2889_s14 = sld [smem:[#allocation6_spill]]  ;;  %s2890_s30 = smov %s2463_s10 }
 0x3f2   : > { %s2891_s10 = smov %s2588_s22  ;;  %s2892_s11 = smov %s2475_s13 }
 0x3f3   :  { %18 = sbr.rel (!%p16_p0) target bundleno = 6 (0x6), region = 146 }
 0x3f6   : > { %s2893_s13 = smov %s2888_s18 }

// kernel: _lambda_.4
= control target key start
LH: loop header
LB: loop body
LE: loop exit
PB: predicated region body
PF: predicated region fallthrough
CT: control target
= control target key end

     0   :  { %s3174_s0 = inlined_call_operand.vmem [shape: bf16[256,1024], index: 0, kind: input, shape index: {}]   ;;  %s3175_s1 = inlined_call_operand.vmem [shape: bf16[1024,144], index: 1, kind: input, shape index: {}]   ;;  %s3176_s2 = inlined_call_operand.vmem [shape: bf16[256,128], index: 2, kind: input, shape index: {}]   ;;  %s3177_s3 = inlined_call_operand.vmem [shape: f32[256,1], index: 3, kind: input, shape index: {}]   ;;  %s3178_s4 = inlined_call_operand.vmem [shape: bf16[144,32], index: 4, kind: input, shape index: {}]   ;;  %s3179_s5 = inlined_call_operand.vmem [shape: f32[1,32], index: 5, kind: input, shape index: {}]   ;;  %s3180_s6 = inlined_call_operand.vmem [shape: bf16[128,32], index: 6, kind: input, shape index: {}]   ;;  %s3181_s7 = inlined_call_operand.vmem [shape: bf16[32,32], index: 7, kind: input, shape index: {}]   ;;  %s3182_s8 = inlined_call_operand.vmem [shape: f32[1,32], index: 8, kind: input, shape index: {}]   ;;  %s3183_s9 = inlined_call_operand.vmem [shape: bf16[256,32], index: 9, kind: output, shape index: {}]  }
   0x1   :  { %3187 = sst [smem:[#allocation7_spill]] %s3174_s0 }
   0x2   :  { %s2666_s30 = smov 0   ;;  %s2668_s10 = smov 0  }
   0x3   :  { %s2670_s11 = smov 0   ;;  %s2672_s12 = smov 0  }
   0x4   :  { %s2674_s13 = smov 0   ;;  %s2676_s14 = smov 0  }
   0x5   :  { %s2678_s15 = smov 0  }
   0x6 LB: > { %3188 = sst [smem:[#allocation4_spill]] %s2607_s14  ;;  %s28_s16 = sadd.s32 1, %s2603_s13  ;;  %s2611_s15 = sphi %s2678_s15, %s19_s15   ;;  %s2607_s14 = sphi %s2676_s14, %s3194_s14   ;;  %s2603_s13 = sphi %s2674_s13, %s3198_s13   ;;  %s2599_s12 = sphi %s2672_s12, %s3192_s12   ;;  %s2595_s11 = sphi %s2670_s11, %s3197_s11   ;;  %s2591_s10 = sphi %s2668_s10, %s3196_s10   ;;  %s2587_s30 = sphi %s2666_s30, %s3195_s30  }
   0x7   : > { %p29_p0 = scmp.ge.s32.totalorder %s28_s16, 4  ;;  %s31_s17 = sadd.s32 1, %s2607_s14 }
   0x8   : > { %p47_p1 = scmp.ne.s32.totalorder %s2591_s10, %s2587_s30  ;;  %p48_p2 = scmp.eq.s32.totalorder %s2611_s15, 0 }
   0x9   : > { %s3200_s16 = smov (%p29_p0, %s28_s16), 0  ;;  %s3202_s17 = smov (!%p29_p0, %s31_s17), %s2607_s14 }
   0xa   : > { %3189 = sst [smem:[#allocation5_spill]] %s3200_s16  ;;  %p49_p3 = por %p48_p2, %p47_p1 }
   0xb   : > { %p33_p4 = scmp.ge.s32.totalorder %s3202_s17, 2  ;;  %s36_s18 = ssub.s32 %s2603_s13, %s3200_s16 }
   0xc   : > { %s40_s21 = sadd.s32 1, %s2591_s10  ;;  %p2033_p6 = scmp.ge.s32.totalorder %s2611_s15, 8 }
   0xd   : > { %s3204_s17 = smov (%p33_p4, %s3202_s17), 0 }
   0xe   : > { %3190 = sst [smem:[#allocation6_spill]] %s3204_s17  ;;  %s35_s19 = ssub.s32 %s2607_s14, %s3204_s17 }
   0xf   : > { %s37_s20 = sor.u32 %s36_s18, %s35_s19  ;;  %297 = sbr.rel (%p2033_p6) target bundleno = 46 (0x2e), region = 36 }
  0x10   : > { %p38_p5 = scmp.eq.s32.totalorder %s37_s20, 0 }
  0x12   : > { %s2717_s22 = scalar_select %p38_p5, %s2591_s10, %s40_s21  }
  0x14   : > { %300 = sbr.rel (!%p49_p3) target bundleno = 46 (0x2e), region = 40  ;;  %s302_s23 = sand.u32 (%p49_p3), 1, %s2591_s10  }
  0x15   : > { %s2036_s24 = sshll.u32 (%p49_p3), %s2603_s13, 1  ;;  %s2034_s25 = sshll.u32 (%p49_p3), %s302_s23, 7 }
  0x16   : > { %s2171_s26 = sshll.u32 (%p49_p3), %s2607_s14, 7  ;;  %s3191_s0 = sld [smem:[#allocation7_spill]] (%p49_p3) }
  0x17   : > { %s308_s27 = sadd.s32 (%p49_p3), %s2171_s26, %s2036_s24  ;;  %s304_s19 = scalar_lea.vmem (%p49_p3), [#allocation3], %s2034_s25 }
  0x18   : > { %s2038_s28 = sshll.u32 (%p49_p3), %s308_s27, 2 }
  0x1c   : > { %s2726_s18 = scalar_lea.vmem %s3191_s0, %s2038_s28 }
  0x1d   : > { %v369_v0 = vld [vmem:[%s2726_s18] sm:$0xff] }
  0x1e   : > { %v371_v1 = vld [vmem:[%s2726_s18 + $0x20] sm:$0xff]  ;;  %370 = vst [vmem:[%s304_s19] sm:$0xff] %v369_v0 }
  0x1f   : > { %v373_v2 = vld [vmem:[%s2726_s18 + $0x40] sm:$0xff]  ;;  %372 = vst [vmem:[%s304_s19 + $0x8] sm:$0xff] %v371_v1 }
  0x20   : > { %374 = vst [vmem:[%s304_s19 + $0x10] sm:$0xff] %v373_v2  ;;  %v375_v3 = vld [vmem:[%s2726_s18 + $0x60] sm:$0xff] }
  0x21   : > { %v377_v4 = vld [vmem:[%s2726_s18 + $0x80] sm:$0xff]  ;;  %376 = vst [vmem:[%s304_s19 + $0x18] sm:$0xff] %v375_v3 }
  0x22   : > { %v379_v5 = vld [vmem:[%s2726_s18 + $0xa0] sm:$0xff]  ;;  %378 = vst [vmem:[%s304_s19 + $0x20] sm:$0xff] %v377_v4 }
  0x23   : > { %380 = vst [vmem:[%s304_s19 + $0x28] sm:$0xff] %v379_v5  ;;  %v381_v6 = vld [vmem:[%s2726_s18 + $0xc0] sm:$0xff] }
  0x24   : > { %v383_v7 = vld [vmem:[%s2726_s18 + $0xe0] sm:$0xff]  ;;  %382 = vst [vmem:[%s304_s19 + $0x30] sm:$0xff] %v381_v6 }
  0x25   : > { %v385_v8 = vld [vmem:[%s2726_s18 + $0x100] sm:$0xff]  ;;  %384 = vst [vmem:[%s304_s19 + $0x38] sm:$0xff] %v383_v7 }
  0x26   : > { %386 = vst [vmem:[%s304_s19 + $0x40] sm:$0xff] %v385_v8  ;;  %v387_v9 = vld [vmem:[%s2726_s18 + $0x120] sm:$0xff] }
  0x27   : > { %v389_v10 = vld [vmem:[%s2726_s18 + $0x140] sm:$0xff]  ;;  %388 = vst [vmem:[%s304_s19 + $0x48] sm:$0xff] %v387_v9 }
  0x28   : > { %v391_v11 = vld [vmem:[%s2726_s18 + $0x160] sm:$0xff]  ;;  %390 = vst [vmem:[%s304_s19 + $0x50] sm:$0xff] %v389_v10 }
  0x29   : > { %392 = vst [vmem:[%s304_s19 + $0x58] sm:$0xff] %v391_v11  ;;  %v393_v12 = vld [vmem:[%s2726_s18 + $0x180] sm:$0xff] }
  0x2a   : > { %v395_v13 = vld [vmem:[%s2726_s18 + $0x1a0] sm:$0xff]  ;;  %394 = vst [vmem:[%s304_s19 + $0x60] sm:$0xff] %v393_v12 }
  0x2b   : > { %v397_v14 = vld [vmem:[%s2726_s18 + $0x1c0] sm:$0xff]  ;;  %396 = vst [vmem:[%s304_s19 + $0x68] sm:$0xff] %v395_v13 }
  0x2c   : > { %398 = vst [vmem:[%s304_s19 + $0x70] sm:$0xff] %v397_v14  ;;  %v399_v15 = vld [vmem:[%s2726_s18 + $0x1e0] sm:$0xff] }
  0x2d   : > { %400 = vst [vmem:[%s304_s19 + $0x78] sm:$0xff] %v399_v15 }
  0x2e PF: > { %p2039_p7 = scmp.ge.s32.totalorder %s2611_s15, 1  ;;  %p433_p8 = scmp.lt.s32.totalorder %s2611_s15, 9 }
  0x30   : > { %p434_p9 = pnand %p2039_p7, %p433_p8 }
  0x31   : > { %s440_s17 = sand.u32 (!%p434_p9), 1, %s2587_s30   ;;  %s2041_s20 = sshll.u32 (!%p434_p9), %s2595_s11, 5 }
  0x32   : > { %437 = sbr.rel (%p434_p9) target bundleno = 1067 (0x42b), region = 90  ;;  %s2040_s21 = sshll.u32 (!%p434_p9), %s440_s17, 7 }
  0x33   : > { %p494_p10 = scmp.lt.s32.totalorder (!%p434_p9), %s2041_s20, 127  ;;  %s2044_s23 = sshll.u32 (!%p434_p9), %s2599_s12, 4 }
  0x34   : > { %p501_p11 = scmp.lt.s32.totalorder (!%p434_p9), %s2044_s23, 31  ;;  %p2050_p12 = scmp.ne.s32.totalorder (!%p434_p9), %s2595_s11, 0 }
  0x37   : > { %s3206_s20 = smov (!%p494_p10, %s2041_s20), 127  ;;  %s3208_s23 = smov (!%p501_p11, %s2044_s23), 31 }
  0x38   : > { %s2172_s24 = sshll.u32 %s3206_s20, 3  ;;  %s2045_s28 = sshll.u32 %s3208_s23, 2 }
  0x39   : > { %s2752_s27 = scalar_lea.vmem %s3175_s1, %s2172_s24  ;;  %s2047_s29 = sshll.u32 %s3208_s23, 3 }
  0x3a   : > { %s2757_s0 = scalar_lea.vmem %s3176_s2, %s2045_s28  ;;  %s2762_s12 = scalar_lea.vmem %s3177_s3, %s2047_s29 }
  0x3b   : > { %s2767_s14 = scalar_lea.vmem %s3183_s9, %s2045_s28  ;;  %s2769_s24 = scalar_lea.vmem [#allocation3], %s2040_s21 }
  0x3c   : > { %522 = sbr.rel (%p2050_p12) target bundleno = 74 (0x4a), region = 98 }
  0x41   : > { %vm523_vm0 = vcmask 261120   ;;  %v2613_v16 = vmov 0.0  }
  0x42   : > { %524 = vst.msk [vmem:[#allocation2] sm:$0xff] %vm523_vm0, %v2613_v16  ;;  %525 = vst.msk [vmem:[#allocation2 + $0x8] sm:$0xff] %vm523_vm0, %v2613_v16 }
  0x43   : > { %526 = vst.msk [vmem:[#allocation2 + $0x10] sm:$0xff] %vm523_vm0, %v2613_v16  ;;  %527 = vst.msk [vmem:[#allocation2 + $0x18] sm:$0xff] %vm523_vm0, %v2613_v16 }
  0x44   : > { %528 = vst.msk [vmem:[#allocation2 + $0x20] sm:$0xff] %vm523_vm0, %v2613_v16  ;;  %529 = vst.msk [vmem:[#allocation2 + $0x28] sm:$0xff] %vm523_vm0, %v2613_v16 }
  0x45   : > { %530 = vst.msk [vmem:[#allocation2 + $0x30] sm:$0xff] %vm523_vm0, %v2613_v16  ;;  %531 = vst.msk [vmem:[#allocation2 + $0x38] sm:$0xff] %vm523_vm0, %v2613_v16 }
  0x46   : > { %532 = vst.msk [vmem:[#allocation2 + $0x40] sm:$0xff] %vm523_vm0, %v2613_v16  ;;  %533 = vst.msk [vmem:[#allocation2 + $0x48] sm:$0xff] %vm523_vm0, %v2613_v16 }
  0x47   : > { %534 = vst.msk [vmem:[#allocation2 + $0x50] sm:$0xff] %vm523_vm0, %v2613_v16  ;;  %535 = vst.msk [vmem:[#allocation2 + $0x58] sm:$0xff] %vm523_vm0, %v2613_v16 }
  0x48   : > { %536 = vst.msk [vmem:[#allocation2 + $0x60] sm:$0xff] %vm523_vm0, %v2613_v16  ;;  %537 = vst.msk [vmem:[#allocation2 + $0x68] sm:$0xff] %vm523_vm0, %v2613_v16 }
  0x49   : > { %538 = vst.msk [vmem:[#allocation2 + $0x70] sm:$0xff] %vm523_vm0, %v2613_v16  ;;  %539 = vst.msk [vmem:[#allocation2 + $0x78] sm:$0xff] %vm523_vm0, %v2613_v16 }
  0x4a PF: > { %v2424_v17 = vld [vmem:[%s3178_s4 + $0x38] sm:$0xff]   ;;  %v2614_v18 = vmov 0   ;;  %v2425_v19 = vld [vmem:[%s3178_s4 + $0x30] sm:$0xff]   ;;  %v2426_v20 = vld [vmem:[%s3178_s4 + $0x28] sm:$0xff]   ;;  %vm795_vm1 = vcmask 130048   ;;  %vm1246_vm2 = vcmask 261120  }
  0x4b   : > { %844 = vmatprep.subr.bf16.mxu0 %v2614_v18  ;;  %2331 = vmatprep.subr.bf16.mxu1 %v2614_v18  ;;  %v2427_v21 = vld [vmem:[%s3178_s4 + $0x20] sm:$0xff]   ;;  %v2428_v23 = vld [vmem:[%s3178_s4 + $0x18] sm:$0xff]   ;;  %v2429_v25 = vld [vmem:[%s3178_s4 + $0x10] sm:$0xff]   ;;  %p2125_p13 = scmp.ne.s32.totalorder %s2595_s11, 3 }
  0x4c   : > { %845 = vmatpush1.bf16.msra.mxu0 %v2424_v17  ;;  %2340 = vmatpush1.bf16.msra.mxu1 %v2424_v17  ;;  %v2435_v22 = vld [vmem:[%s2752_s27 + $0x4] ss:$8 sps:$4 sm:$0xff]   ;;  %v2433_v29 = vld [vmem:[%s2752_s27] ss:$8 sps:$4 sm:$0xff]   ;;  %v2436_v31 = vld [vmem:[%s2752_s27 + $0x14] ss:$8 sps:$4 sm:$0xff]  }
  0x4d   : > { %846 = vmatprep.subr.bf16.mxu0 %v2614_v18  ;;  %2332 = vmatprep.subr.bf16.mxu1 %v2614_v18  ;;  %v2447_v24 = vld [vmem:[%s2752_s27 + $0xc4] ss:$8 sps:$4 sm:$0xff]   ;;  %v2445_v30 = vld [vmem:[%s2752_s27 + $0xc0] ss:$8 sps:$4 sm:$0xff]   ;;  %v2451_v32 = vld [vmem:[%s2752_s27 + $0xd4] ss:$8 sps:$4 sm:$0xff]  }
  0x4e   : > { %2093 = vmatprep.mubr.msk.bf16.mxu0 %vm795_vm1, %v2435_v22  ;;  %2105 = vmatprep.mubr.msk.bf16.mxu1 %vm795_vm1, %v2447_v24  ;;  %v2430_v26 = vld [vmem:[%s3178_s4 + $0x8] sm:$0xff]   ;;  %v2431_v27 = vld [vmem:[%s3178_s4] sm:$0xff]   ;;  %v2438_v33 = vld [vmem:[%s2752_s27 + $0x10] ss:$8 sps:$4 sm:$0xff]  }
  0x4f   : > { %v2432_v28 = vld [vmem:[%s3178_s4 + $0x40] sm:$0xff]   ;;  %v2455_v34 = vld [vmem:[%s2752_s27 + $0xd0] ss:$8 sps:$4 sm:$0xff]   ;;  %v2442_v39 = vld [vmem:[%s2752_s27 + $0x34] ss:$8 sps:$4 sm:$0xff]  }
  0x50   : > { %847 = vmatpush1.bf16.msra.mxu0 %v2425_v19  ;;  %2341 = vmatpush1.bf16.msra.mxu1 %v2425_v19  ;;  %v2439_v35 = vld [vmem:[%s2752_s27 + $0x24] ss:$8 sps:$4 sm:$0xff]   ;;  %v2441_v37 = vld [vmem:[%s2752_s27 + $0x20] ss:$8 sps:$4 sm:$0xff]   ;;  %v2463_v40 = vld [vmem:[%s2752_s27 + $0xf4] ss:$8 sps:$4 sm:$0xff]  }
  0x51   : > { %848 = vmatprep.subr.bf16.mxu0 %v2614_v18  ;;  %2333 = vmatprep.subr.bf16.mxu1 %v2614_v18  ;;  %v2457_v36 = vld [vmem:[%s2752_s27 + $0xe4] ss:$8 sps:$4 sm:$0xff]   ;;  %v2461_v38 = vld [vmem:[%s2752_s27 + $0xe0] ss:$8 sps:$4 sm:$0xff]   ;;  %v2444_v41 = vld [vmem:[%s2752_s27 + $0x30] ss:$8 sps:$4 sm:$0xff]  }
  0x52   : > { %v2467_v42 = vld [vmem:[%s2752_s27 + $0xf0] ss:$8 sps:$4 sm:$0xff]   ;;  %v2448_v43 = vld [vmem:[%s2752_s27 + $0x44] ss:$8 sps:$4 sm:$0xff]   ;;  %v2450_v44 = vld [vmem:[%s2752_s27 + $0x40] ss:$8 sps:$4 sm:$0xff]  }
  0x53   : > { %v2453_v45 = vld [vmem:[%s2752_s27 + $0x54] ss:$8 sps:$4 sm:$0xff]   ;;  %v2456_v46 = vld [vmem:[%s2752_s27 + $0x50] ss:$8 sps:$4 sm:$0xff]   ;;  %v2459_v47 = vld [vmem:[%s2752_s27 + $0x64] ss:$8 sps:$4 sm:$0xff]  }
  0x54   : > { %849 = vmatpush1.bf16.msra.mxu0 %v2426_v20  ;;  %2342 = vmatpush1.bf16.msra.mxu1 %v2426_v20  ;;  %v2462_v48 = vld [vmem:[%s2752_s27 + $0x60] ss:$8 sps:$4 sm:$0xff]   ;;  %v2465_v49 = vld [vmem:[%s2752_s27 + $0x74] ss:$8 sps:$4 sm:$0xff]   ;;  %v2468_v50 = vld [vmem:[%s2752_s27 + $0x70] ss:$8 sps:$4 sm:$0xff]  }
  0x55   : > { %850 = vmatprep.subr.bf16.mxu0 %v2614_v18  ;;  %2334 = vmatprep.subr.bf16.mxu1 %v2614_v18  ;;  %v2469_v51 = vld [vmem:[%s2752_s27 + $0x84] ss:$8 sps:$4 sm:$0xff]   ;;  %v2471_v52 = vld [vmem:[%s2752_s27 + $0x80] ss:$8 sps:$4 sm:$0xff]   ;;  %v2472_v53 = vld [vmem:[%s2752_s27 + $0x94] ss:$8 sps:$4 sm:$0xff]  }
  0x56   : > { %v2474_v54 = vld [vmem:[%s2752_s27 + $0x90] ss:$8 sps:$4 sm:$0xff]   ;;  %v2475_v55 = vld [vmem:[%s2752_s27 + $0xa4] ss:$8 sps:$4 sm:$0xff]   ;;  %v2477_v56 = vld [vmem:[%s2752_s27 + $0xa0] ss:$8 sps:$4 sm:$0xff]  }
  0x57   : > { %v2478_v57 = vld [vmem:[%s2752_s27 + $0xb4] ss:$8 sps:$4 sm:$0xff]   ;;  %v2480_v58 = vld [vmem:[%s2752_s27 + $0xb0] ss:$8 sps:$4 sm:$0xff]   ;;  %v2483_v59 = vld [vmem:[%s2769_s24 + $0x4] ss:$8 sps:$4 sm:$0xff]  }
  0x58   : > { %851 = vmatpush1.bf16.msra.mxu0 %v2427_v21  ;;  %2343 = vmatpush1.bf16.msra.mxu1 %v2427_v21  ;;  %v2867_v62 = vld [vmem:[%s3179_s5] ss:$0 sm:$0xff] }
  0x59   : > { %852 = vmatprep.subr.bf16.mxu0 %v2614_v18  ;;  %2335 = vmatprep.subr.bf16.mxu1 %v2614_v18 }
  0x5c   : > { %853 = vmatpush1.bf16.msra.mxu0 %v2428_v23  ;;  %2344 = vmatpush1.bf16.msra.mxu1 %v2428_v23 }
  0x5d   : > { %854 = vmatprep.subr.bf16.mxu0 %v2614_v18  ;;  %2336 = vmatprep.subr.bf16.mxu1 %v2614_v18 }
  0x60   : > { %855 = vmatpush1.bf16.msra.mxu0 %v2429_v25  ;;  %2345 = vmatpush1.bf16.msra.mxu1 %v2429_v25 }
  0x61   : > { %856 = vmatprep.subr.bf16.mxu0 %v2614_v18  ;;  %2337 = vmatprep.subr.bf16.mxu1 %v2614_v18 }
  0x64   : > { %857 = vmatpush1.bf16.msra.mxu0 %v2430_v26  ;;  %2346 = vmatpush1.bf16.msra.mxu1 %v2430_v26 }
  0x65   : > { %858 = vmatprep.subr.bf16.mxu0 %v2614_v18  ;;  %2338 = vmatprep.subr.bf16.mxu1 %v2614_v18 }
  0x68   : > { %859 = vmatpush1.bf16.msra.mxu0 %v2431_v27  ;;  %2347 = vmatpush1.bf16.msra.mxu1 %v2431_v27 }
  0x69   : > { %874 = vmatprep.subr.bf16.mxu0 %v2614_v18  ;;  %2339 = vmatprep.subr.bf16.mxu1 %v2614_v18 }
  0x6c   : > { %875 = vmatpush2.bf16.msra.mxu0 %v2432_v28  ;;  %2348 = vmatpush2.bf16.msra.mxu1 %v2432_v28 }
  0x6f   : > { %877 = vmatmul.mubr.bf16.vlgmr.msra.gmra.mxu0 %v2433_v29  ;;  %973 = vmatmul.mubr.bf16.vlgmr.msra.gmra.mxu1 %v2445_v30 }
  0x70   : > { %2094 = vmatprep.mubr.msk.bf16.mxu0 %vm795_vm1, %v2436_v31  ;;  %2106 = vmatprep.mubr.msk.bf16.mxu1 %vm795_vm1, %v2451_v32 }
  0x77   : > { %885 = vmatmul.mubr.bf16.gmra.mxu0 %v2438_v33  ;;  %981 = vmatmul.mubr.bf16.gmra.mxu1 %v2455_v34 }
  0x78   : > { %2095 = vmatprep.mubr.msk.bf16.mxu0 %vm795_vm1, %v2439_v35  ;;  %2107 = vmatprep.mubr.msk.bf16.mxu1 %vm795_vm1, %v2457_v36 }
  0x7f   : > { %893 = vmatmul.mubr.bf16.gmra.mxu0 %v2441_v37  ;;  %989 = vmatmul.mubr.bf16.gmra.mxu1 %v2461_v38 }
  0x80   : > { %2096 = vmatprep.mubr.msk.bf16.mxu0 %vm795_vm1, %v2442_v39  ;;  %2108 = vmatprep.mubr.msk.bf16.mxu1 %vm795_vm1, %v2463_v40 }
  0x87   : > { %901 = vmatmul.mubr.bf16.gmra.mxu0 %v2444_v41  ;;  %997 = vmatmul.mubr.bf16.gmra.mxu1 %v2467_v42 }
  0x88   : > { %2097 = vmatprep.mubr.msk.bf16.mxu0 %vm795_vm1, %v2448_v43  ;;  %1165 = vmatprep.mubr.bf16.mxu1 %v2483_v59 }
  0x8f   : > { %909 = vmatmul.mubr.bf16.gmra.mxu0 %v2450_v44 }
  0x90   : > { %2098 = vmatprep.mubr.msk.bf16.mxu0 %vm795_vm1, %v2453_v45 }
  0x97   : > { %917 = vmatmul.mubr.bf16.gmra.mxu0 %v2456_v46 }
  0x98   : > { %2099 = vmatprep.mubr.msk.bf16.mxu0 %vm795_vm1, %v2459_v47 }
  0x9f   : > { %925 = vmatmul.mubr.bf16.gmra.mxu0 %v2462_v48 }
  0xa0   : > { %2100 = vmatprep.mubr.msk.bf16.mxu0 %vm795_vm1, %v2465_v49 }
  0xa7   : > { %933 = vmatmul.mubr.bf16.gmra.mxu0 %v2468_v50 }
  0xa8   : > { %2101 = vmatprep.mubr.msk.bf16.mxu0 %vm795_vm1, %v2469_v51 }
  0xaf   : > { %941 = vmatmul.mubr.bf16.gmra.mxu0 %v2471_v52 }
  0xb0   : > { %2102 = vmatprep.mubr.msk.bf16.mxu0 %vm795_vm1, %v2472_v53 }
  0xb7   : > { %949 = vmatmul.mubr.bf16.gmra.mxu0 %v2474_v54 }
  0xb8   : > { %2103 = vmatprep.mubr.msk.bf16.mxu0 %vm795_vm1, %v2475_v55 }
  0xbf   : > { %957 = vmatmul.mubr.bf16.gmra.mxu0 %v2477_v56 }
  0xc0   : > { %2104 = vmatprep.mubr.msk.bf16.mxu0 %vm795_vm1, %v2478_v57 }
  0xc7   : > { %965 = vmatmul.mubr.bf16.gmra.mxu0 %v2480_v58 }
 0x12f   : > { %v878_v60 = vpop.f32.mrf.mxu0  ;;  %v974_v61 = vpop.f32.mrf.mxu1 }
 0x130   : > { %v2870_v1 = vadd.f32 %v2867_v62, %v974_v61  ;;  %v2873_v4 = vadd.f32 %v2867_v62, %v878_v60 }
 0x131   : > { %v880_v63 = vpop.f32.mrf.mxu0  ;;  %v976_v0 = vpop.f32.mrf.mxu1 }
 0x133   : > { %v881_v2 = vpop.f32.mrf.mxu0  ;;  %v977_v3 = vpop.f32.mrf.mxu1 }
 0x134   : > { %v2876_v5 = vadd.f32 %v2867_v62, %v881_v2  ;;  %v2879_v6 = vadd.f32 %v2867_v62, %v977_v3 }
 0x135   : > { %v883_v7 = vpop.f32.mrf.mxu0  ;;  %v979_v8 = vpop.f32.mrf.mxu1 }
 0x136   : > { %v1037_v9 = vpack.c.bf16 %v2876_v5, %v2873_v4  ;;  %v1049_v10 = vpack.c.bf16 %v2879_v6, %v2870_v1  ;;  %v2493_v4 = vld [vmem:[%s2769_s24 + $0x44] ss:$8 sps:$4 sm:$0xff]   ;;  %v2495_v5 = vld [vmem:[%s2769_s24 + $0x40] ss:$8 sps:$4 sm:$0xff]  }
 0x137   : > { %v886_v11 = vpop.f32.mrf.mxu0  ;;  %v982_v12 = vpop.f32.mrf.mxu1 }
 0x138   : > { %v2886_v17 = vadd.f32 %v2867_v62, %v886_v11 }
 0x139   : > { %v888_v13 = vpop.f32.mrf.mxu0  ;;  %v984_v14 = vpop.f32.mrf.mxu1 }
 0x13a   : > { %v983_v14 = vadd.f32 %v2867_v62, %v982_v12 }
 0x13b   : > { %v889_v15 = vpop.f32.mrf.mxu0  ;;  %v985_v16 = vpop.f32.mrf.mxu1 }
 0x13c   : > { %v2889_v18 = vadd.f32 %v2867_v62, %v889_v15  ;;  %v986_v15 = vadd.f32 %v2867_v62, %v985_v16 }
 0x13d   : > { %v891_v19 = vpop.f32.mrf.mxu0  ;;  %v987_v20 = vpop.f32.mrf.mxu1 }
 0x13e   : > { %v1038_v21 = vpack.c.bf16 %v2889_v18, %v2886_v17  ;;  %v2489_v17 = vld [vmem:[%s2769_s24 + $0x20] ss:$8 sps:$4 sm:$0xff]   ;;  %v2490_v18 = vld [vmem:[%s2769_s24 + $0x34] ss:$8 sps:$4 sm:$0xff]  }
 0x13f   : > { %v894_v22 = vpop.f32.mrf.mxu0  ;;  %v990_v23 = vpop.f32.mrf.mxu1 }
 0x140   : > { %v2894_v28 = vadd.f32 %v2867_v62, %v894_v22  ;;  %v991_v60 = vadd.f32 %v2867_v62, %v990_v23 }
 0x141   : > { %v896_v24 = vpop.f32.mrf.mxu0  ;;  %v992_v25 = vpop.f32.mrf.mxu1 }
 0x142   : > { %v1050_v25 = vpack.c.bf16 %v986_v15, %v983_v14  ;;  %v1007_v15 = vld [vmem:[#allocation2 + $0x10] sm:$0xff] }
 0x143   : > { %v897_v26 = vpop.f32.mrf.mxu0  ;;  %v993_v27 = vpop.f32.mrf.mxu1 }
 0x144   : > { %v2897_v29 = vadd.f32 %v2867_v62, %v897_v26  ;;  %v994_v61 = vadd.f32 %v2867_v62, %v993_v27 }
 0x145   : > { %v899_v30 = vpop.f32.mrf.mxu0  ;;  %v995_v31 = vpop.f32.mrf.mxu1 }
 0x146   : > { %v1039_v32 = vpack.c.bf16 %v2897_v29, %v2894_v28  ;;  %v1051_v7 = vpack.c.bf16 %v994_v61, %v991_v60  ;;  %v2484_v28 = vld [vmem:[%s2769_s24 + $0x14] ss:$8 sps:$4 sm:$0xff]   ;;  %v2487_v29 = vld [vmem:[%s2769_s24 + $0x24] ss:$8 sps:$4 sm:$0xff]  }
 0x147   : > { %v902_v33 = vpop.f32.mrf.mxu0  ;;  %v998_v34 = vpop.f32.mrf.mxu1  ;;  %v1005_v61 = vld [vmem:[#allocation2] sm:$0xff] }
 0x148   : > { %v999_v37 = vadd.f32 %v2867_v62, %v998_v34  ;;  %v2903_v40 = vadd.f32 %v2867_v62, %v902_v33 }
 0x149   : > { %v904_v35 = vpop.f32.mrf.mxu0  ;;  %v1000_v36 = vpop.f32.mrf.mxu1 }
 0x14b   : > { %v905_v38 = vpop.f32.mrf.mxu0  ;;  %v1001_v39 = vpop.f32.mrf.mxu1 }
 0x14c   : > { %v2906_v41 = vadd.f32 %v2867_v62, %v905_v38  ;;  %v1002_v42 = vadd.f32 %v2867_v62, %v1001_v39 }
 0x14d   : > { %v907_v43 = vpop.f32.mrf.mxu0  ;;  %v1003_v44 = vpop.f32.mrf.mxu1 }
 0x14e   : > { %v1040_v45 = vpack.c.bf16 %v2906_v41, %v2903_v40  ;;  %v1052_v46 = vpack.c.bf16 %v1002_v42, %v999_v37  ;;  %v2481_v40 = vld [vmem:[%s2769_s24] ss:$8 sps:$4 sm:$0xff]   ;;  %v2499_v41 = vld [vmem:[%s2769_s24 + $0x64] ss:$8 sps:$4 sm:$0xff]  }
 0x14f   : > { %v910_v47 = vpop.f32.mrf.mxu0 }
 0x150   : > { %2189 = vmatprep.subr.bf16.mxu1 %v1052_v46  ;;  %v911_v33 = vadd.f32 %v2867_v62, %v910_v47 }
 0x151   : > { %v912_v48 = vpop.f32.mrf.mxu0 }
 0x153   : > { %v913_v49 = vpop.f32.mrf.mxu0 }
 0x154   : > { %v914_v12 = vadd.f32 %v2867_v62, %v913_v49 }
 0x155   : > { %v915_v50 = vpop.f32.mrf.mxu0 }
 0x156   : > { %v1041_v35 = vpack.c.bf16 %v914_v12, %v911_v33  ;;  %v1009_v12 = vld [vmem:[#allocation2 + $0x20] sm:$0xff] }
 0x157   : > { %v918_v51 = vpop.f32.mrf.mxu0 }
 0x158   : > { %v919_v27 = vadd.f32 %v2867_v62, %v918_v51 }
 0x159   : > { %v920_v52 = vpop.f32.mrf.mxu0 }
 0x15b   : > { %v921_v53 = vpop.f32.mrf.mxu0 }
 0x15c   : > { %v922_v23 = vadd.f32 %v2867_v62, %v921_v53 }
 0x15d   : > { %v923_v54 = vpop.f32.mrf.mxu0 }
 0x15e   : > { %v1042_v31 = vpack.c.bf16 %v922_v23, %v919_v27 }
 0x15f   : > { %v926_v55 = vpop.f32.mrf.mxu0 }
 0x160   : > { %v927_v20 = vadd.f32 %v2867_v62, %v926_v55 }
 0x161   : > { %v928_v56 = vpop.f32.mrf.mxu0 }
 0x163   : > { %v929_v57 = vpop.f32.mrf.mxu0 }
 0x164   : > { %v930_v11 = vadd.f32 %v2867_v62, %v929_v57 }
 0x165   : > { %v931_v58 = vpop.f32.mrf.mxu0 }
 0x166   : > { %v1043_v24 = vpack.c.bf16 %v930_v11, %v927_v20  ;;  %v2502_v58 = vld [vmem:[%s2769_s24 + $0x74] ss:$8 sps:$4 sm:$0xff]  }
 0x167   : > { %v934_v59 = vpop.f32.mrf.mxu0 }
 0x168   : > { %v935_v2 = vadd.f32 %v2867_v62, %v934_v59  ;;  %v2504_v59 = vld [vmem:[%s2769_s24 + $0x70] ss:$8 sps:$4 sm:$0xff]  }
 0x169   : > { %v936_v63 = vpop.f32.mrf.mxu0 }
 0x16b   : > { %v937_v0 = vpop.f32.mrf.mxu0 }
 0x16c   : > { %v938_v3 = vadd.f32 %v2867_v62, %v937_v0 }
 0x16d   : > { %v939_v8 = vpop.f32.mrf.mxu0 }
 0x16e   : > { %v1044_v13 = vpack.c.bf16 %v938_v3, %v935_v2 }
 0x16f   : > { %v942_v19 = vpop.f32.mrf.mxu0 }
 0x170   : > { %2190 = vmatpush3.bf16.msra.mxu1 %v1044_v13  ;;  %v943_v56 = vadd.f32 %v2867_v62, %v942_v19 }
 0x171   : > { %v944_v22 = vpop.f32.mrf.mxu0  ;;  %2191 = vmatprep.subr.bf16.mxu1 %v1051_v7  ;;  %v1006_v7 = vld [vmem:[#allocation2 + $0x8] sm:$0xff] }
 0x173   : > { %v945_v26 = vpop.f32.mrf.mxu0 }
 0x174   : > { %2192 = vmatpush3.bf16.msra.mxu1 %v1043_v24  ;;  %v946_v54 = vadd.f32 %v2867_v62, %v945_v26  ;;  %v1008_v24 = vld [vmem:[#allocation2 + $0x18] sm:$0xff] }
 0x175   : > { %v947_v30 = vpop.f32.mrf.mxu0  ;;  %2193 = vmatprep.subr.bf16.mxu1 %v1050_v25 }
 0x176   : > { %v1045_v57 = vpack.c.bf16 %v946_v54, %v943_v56 }
 0x177   : > { %v950_v16 = vpop.f32.mrf.mxu0 }
 0x178   : > { %2194 = vmatpush3.bf16.msra.mxu1 %v1042_v31  ;;  %v951_v53 = vadd.f32 %v2867_v62, %v950_v16 }
 0x179   : > { %v952_v34 = vpop.f32.mrf.mxu0  ;;  %2195 = vmatprep.subr.bf16.mxu1 %v1049_v10 }
 0x17b   : > { %v953_v36 = vpop.f32.mrf.mxu0 }
 0x17c   : > { %2196 = vmatpush3.bf16.msra.mxu1 %v1041_v35  ;;  %v954_v10 = vadd.f32 %v2867_v62, %v953_v36  ;;  %v1010_v35 = vld [vmem:[#allocation2 + $0x28] sm:$0xff] }
 0x17d   : > { %v955_v37 = vpop.f32.mrf.mxu0 }
 0x17e   : > { %v1046_v55 = vpack.c.bf16 %v954_v10, %v951_v53 }
 0x17f   : > { %v958_v38 = vpop.f32.mrf.mxu0 }
 0x180   : > { %v959_v1 = vadd.f32 %v2867_v62, %v958_v38 }
 0x181   : > { %v960_v39 = vpop.f32.mrf.mxu0 }
 0x183   : > { %v961_v42 = vpop.f32.mrf.mxu0 }
 0x184   : > { %v962_v49 = vadd.f32 %v2867_v62, %v961_v42  ;;  %v1011_v42 = vld [vmem:[#allocation2 + $0x30] sm:$0xff] }
 0x185   : > { %v963_v43 = vpop.f32.mrf.mxu0 }
 0x186   : > { %v1047_v52 = vpack.c.bf16 %v962_v49, %v959_v1  ;;  %v1012_v49 = vld [vmem:[#allocation2 + $0x38] sm:$0xff] }
 0x187   : > { %v966_v44 = vpop.f32.mrf.mxu0 }
 0x188   : > { %v967_v47 = vadd.f32 %v2867_v62, %v966_v44 }
 0x189   : > { %v968_v46 = vpop.f32.mrf.mxu0 }
 0x18b   : > { %v969_v48 = vpop.f32.mrf.mxu0 }
 0x18c   : > { %v970_v50 = vadd.f32 %v2867_v62, %v969_v48  ;;  %v2486_v62 = vld [vmem:[%s2769_s24 + $0x10] ss:$8 sps:$4 sm:$0xff]  }
 0x18d   : > { %v971_v51 = vpop.f32.mrf.mxu0 }
 0x18e   : > { %v1048_v6 = vpack.c.bf16 %v970_v50, %v967_v47 }
 0x190   : > { %2197 = vmatprep.subr.bf16.mxu1 %v1048_v6  ;;  %v1013_v6 = vld [vmem:[#allocation2 + $0x40] sm:$0xff] }
 0x191   : > { %2198 = vmatpush3.bf16.msra.mxu1 %v1040_v45  ;;  %v2501_v45 = vld [vmem:[%s2769_s24 + $0x60] ss:$8 sps:$4 sm:$0xff]  }
 0x192   : > { %2199 = vmatprep.subr.bf16.mxu1 %v1047_v52 }
 0x195   : > { %2200 = vmatpush3.bf16.msra.mxu1 %v1039_v32  ;;  %v2498_v32 = vld [vmem:[%s2769_s24 + $0x50] ss:$8 sps:$4 sm:$0xff]  }
 0x196   : > { %2201 = vmatprep.subr.bf16.mxu1 %v1046_v55  ;;  %v1014_v55 = vld [vmem:[#allocation2 + $0x48] sm:$0xff] }
 0x199   : > { %2202 = vmatpush3.bf16.msra.mxu1 %v1038_v21  ;;  %v2492_v21 = vld [vmem:[%s2769_s24 + $0x30] ss:$8 sps:$4 sm:$0xff]  }
 0x19a   : > { %2203 = vmatprep.subr.bf16.mxu1 %v1045_v57 }
 0x19d   : > { %2204 = vmatpush3.bf16.msra.mxu1 %v1037_v9  ;;  %v2496_v9 = vld [vmem:[%s2769_s24 + $0x54] ss:$8 sps:$4 sm:$0xff]  }
 0x1a0   : > { %1166 = vmatmul.mubr.bf16.vlgmr.msra.gmra.mxu1 %v2481_v40 }
 0x1a1   : > { %1173 = vmatprep.mubr.bf16.mxu1 %v2484_v28 }
 0x1a8   : > { %1174 = vmatmul.mubr.bf16.gmra.mxu1 %v2486_v62  ;;  %v1015_v62 = vld [vmem:[#allocation2 + $0x50] sm:$0xff] }
 0x1a9   : > { %1181 = vmatprep.mubr.bf16.mxu1 %v2487_v29 }
 0x1b0   : > { %1182 = vmatmul.mubr.bf16.gmra.mxu1 %v2489_v17 }
 0x1b1   : > { %1189 = vmatprep.mubr.bf16.mxu1 %v2490_v18 }
 0x1b8   : > { %1190 = vmatmul.mubr.bf16.gmra.mxu1 %v2492_v21 }
 0x1b9   : > { %1197 = vmatprep.mubr.bf16.mxu1 %v2493_v4  ;;  %v1016_v4 = vld [vmem:[#allocation2 + $0x58] sm:$0xff] }
 0x1c0   : > { %1198 = vmatmul.mubr.bf16.gmra.mxu1 %v2495_v5 }
 0x1c1   : > { %1205 = vmatprep.mubr.bf16.mxu1 %v2496_v9 }
 0x1c8   : > { %1206 = vmatmul.mubr.bf16.gmra.mxu1 %v2498_v32 }
 0x1c9   : > { %1213 = vmatprep.mubr.bf16.mxu1 %v2499_v41 }
 0x1d0   : > { %1214 = vmatmul.mubr.bf16.gmra.mxu1 %v2501_v45  ;;  %v1017_v45 = vld [vmem:[#allocation2 + $0x60] sm:$0xff] }
 0x1d1   : > { %1221 = vmatprep.mubr.bf16.mxu1 %v2502_v58 }
 0x1d8   : > { %1222 = vmatmul.mubr.bf16.gmra.mxu1 %v2504_v59 }
 0x260   : > { %v2205_v60 = vpop.f32.mrf.mxu1 }
 0x262   : > { %v2206_v63 = vpop.f32.mrf.mxu1 }
 0x263   : > { %v2207_v0 = vadd.f32 %v2206_v63, %v2205_v60  ;;  %v1018_v63 = vld [vmem:[#allocation2 + $0x68] sm:$0xff] }
 0x264   : > { %v2208_v2 = vpop.f32.mrf.mxu1 }
 0x265   : > { %v1230_v3 = vadd.f32 %v2207_v0, %v1005_v61 }
 0x266   : > { %v2209_v8 = vpop.f32.mrf.mxu1 }
 0x267   : > { %1247 = vst.msk [vmem:[#allocation2] sm:$0xff] %vm1246_vm2, %v1230_v3  ;;  %v2210_v11 = vadd.f32 %v2209_v8, %v2208_v2  ;;  %v1019_v8 = vld [vmem:[#allocation2 + $0x70] sm:$0xff] }
 0x268   : > { %v2211_v13 = vpop.f32.mrf.mxu1 }
 0x269   : > { %v1231_v14 = vadd.f32 %v2210_v11, %v1006_v7 }
 0x26a   : > { %v2212_v19 = vpop.f32.mrf.mxu1 }
 0x26b   : > { %1248 = vst.msk [vmem:[#allocation2 + $0x8] sm:$0xff] %vm1246_vm2, %v1231_v14  ;;  %v2213_v20 = vadd.f32 %v2212_v19, %v2211_v13  ;;  %v1020_v19 = vld [vmem:[#allocation2 + $0x78] sm:$0xff] }
 0x26c   : > { %v2214_v22 = vpop.f32.mrf.mxu1 }
 0x26d   : > { %v1232_v23 = vadd.f32 %v2213_v20, %v1007_v15 }
 0x26e   : > { %v2215_v25 = vpop.f32.mrf.mxu1 }
 0x26f   : > { %1249 = vst.msk [vmem:[#allocation2 + $0x10] sm:$0xff] %vm1246_vm2, %v1232_v23  ;;  %v2216_v26 = vadd.f32 %v2215_v25, %v2214_v22 }
 0x270   : > { %v2217_v27 = vpop.f32.mrf.mxu1 }
 0x271   : > { %v1233_v30 = vadd.f32 %v2216_v26, %v1008_v24 }
 0x272   : > { %v2218_v31 = vpop.f32.mrf.mxu1 }
 0x273   : > { %1250 = vst.msk [vmem:[#allocation2 + $0x18] sm:$0xff] %vm1246_vm2, %v1233_v30  ;;  %v2219_v16 = vadd.f32 %v2218_v31, %v2217_v27 }
 0x274   : > { %v2220_v33 = vpop.f32.mrf.mxu1 }
 0x275   : > { %v1234_v34 = vadd.f32 %v2219_v16, %v1009_v12 }
 0x276   : > { %v2221_v36 = vpop.f32.mrf.mxu1 }
 0x277   : > { %1251 = vst.msk [vmem:[#allocation2 + $0x20] sm:$0xff] %vm1246_vm2, %v1234_v34  ;;  %v2222_v37 = vadd.f32 %v2221_v36, %v2220_v33 }
 0x278   : > { %v2223_v38 = vpop.f32.mrf.mxu1 }
 0x279   : > { %v1235_v39 = vadd.f32 %v2222_v37, %v1010_v35 }
 0x27a   : > { %v2224_v43 = vpop.f32.mrf.mxu1 }
 0x27b   : > { %1252 = vst.msk [vmem:[#allocation2 + $0x28] sm:$0xff] %vm1246_vm2, %v1235_v39  ;;  %v2225_v44 = vadd.f32 %v2224_v43, %v2223_v38 }
 0x27c   : > { %v2226_v46 = vpop.f32.mrf.mxu1 }
 0x27d   : > { %v1236_v48 = vadd.f32 %v2225_v44, %v1011_v42 }
 0x27e   : > { %v2227_v47 = vpop.f32.mrf.mxu1 }
 0x27f   : > { %1253 = vst.msk [vmem:[#allocation2 + $0x30] sm:$0xff] %vm1246_vm2, %v1236_v48  ;;  %v2228_v50 = vadd.f32 %v2227_v47, %v2226_v46 }
 0x280   : > { %v2229_v51 = vpop.f32.mrf.mxu1 }
 0x281   : > { %v1237_v1 = vadd.f32 %v2228_v50, %v1012_v49 }
 0x282   : > { %v2230_v10 = vpop.f32.mrf.mxu1 }
 0x283   : > { %1254 = vst.msk [vmem:[#allocation2 + $0x38] sm:$0xff] %vm1246_vm2, %v1237_v1  ;;  %v2231_v52 = vadd.f32 %v2230_v10, %v2229_v51 }
 0x284   : > { %v2232_v53 = vpop.f32.mrf.mxu1 }
 0x285   : > { %v1238_v54 = vadd.f32 %v2231_v52, %v1013_v6 }
 0x286   : > { %v2233_v56 = vpop.f32.mrf.mxu1 }
 0x287   : > { %1255 = vst.msk [vmem:[#allocation2 + $0x40] sm:$0xff] %vm1246_vm2, %v1238_v54  ;;  %v2234_v57 = vadd.f32 %v2233_v56, %v2232_v53 }
 0x288   : > { %v2235_v40 = vpop.f32.mrf.mxu1 }
 0x289   : > { %v1239_v28 = vadd.f32 %v2234_v57, %v1014_v55 }
 0x28a   : > { %v2236_v29 = vpop.f32.mrf.mxu1 }
 0x28b   : > { %1256 = vst.msk [vmem:[#allocation2 + $0x48] sm:$0xff] %vm1246_vm2, %v1239_v28  ;;  %v2237_v17 = vadd.f32 %v2236_v29, %v2235_v40 }
 0x28c   : > { %v2238_v18 = vpop.f32.mrf.mxu1 }
 0x28d   : > { %v1240_v21 = vadd.f32 %v2237_v17, %v1015_v62 }
 0x28e   : > { %v2239_v5 = vpop.f32.mrf.mxu1 }
 0x28f   : > { %1257 = vst.msk [vmem:[#allocation2 + $0x50] sm:$0xff] %vm1246_vm2, %v1240_v21  ;;  %v2240_v9 = vadd.f32 %v2239_v5, %v2238_v18 }
 0x290   : > { %v2241_v32 = vpop.f32.mrf.mxu1 }
 0x291   : > { %v1241_v41 = vadd.f32 %v2240_v9, %v1016_v4 }
 0x292   : > { %v2242_v58 = vpop.f32.mrf.mxu1 }
 0x293   : > { %1258 = vst.msk [vmem:[#allocation2 + $0x58] sm:$0xff] %vm1246_vm2, %v1241_v41  ;;  %v2243_v59 = vadd.f32 %v2242_v58, %v2241_v32 }
 0x294   : > { %v2244_v60 = vpop.f32.mrf.mxu1 }
 0x295   : > { %v1242_v61 = vadd.f32 %v2243_v59, %v1017_v45 }
 0x296   : > { %v2245_v0 = vpop.f32.mrf.mxu1 }
 0x297   : > { %1259 = vst.msk [vmem:[#allocation2 + $0x60] sm:$0xff] %vm1246_vm2, %v1242_v61  ;;  %v2246_v2 = vadd.f32 %v2245_v0, %v2244_v60 }
 0x298   : > { %v2247_v3 = vpop.f32.mrf.mxu1 }
 0x299   : > { %v1243_v7 = vadd.f32 %v2246_v2, %v1018_v63 }
 0x29a   : > { %v2248_v11 = vpop.f32.mrf.mxu1 }
 0x29b   : > { %1260 = vst.msk [vmem:[#allocation2 + $0x68] sm:$0xff] %vm1246_vm2, %v1243_v7  ;;  %v2249_v13 = vadd.f32 %v2248_v11, %v2247_v3 }
 0x29c   : > { %v2250_v14 = vpop.f32.mrf.mxu1 }
 0x29d   : > { %v1244_v15 = vadd.f32 %v2249_v13, %v1019_v8 }
 0x29e   : > { %v2251_v20 = vpop.f32.mrf.mxu1 }
 0x29f   : > { %1261 = vst.msk [vmem:[#allocation2 + $0x70] sm:$0xff] %vm1246_vm2, %v1244_v15  ;;  %v2252_v22 = vadd.f32 %v2251_v20, %v2250_v14  ;;  %1266 = sbr.rel (%p2125_p13) target bundleno = 1067 (0x42b), region = 102 }
 0x2a1   : > { %v1245_v23 = vadd.f32 %v2252_v22, %v1020_v19 }
 0x2a3   : > { %1262 = vst.msk [vmem:[#allocation2 + $0x78] sm:$0xff] %vm1246_vm2, %v1245_v23 }
 0x2a4   : > { %v1269_v24 = vld [vmem:[%s2762_s12 + $0x10] sm:$0xff]  ;;  %v1267_v25 = vld [vmem:[%s2762_s12] sm:$0xff]  ;;  %v1270_v26 = vld [vmem:[%s2762_s12 + $0x18] sm:$0xff]  ;;  %v2615_v27 = vmov 0   ;;  %vm1900_vm3 = vcmask 257024  }
 0x2a5   : > { %2506 = vset.pattern.permute.xlu1 %v2615_v27  ;;  %2505 = vset.pattern.permute.xlu0 %v2615_v27  ;;  %v1285_v30 = vmax.f32 %v1269_v24, 1.0  ;;  %v1283_v12 = vmax.f32 %v1267_v25, 1.0  ;;  %v1286_v31 = vmax.f32 %v1270_v26, 1.0  ;;  %v1268_v16 = vld [vmem:[%s2762_s12 + $0x8] sm:$0xff]  ;;  %v1271_v35 = vld [vmem:[%s2762_s12 + $0x20] sm:$0xff]  ;;  %v1274_v37 = vld [vmem:[%s2762_s12 + $0x38] sm:$0xff] }
 0x2a6   : > { %v1284_v33 = vmax.f32 %v1268_v16, 1.0  ;;  %v1272_v34 = vld [vmem:[%s2762_s12 + $0x28] sm:$0xff]  ;;  %v1273_v38 = vld [vmem:[%s2762_s12 + $0x30] sm:$0xff]  ;;  %v1287_v39 = vmax.f32 %v1271_v35, 1.0  ;;  %v2989_v42 = vld [vmem:[%s3180_s6 + $0x38] sm:$0xff]   ;;  %v1290_v46 = vmax.f32 %v1274_v37, 1.0 }
 0x2a7   : > { %2525 = vrcp.f32 %v1285_v30  ;;  %v1288_v36 = vmax.f32 %v1272_v34, 1.0  ;;  %v2994_v43 = vld [vmem:[%s3180_s6 + $0x30] sm:$0xff]   ;;  %v1276_v44 = vld [vmem:[%s2762_s12 + $0x48] sm:$0xff]  ;;  %2349 = vmatprep.subr.bf16.mxu1 %v2989_v42  ;;  %v1289_v48 = vmax.f32 %v1273_v38, 1.0  ;;  %v1275_v49 = vld [vmem:[%s2762_s12 + $0x40] sm:$0xff] }
 0x2a8   : > { %2527 = vrcp.f32 %v1283_v12  ;;  %2357 = vmatpush3.bf16.msra.mxu1 %v2989_v42  ;;  %v3003_v47 = vld [vmem:[%s3180_s6 + $0x28] sm:$0xff]   ;;  %v1292_v50 = vmax.f32 %v1276_v44, 1.0  ;;  %v1278_v51 = vld [vmem:[%s2762_s12 + $0x58] sm:$0xff]  ;;  %v1277_v1 = vld [vmem:[%s2762_s12 + $0x50] sm:$0xff]  ;;  %v1291_v10 = vmax.f32 %v1275_v49, 1.0 }
 0x2a9   : > { %2529 = vrcp.f32 %v1286_v31  ;;  %2350 = vmatprep.subr.bf16.mxu1 %v2994_v43  ;;  %v2511_v6 = vld [vmem:[%s3181_s7 + $0x8] sm:$0xff]   ;;  %v3016_v52 = vld [vmem:[%s3180_s6 + $0x20] sm:$0xff]   ;;  %v1294_v55 = vmax.f32 %v1278_v51, 1.0  ;;  %v1293_v56 = vmax.f32 %v1277_v1, 1.0  ;;  %v3023_v40 = vld [vmem:[%s3180_s6 + $0x18] sm:$0xff]  }
 0x2aa   : > { %2531 = vrcp.f32 %v1284_v33  ;;  %2279 = vmatprep.subr.bf16.mxu0 %v2511_v6  ;;  %v1280_v57 = vld [vmem:[%s2762_s12 + $0x68] sm:$0xff]  ;;  %v2513_v28 = vld [vmem:[%s3181_s7] sm:$0xff]   ;;  %v1282_v21 = vld [vmem:[%s2762_s12 + $0x78] sm:$0xff] }
 0x2ab   : > { %2533 = vrcp.f32 %v1288_v36  ;;  %2280 = vmatpush3.bf16.msra.mxu0 %v2511_v6  ;;  %v1279_v17 = vld [vmem:[%s2762_s12 + $0x60] sm:$0xff]  ;;  %v1296_v18 = vmax.f32 %v1280_v57, 1.0  ;;  %v3036_v9 = vld [vmem:[%s3180_s6 + $0x10] sm:$0xff]   ;;  %v1298_v45 = vmax.f32 %v1282_v21, 1.0  ;;  %v3045_v60 = vld [vmem:[%s3180_s6 + $0x8] sm:$0xff]  }
 0x2ac   : > { %2535 = vrcp.f32 %v1287_v39  ;;  %2358 = vmatpush3.bf16.msra.mxu1 %v2994_v43  ;;  %2281 = vmatprep.subr.bf16.mxu0 %v2513_v28  ;;  %v1295_v5 = vmax.f32 %v1279_v17, 1.0  ;;  %v1281_v41 = vld [vmem:[%s2762_s12 + $0x70] sm:$0xff]  ;;  %v3053_v2 = vld [vmem:[%s3180_s6] sm:$0xff]   ;;  %v2518_v11 = vld [vmem:[%s2757_s0 + $0x18] sm:$0xff]  }
 0x2ad   : > { %2537 = vrcp.f32 %v1290_v46  ;;  %2351 = vmatprep.subr.bf16.mxu1 %v3003_v47  ;;  %v1297_v59 = vmax.f32 %v1281_v41, 1.0  ;;  %v2517_v63 = vld [vmem:[%s2757_s0 + $0x10] sm:$0xff]   ;;  %v2519_v13 = vld [vmem:[%s2757_s0 + $0x20] sm:$0xff]   ;;  %v2520_v22 = vld [vmem:[%s2757_s0 + $0x28] sm:$0xff]  }
 0x2ae   : > { %2539 = vrcp.f32 %v1289_v48  ;;  %2319 = vmatprep.mubr.bf16.mxu1 %v2517_v63  ;;  %v2521_v23 = vld [vmem:[%s2757_s0 + $0x30] sm:$0xff]   ;;  %v2522_v24 = vld [vmem:[%s2757_s0 + $0x38] sm:$0xff]   ;;  %v1315_v12 = vld [vmem:[#allocation2] sm:$0xff] }
 0x2af   : > { %2541 = vrcp.f32 %v1292_v50  ;;  %2282 = vmatpush3.bf16.msra.mxu0 %v2513_v28  ;;  %v1317_v27 = vld [vmem:[#allocation2 + $0x10] sm:$0xff]  ;;  %v1318_v30 = vld [vmem:[#allocation2 + $0x18] sm:$0xff]  ;;  %v1316_v31 = vld [vmem:[#allocation2 + $0x8] sm:$0xff] }
 0x2b0   : > { %2359 = vmatpush3.bf16.msra.mxu1 %v3003_v47  ;;  %2543 = vrcp.f32 %v1291_v10  ;;  %2299 = vmatprep.subr.bf16.mxu0 %v2989_v42  ;;  %v1320_v38 = vld [vmem:[#allocation2 + $0x28] sm:$0xff]  ;;  %v1319_v44 = vld [vmem:[#allocation2 + $0x20] sm:$0xff]  ;;  %v1322_v1 = vld [vmem:[#allocation2 + $0x38] sm:$0xff] }
 0x2b1   : > { %2352 = vmatprep.subr.bf16.mxu1 %v3016_v52  ;;  %2545 = vrcp.f32 %v1294_v55  ;;  %v1321_v6 = vld [vmem:[#allocation2 + $0x30] sm:$0xff]  ;;  %v1324_v57 = vld [vmem:[#allocation2 + $0x48] sm:$0xff]  ;;  %v1323_v28 = vld [vmem:[#allocation2 + $0x40] sm:$0xff] }
 0x2b2   : > { %2547 = vrcp.f32 %v1293_v56 }
 0x2b3   : > { %2549 = vrcp.f32 %v1296_v18 }
 0x2b4   : > { %v2526_v53 = vpop.eup %2525  ;;  %2360 = vmatpush3.bf16.msra.mxu1 %v3016_v52  ;;  %2551 = vrcp.f32 %v1295_v5 }
 0x2b5   : > { %v2528_v54 = vpop.eup %2527  ;;  %1343 = vperm.xlu1 %2506, %v2526_v53   ;;  %2353 = vmatprep.subr.bf16.mxu1 %v3023_v40  ;;  %2553 = vrcp.f32 %v1298_v45 }
 0x2b6   : > { %v2530_v62 = vpop.eup %2529  ;;  %1333 = vperm.xlu0 %2505, %v2528_v54   ;;  %2555 = vrcp.f32 %v1297_v59  ;;  %v1327_v59 = vld [vmem:[#allocation2 + $0x60] sm:$0xff] }
 0x2b7   : > { %v2532_v29 = vpop.eup %2531 }
 0x2b8   : > { %v2534_v4 = vpop.eup %2533  ;;  %2361 = vmatpush3.bf16.msra.mxu1 %v3023_v40 }
 0x2b9   : > { %1348 = vperm.xlu1 %2506, %v2530_v62   ;;  %v2536_v32 = vpop.eup %2535  ;;  %2354 = vmatprep.subr.bf16.mxu1 %v3036_v9 }
 0x2ba   : > { %1338 = vperm.xlu0 %2505, %v2532_v29   ;;  %v2538_v58 = vpop.eup %2537 }
 0x2bb   : > { %v2540_v61 = vpop.eup %2539 }
 0x2bc   : > { %2362 = vmatpush3.bf16.msra.mxu1 %v3036_v9  ;;  %v2542_v0 = vpop.eup %2541 }
 0x2bd   : > { %1358 = vperm.xlu1 %2506, %v2534_v4   ;;  %2355 = vmatprep.subr.bf16.mxu1 %v3045_v60  ;;  %v2544_v3 = vpop.eup %2543  ;;  %v1325_v4 = vld [vmem:[#allocation2 + $0x50] sm:$0xff] }
 0x2be   : > { %1353 = vperm.xlu0 %2505, %v2536_v32   ;;  %v2546_v7 = vpop.eup %2545 }
 0x2bf   : > { %v2548_v8 = vpop.eup %2547 }
 0x2c0   : > { %2363 = vmatpush3.bf16.msra.mxu1 %v3045_v60  ;;  %v2550_v14 = vpop.eup %2549 }
 0x2c1   : > { %1368 = vperm.xlu1 %2506, %v2538_v58   ;;  %2356 = vmatprep.subr.bf16.mxu1 %v3053_v2  ;;  %v2552_v15 = vpop.eup %2551 }
 0x2c2   : > { %1363 = vperm.xlu0 %2505, %v2540_v61   ;;  %v2554_v19 = vpop.eup %2553 }
 0x2c3   : > { %v2556_v20 = vpop.eup %2555 }
 0x2c4   : > { %2364 = vmatpush3.bf16.msra.mxu1 %v3053_v2 }
 0x2c5   : > { %1378 = vperm.xlu1 %2506, %v2542_v0  }
 0x2c6   : > { %1373 = vperm.xlu0 %2505, %v2544_v3  }
 0x2c7   : > { %2320 = vmatmul.mubr.bf16.vlgmr.msra.gmra.mxu1 %v2518_v11 }
 0x2c8   : > { %2323 = vmatprep.mubr.bf16.mxu1 %v2519_v13 }
 0x2c9   : > { %1388 = vperm.xlu1 %2506, %v2546_v7   ;;  %v1330_v7 = vld [vmem:[#allocation2 + $0x78] sm:$0xff] }
 0x2ca   : > { %1383 = vperm.xlu0 %2505, %v2548_v8   ;;  %v1329_v8 = vld [vmem:[#allocation2 + $0x70] sm:$0xff] }
 0x2cd   : > { %1398 = vperm.xlu1 %2506, %v2550_v14  }
 0x2ce   : > { %1393 = vperm.xlu0 %2505, %v2552_v15  }
 0x2cf   : > { %2324 = vmatmul.mubr.bf16.gmra.mxu1 %v2520_v22 }
 0x2d0   : > { %2327 = vmatprep.mubr.bf16.mxu1 %v2521_v23 }
 0x2d1   : > { %1408 = vperm.xlu1 %2506, %v2554_v19  }
 0x2d2   : > { %1403 = vperm.xlu0 %2505, %v2556_v20   ;;  %v2523_v20 = vld [vmem:[%s2757_s0] sm:$0xff]  }
 0x2d7   : > { %2328 = vmatmul.mubr.bf16.gmra.mxu1 %v2522_v24 }
 0x330   : > { %v1344_v25 = vpop.permute.xlu1 %1343 }
 0x331   : > { %v1334_v26 = vpop.permute.xlu0 %1333  ;;  %v1413_v33 = vmul.f32 %v1344_v25, %v1317_v27 }
 0x332   : > { %v1411_v36 = vmul.f32 %v1334_v26, %v1315_v12 }
 0x334   : > { %v1349_v16 = vpop.permute.xlu1 %1348 }
 0x335   : > { %v1414_v34 = vmul.f32 %v1349_v16, %v1318_v30  ;;  %v1339_v35 = vpop.permute.xlu0 %1338 }
 0x336   : > { %v1412_v37 = vmul.f32 %v1339_v35, %v1316_v31 }
 0x337   : > { %v1428_v39 = vpack.c.bf16 %v1414_v34, %v1413_v33 }
 0x338   : > { %v1359_v46 = vpop.permute.xlu1 %1358  ;;  %v1427_v48 = vpack.c.bf16 %v1412_v37, %v1411_v36 }
 0x339   : > { %v1416_v49 = vmul.f32 %v1359_v46, %v1320_v38  ;;  %v1354_v50 = vpop.permute.xlu0 %1353 }
 0x33a   : > { %v1415_v51 = vmul.f32 %v1354_v50, %v1319_v44  ;;  %2283 = vmatprep.mubr.msk.bf16.mxu0 %vm1246_vm2, %v1427_v48 }
 0x33b   : > { %2284 = vmatmul.mubr.msk.bf16.vlgmr.msra.gmra.mxu0 %vm1246_vm2, %v1428_v39 }
 0x33c   : > { %v1429_v10 = vpack.c.bf16 %v1416_v49, %v1415_v51  ;;  %2300 = vmatpush3.bf16.msra.mxu0 %v2989_v42  ;;  %v1369_v53 = vpop.permute.xlu1 %1368  ;;  %v1326_v42 = vld [vmem:[#allocation2 + $0x58] sm:$0xff] }
 0x33d   : > { %v1418_v54 = vmul.f32 %v1369_v53, %v1322_v1  ;;  %v1364_v55 = vpop.permute.xlu0 %1363  ;;  %2301 = vmatprep.subr.bf16.mxu0 %v2994_v43 }
 0x33e   : > { %v1417_v56 = vmul.f32 %v1364_v55, %v1321_v6  ;;  %2287 = vmatprep.mubr.msk.bf16.mxu0 %vm1246_vm2, %v1429_v10 }
 0x340   : > { %v1430_v62 = vpack.c.bf16 %v1418_v54, %v1417_v56  ;;  %2302 = vmatpush3.bf16.msra.mxu0 %v2994_v43  ;;  %v1379_v29 = vpop.permute.xlu1 %1378  ;;  %v1328_v43 = vld [vmem:[#allocation2 + $0x68] sm:$0xff] }
 0x341   : > { %v1420_v17 = vmul.f32 %v1379_v29, %v1324_v57  ;;  %v1374_v18 = vpop.permute.xlu0 %1373  ;;  %2303 = vmatprep.subr.bf16.mxu0 %v3003_v47 }
 0x342   : > { %v1419_v21 = vmul.f32 %v1374_v18, %v1323_v28 }
 0x343   : > { %2288 = vmatmul.mubr.msk.bf16.gmra.mxu0 %vm1246_vm2, %v1430_v62 }
 0x344   : > { %v1431_v5 = vpack.c.bf16 %v1420_v17, %v1419_v21  ;;  %2304 = vmatpush3.bf16.msra.mxu0 %v3003_v47  ;;  %v1389_v32 = vpop.permute.xlu1 %1388 }
 0x345   : > { %v1422_v41 = vmul.f32 %v1389_v32, %v1326_v42  ;;  %v1384_v45 = vpop.permute.xlu0 %1383  ;;  %2305 = vmatprep.subr.bf16.mxu0 %v3016_v52 }
 0x346   : > { %v1421_v58 = vmul.f32 %v1384_v45, %v1325_v4  ;;  %2291 = vmatprep.mubr.msk.bf16.mxu0 %vm1246_vm2, %v1431_v5 }
 0x348   : > { %v1432_v61 = vpack.c.bf16 %v1422_v41, %v1421_v58  ;;  %2306 = vmatpush3.bf16.msra.mxu0 %v3016_v52  ;;  %v1399_v63 = vpop.permute.xlu1 %1398 }
 0x349   : > { %v1424_v0 = vmul.f32 %v1399_v63, %v1328_v43  ;;  %v1394_v3 = vpop.permute.xlu0 %1393  ;;  %2307 = vmatprep.subr.bf16.mxu0 %v3023_v40 }
 0x34a   : > { %v1423_v47 = vmul.f32 %v1394_v3, %v1327_v59 }
 0x34b   : > { %2292 = vmatmul.mubr.msk.bf16.gmra.mxu0 %vm1246_vm2, %v1432_v61 }
 0x34c   : > { %v1433_v11 = vpack.c.bf16 %v1424_v0, %v1423_v47  ;;  %2308 = vmatpush3.bf16.msra.mxu0 %v3023_v40  ;;  %v1409_v13 = vpop.permute.xlu1 %1408  ;;  %v2524_v40 = vld [vmem:[%s2757_s0 + $0x8] sm:$0xff]  }
 0x34d   : > { %v1426_v14 = vmul.f32 %v1409_v13, %v1330_v7  ;;  %v1404_v15 = vpop.permute.xlu0 %1403  ;;  %2309 = vmatprep.subr.bf16.mxu0 %v3036_v9 }
 0x34e   : > { %v1425_v52 = vmul.f32 %v1404_v15, %v1329_v8  ;;  %2295 = vmatprep.mubr.msk.bf16.mxu0 %vm1246_vm2, %v1433_v11 }
 0x350   : > { %v1434_v19 = vpack.c.bf16 %v1426_v14, %v1425_v52  ;;  %2310 = vmatpush3.bf16.msra.mxu0 %v3036_v9 }
 0x351   : > { %2311 = vmatprep.subr.bf16.mxu0 %v3045_v60 }
 0x353   : > { %2296 = vmatmul.mubr.msk.bf16.gmra.mxu0 %vm1246_vm2, %v1434_v19 }
 0x354   : > { %2312 = vmatpush3.bf16.msra.mxu0 %v3045_v60  ;;  %2315 = vmatprep.mubr.bf16.mxu0 %v2523_v20 }
 0x355   : > { %2313 = vmatprep.subr.bf16.mxu0 %v3053_v2 }
 0x358   : > { %2314 = vmatpush3.bf16.msra.mxu0 %v3053_v2  ;;  %v3099_v2 = vld [vmem:[%s3182_s8] ss:$0 sm:$0xff] }
 0x35b   : > { %2316 = vmatmul.mubr.bf16.vlgmr.msra.gmra.mxu0 %v2524_v40 }
 0x387   : > { %v2321_v22 = vpop.f32.mrf.mxu1 }
 0x389   : > { %v1750_v23 = vpop.f32.mrf.mxu1 }
 0x38b   : > { %v2322_v24 = vpop.f32.mrf.mxu1 }
 0x38d   : > { %v1753_v25 = vpop.f32.mrf.mxu1 }
 0x38f   : > { %v2325_v9 = vpop.f32.mrf.mxu1 }
 0x391   : > { %v1766_v12 = vpop.f32.mrf.mxu1 }
 0x393   : > { %v2326_v16 = vpop.f32.mrf.mxu1 }
 0x395   : > { %v1769_v38 = vpop.f32.mrf.mxu1 }
 0x397   : > { %v2329_v10 = vpop.f32.mrf.mxu1 }
 0x399   : > { %v1782_v21 = vpop.f32.mrf.mxu1 }
 0x39b   : > { %v2330_v63 = vpop.f32.mrf.mxu1 }
 0x39d   : > { %v1785_v19 = vpop.f32.mrf.mxu1 }
 0x3fb   : > { %v3088_v26 = vpop.f32.mrf.mxu0 }
 0x3fd   : > { %v3090_v27 = vpop.f32.mrf.mxu0 }
 0x3ff   : > { %v3092_v30 = vpop.f32.mrf.mxu0 }
 0x401   : > { %v3094_v60 = vpop.f32.mrf.mxu0 }
 0x403   : > { %v2289_v31 = vpop.f32.mrf.mxu0 }
 0x404   : > { %v1759_v33 = vadd.f32 %v2321_v22, %v2289_v31 }
 0x405   : > { %v1557_v34 = vpop.f32.mrf.mxu0 }
 0x406   : > { %v1810_v35 = vadd.f32 %v3099_v2, %v1759_v33  ;;  %v1751_v36 = vadd.f32 %v1750_v23, %v1557_v34 }
 0x407   : > { %v2290_v37 = vpop.f32.mrf.mxu0 }
 0x408   : > { %v1826_v39 = vmax.f32 %v1810_v35, 0.0  ;;  %v1808_v44 = vadd.f32 %v3099_v2, %v1751_v36  ;;  %v1762_v46 = vadd.f32 %v2322_v24, %v2290_v37 }
 0x409   : > { %v1560_v48 = vpop.f32.mrf.mxu0 }
 0x40a   : > { %v2179_v49 = vpack.c.bf16 %v1826_v39, %v1826_v39  ;;  %v1824_v50 = vmax.f32 %v1808_v44, 0.0  ;;  %v1811_v51 = vadd.f32 %v3099_v2, %v1762_v46  ;;  %v1754_v1 = vadd.f32 %v1753_v25, %v1560_v48 }
 0x40b   : > { %v2293_v6 = vpop.f32.mrf.mxu0 }
 0x40c   : > { %1907 = vst.msk [vmem:[%s2767_s14 + $0x18] sm:$0xf] %vm1900_vm3, %v2179_v49  ;;  %v2177_v53 = vpack.c.bf16 %v1824_v50, %v1824_v50  ;;  %v1827_v54 = vmax.f32 %v1811_v51, 0.0  ;;  %v1809_v55 = vadd.f32 %v3099_v2, %v1754_v1  ;;  %v1775_v56 = vadd.f32 %v2325_v9, %v2293_v6 }
 0x40d   : > { %v1573_v57 = vpop.f32.mrf.mxu0 }
 0x40e   : > { %1905 = vst.msk [vmem:[%s2767_s14 + $0x10] sm:$0xf] %vm1900_vm3, %v2177_v53  ;;  %v2180_v28 = vpack.c.bf16 %v1827_v54, %v1827_v54  ;;  %v1825_v62 = vmax.f32 %v1809_v55, 0.0  ;;  %v1814_v29 = vadd.f32 %v3099_v2, %v1775_v56  ;;  %v1767_v17 = vadd.f32 %v1766_v12, %v1573_v57 }
 0x40f   : > { %v2294_v18 = vpop.f32.mrf.mxu0 }
 0x410   : > { %1908 = vst.msk [vmem:[%s2767_s14 + $0x1c] sm:$0xf] %vm1900_vm3, %v2180_v28  ;;  %v2178_v42 = vpack.c.bf16 %v1825_v62, %v1825_v62  ;;  %v1830_v4 = vmax.f32 %v1814_v29, 0.0  ;;  %v1812_v5 = vadd.f32 %v3099_v2, %v1767_v17  ;;  %v1778_v32 = vadd.f32 %v2326_v16, %v2294_v18 }
 0x411   : > { %v1576_v41 = vpop.f32.mrf.mxu0 }
 0x412   : > { %1906 = vst.msk [vmem:[%s2767_s14 + $0x14] sm:$0xf] %vm1900_vm3, %v2178_v42  ;;  %v2183_v45 = vpack.c.bf16 %v1830_v4, %v1830_v4  ;;  %v1828_v58 = vmax.f32 %v1812_v5, 0.0  ;;  %v1815_v43 = vadd.f32 %v3099_v2, %v1778_v32  ;;  %v1770_v59 = vadd.f32 %v1769_v38, %v1576_v41 }
 0x413   : > { %v2297_v61 = vpop.f32.mrf.mxu0 }
 0x414   : > { %1911 = vst.msk [vmem:[%s2767_s14 + $0x28] sm:$0xf] %vm1900_vm3, %v2183_v45  ;;  %v2181_v0 = vpack.c.bf16 %v1828_v58, %v1828_v58  ;;  %v1831_v3 = vmax.f32 %v1815_v43, 0.0  ;;  %v1813_v47 = vadd.f32 %v3099_v2, %v1770_v59  ;;  %v1791_v7 = vadd.f32 %v2329_v10, %v2297_v61 }
 0x415   : > { %v1589_v8 = vpop.f32.mrf.mxu0 }
 0x416   : > { %1909 = vst.msk [vmem:[%s2767_s14 + $0x20] sm:$0xf] %vm1900_vm3, %v2181_v0  ;;  %v2184_v11 = vpack.c.bf16 %v1831_v3, %v1831_v3  ;;  %v1829_v13 = vmax.f32 %v1813_v47, 0.0  ;;  %v1818_v14 = vadd.f32 %v3099_v2, %v1791_v7  ;;  %v1783_v15 = vadd.f32 %v1782_v21, %v1589_v8 }
 0x417   : > { %v2298_v52 = vpop.f32.mrf.mxu0 }
 0x418   : > { %1912 = vst.msk [vmem:[%s2767_s14 + $0x2c] sm:$0xf] %vm1900_vm3, %v2184_v11  ;;  %v2182_v20 = vpack.c.bf16 %v1829_v13, %v1829_v13  ;;  %v1834_v40 = vmax.f32 %v1818_v14, 0.0  ;;  %v1816_v22 = vadd.f32 %v3099_v2, %v1783_v15  ;;  %v1794_v23 = vadd.f32 %v2330_v63, %v2298_v52 }
 0x419   : > { %v1592_v24 = vpop.f32.mrf.mxu0 }
 0x41a   : > { %1910 = vst.msk [vmem:[%s2767_s14 + $0x24] sm:$0xf] %vm1900_vm3, %v2182_v20  ;;  %v2187_v25 = vpack.c.bf16 %v1834_v40, %v1834_v40  ;;  %v1832_v9 = vmax.f32 %v1816_v22, 0.0  ;;  %v1819_v12 = vadd.f32 %v3099_v2, %v1794_v23  ;;  %v1786_v31 = vadd.f32 %v1785_v19, %v1592_v24 }
 0x41b   : > { %v2317_v16 = vpop.f32.mrf.mxu0 }
 0x41c   : > { %1915 = vst.msk [vmem:[%s2767_s14 + $0x38] sm:$0xf] %vm1900_vm3, %v2187_v25  ;;  %v2185_v33 = vpack.c.bf16 %v1832_v9, %v1832_v9  ;;  %v1835_v34 = vmax.f32 %v1819_v12, 0.0  ;;  %v1817_v35 = vadd.f32 %v3099_v2, %v1786_v31  ;;  %v1743_v36 = vadd.f32 %v2317_v16, %v3088_v26 }
 0x41d   : > { %v1734_v37 = vpop.f32.mrf.mxu0 }
 0x41e   : > { %1913 = vst.msk [vmem:[%s2767_s14 + $0x30] sm:$0xf] %vm1900_vm3, %v2185_v33  ;;  %v2188_v38 = vpack.c.bf16 %v1835_v34, %v1835_v34  ;;  %v1833_v39 = vmax.f32 %v1817_v35, 0.0  ;;  %v1806_v44 = vadd.f32 %v3099_v2, %v1743_v36  ;;  %v1735_v46 = vadd.f32 %v1734_v37, %v3090_v27 }
 0x41f   : > { %v2318_v48 = vpop.f32.mrf.mxu0 }
 0x420   : > { %1916 = vst.msk [vmem:[%s2767_s14 + $0x3c] sm:$0xf] %vm1900_vm3, %v2188_v38  ;;  %v2186_v49 = vpack.c.bf16 %v1833_v39, %v1833_v39  ;;  %v1822_v50 = vmax.f32 %v1806_v44, 0.0  ;;  %v1804_v51 = vadd.f32 %v3099_v2, %v1735_v46  ;;  %v1746_v26 = vadd.f32 %v2318_v48, %v3092_v30 }
 0x421   : > { %v1737_v1 = vpop.f32.mrf.mxu0 }
 0x422   : > { %1914 = vst.msk [vmem:[%s2767_s14 + $0x34] sm:$0xf] %vm1900_vm3, %v2186_v49  ;;  %v2175_v6 = vpack.c.bf16 %v1822_v50, %v1822_v50  ;;  %v1820_v10 = vmax.f32 %v1804_v51, 0.0  ;;  %v1807_v53 = vadd.f32 %v3099_v2, %v1746_v26  ;;  %v1738_v27 = vadd.f32 %v1737_v1, %v3094_v60 }
 0x424   : > { %1903 = vst.msk [vmem:[%s2767_s14 + $0x8] sm:$0xf] %vm1900_vm3, %v2175_v6  ;;  %v2173_v54 = vpack.c.bf16 %v1820_v10, %v1820_v10  ;;  %v1823_v55 = vmax.f32 %v1807_v53, 0.0  ;;  %v1805_v56 = vadd.f32 %v3099_v2, %v1738_v27 }
 0x426   : > { %1901 = vst.msk [vmem:[%s2767_s14] sm:$0xf] %vm1900_vm3, %v2173_v54  ;;  %v2176_v57 = vpack.c.bf16 %v1823_v55, %v1823_v55  ;;  %v1821_v30 = vmax.f32 %v1805_v56, 0.0 }
 0x428   : > { %1904 = vst.msk [vmem:[%s2767_s14 + $0xc] sm:$0xf] %vm1900_vm3, %v2176_v57  ;;  %v2174_v28 = vpack.c.bf16 %v1821_v30, %v1821_v30 }
 0x42a   : > { %1902 = vst.msk [vmem:[%s2767_s14 + $0x4] sm:$0xf] %vm1900_vm3, %v2174_v28 }
 0x42b PF: > { %s19_s15 = sadd.s32 1, %s2611_s15   ;;  %s3192_s12 = sld [smem:[#allocation4_spill]] }
 0x42c   : > { %p16_p0 = scmp.ge.s32.totalorder %s19_s15, 10   ;;  %s3193_s17 = sld [smem:[#allocation5_spill]] }
 0x42d   : > { %s3194_s14 = sld [smem:[#allocation6_spill]]  ;;  %s3195_s30 = smov %s2591_s10 }
 0x42e   : > { %s3196_s10 = smov %s2717_s22  ;;  %s3197_s11 = smov %s2603_s13 }
 0x42f   :  { %18 = sbr.rel (!%p16_p0) target bundleno = 6 (0x6), region = 146 }
 0x432   : > { %s3198_s13 = smov %s3193_s17 }

// kernel: _lambda_.5
= control target key start
LH: loop header
LB: loop body
LE: loop exit
PB: predicated region body
PF: predicated region fallthrough
CT: control target
= control target key end

     0   :  { %s1209_s18 = smov 0   ;;  %s1438_s0 = inlined_call_operand.vmem [shape: bf16[1024,64], index: 0, kind: input, shape index: {}]   ;;  %s1439_s1 = inlined_call_operand.vmem [shape: bf16[64,32], index: 1, kind: input, shape index: {}]   ;;  %s1440_s2 = inlined_call_operand.vmem [shape: f32[1,32], index: 2, kind: input, shape index: {}]   ;;  %s1441_s3 = inlined_call_operand.vmem [shape: bf16[32,2], index: 3, kind: input, shape index: {}]   ;;  %s1442_s4 = inlined_call_operand.vmem [shape: f32[1,2], index: 4, kind: input, shape index: {}]   ;;  %s1443_s5 = inlined_call_operand.vmem [shape: f32[1024,2], index: 5, kind: output, shape index: {}]  }
   0x1 LB: > { %s960_s19 = sadd.s32 4294967295, %s1177_s18   ;;  %p964_p0 = scmp.ge.s32.totalorder %s1177_s18, 1  ;;  %s1177_s18 = sphi %s1209_s18, %s15_s18  }
   0x2   : > { %p188_p1 = scmp.lt.s32.totalorder %s1177_s18, 5 }
   0x4   : > { %p189_p2 = pnand %p964_p0, %p188_p1 }
   0x5   : > { %s965_s22 = sshll.u32 (!%p189_p2), %s960_s19, 5 }
   0x6   : > { %192 = sbr.rel (%p189_p2) target bundleno = 492 (0x1ec), region = 40  ;;  %p217_p3 = scmp.lt.s32.totalorder (!%p189_p2), %s965_s22, 127 }
   0xb   : > { %v1149_v0 = vld [vmem:[%s1439_s1 + $0x18] sm:$0xff]   ;;  %v1150_v1 = vld [vmem:[%s1439_s1 + $0x10] sm:$0xff]   ;;  %v1151_v2 = vld [vmem:[%s1439_s1 + $0x8] sm:$0xff]   ;;  %s1445_s22 = smov (!%p217_p3, %s965_s22), 127  ;;  %vm380_vm0 = vcmask 523264   ;;  %vm661_vm1 = vcmask 261120  }
   0xc   : > { %1065 = vmatprep.subr.bf16.mxu0 %v1149_v0  ;;  %s966_s27 = sshll.u32 %s1445_s22, 2  ;;  %v1152_v4 = vld [vmem:[%s1439_s1] sm:$0xff]   ;;  %v1169_v20 = vld [vmem:[%s1441_s3 + $0x8] sm:$0xff]   ;;  %s968_s14 = sshll.u32 %s1445_s22, 3  ;;  %vm871_vm2 = vcmask 15360  }
   0xd   : > { %1066 = vmatpush3.bf16.msra.mxu0 %v1149_v0  ;;  %s1232_s30 = scalar_lea.vmem %s1438_s0, %s966_s27  ;;  %1105 = vmatprep.subr.bf16.mxu1 %v1169_v20  ;;  %v1170_v21 = vld [vmem:[%s1441_s3] sm:$0xff]   ;;  %s1337_s20 = scalar_lea.vmem %s1443_s5, %s968_s14 }
   0xe   : > { %1067 = vmatprep.subr.bf16.mxu0 %v1150_v1  ;;  %v1153_v3 = vld [vmem:[%s1232_s30] sm:$0xff]   ;;  %v1154_v5 = vld [vmem:[%s1232_s30 + $0x8] sm:$0xff]   ;;  %v1155_v6 = vld [vmem:[%s1232_s30 + $0x10] sm:$0xff]   ;;  %1106 = vmatpush3.bf16.msra.mxu1 %v1169_v20 }
   0xf   : > { %1073 = vmatprep.mubr.msk.bf16.mxu0 %vm380_vm0, %v1153_v3  ;;  %v1156_v7 = vld [vmem:[%s1232_s30 + $0x18] sm:$0xff]   ;;  %v1157_v8 = vld [vmem:[%s1232_s30 + $0x20] sm:$0xff]   ;;  %v1158_v9 = vld [vmem:[%s1232_s30 + $0x28] sm:$0xff]   ;;  %1107 = vmatprep.subr.bf16.mxu1 %v1170_v21 }
  0x10   : > { %v1159_v10 = vld [vmem:[%s1232_s30 + $0x30] sm:$0xff]   ;;  %v1160_v11 = vld [vmem:[%s1232_s30 + $0x38] sm:$0xff]   ;;  %v1161_v12 = vld [vmem:[%s1232_s30 + $0x40] sm:$0xff]  }
  0x11   : > { %1068 = vmatpush3.bf16.msra.mxu0 %v1150_v1  ;;  %v1162_v13 = vld [vmem:[%s1232_s30 + $0x48] sm:$0xff]   ;;  %v1163_v14 = vld [vmem:[%s1232_s30 + $0x50] sm:$0xff]   ;;  %v1164_v15 = vld [vmem:[%s1232_s30 + $0x58] sm:$0xff]  }
  0x12   : > { %1069 = vmatprep.subr.bf16.mxu0 %v1151_v2  ;;  %v1165_v16 = vld [vmem:[%s1232_s30 + $0x60] sm:$0xff]   ;;  %v1166_v17 = vld [vmem:[%s1232_s30 + $0x68] sm:$0xff]   ;;  %v1167_v18 = vld [vmem:[%s1232_s30 + $0x70] sm:$0xff]   ;;  %1108 = vmatpush3.bf16.msra.mxu1 %v1170_v21 }
  0x13   : > { %v1168_v19 = vld [vmem:[%s1232_s30 + $0x78] sm:$0xff]   ;;  %v1278_v24 = vld [vmem:[%s1440_s2] ss:$0 sm:$0xff] }
  0x15   : > { %1070 = vmatpush3.bf16.msra.mxu0 %v1151_v2 }
  0x16   : > { %1071 = vmatprep.subr.bf16.mxu0 %v1152_v4 }
  0x19   : > { %1072 = vmatpush3.bf16.msra.mxu0 %v1152_v4 }
  0x1c   : > { %1074 = vmatmul.mubr.msk.bf16.vlgmr.msra.gmra.mxu0 %vm380_vm0, %v1154_v5 }
  0x1d   : > { %1077 = vmatprep.mubr.msk.bf16.mxu0 %vm380_vm0, %v1155_v6 }
  0x24   : > { %1078 = vmatmul.mubr.msk.bf16.gmra.mxu0 %vm380_vm0, %v1156_v7 }
  0x25   : > { %1081 = vmatprep.mubr.msk.bf16.mxu0 %vm380_vm0, %v1157_v8 }
  0x2c   : > { %1082 = vmatmul.mubr.msk.bf16.gmra.mxu0 %vm380_vm0, %v1158_v9 }
  0x2d   : > { %1085 = vmatprep.mubr.msk.bf16.mxu0 %vm380_vm0, %v1159_v10 }
  0x34   : > { %1086 = vmatmul.mubr.msk.bf16.gmra.mxu0 %vm380_vm0, %v1160_v11 }
  0x35   : > { %1089 = vmatprep.mubr.msk.bf16.mxu0 %vm380_vm0, %v1161_v12 }
  0x3c   : > { %1090 = vmatmul.mubr.msk.bf16.gmra.mxu0 %vm380_vm0, %v1162_v13 }
  0x3d   : > { %1093 = vmatprep.mubr.msk.bf16.mxu0 %vm380_vm0, %v1163_v14 }
  0x44   : > { %1094 = vmatmul.mubr.msk.bf16.gmra.mxu0 %vm380_vm0, %v1164_v15 }
  0x45   : > { %1097 = vmatprep.mubr.msk.bf16.mxu0 %vm380_vm0, %v1165_v16 }
  0x4c   : > { %1098 = vmatmul.mubr.msk.bf16.gmra.mxu0 %vm380_vm0, %v1166_v17 }
  0x4d   : > { %1101 = vmatprep.mubr.msk.bf16.mxu0 %vm380_vm0, %v1167_v18 }
  0x54   : > { %1102 = vmatmul.mubr.msk.bf16.gmra.mxu0 %vm380_vm0, %v1168_v19 }
  0xdc   : > { %v1075_v22 = vpop.f32.mrf.mxu0 }
  0xdd   : > { %v472_v28 = vadd.f32 %v1075_v22, %v1278_v24 }
  0xde   : > { %v463_v23 = vpop.f32.mrf.mxu0 }
  0xdf   : > { %v464_v26 = vadd.f32 %v1278_v24, %v463_v23  ;;  %v592_v35 = vmax.f32 %v472_v28, 0.0 }
  0xe0   : > { %v1076_v25 = vpop.f32.mrf.mxu0 }
  0xe1   : > { %v475_v27 = vadd.f32 %v1076_v25, %v1278_v24  ;;  %v590_v33 = vmax.f32 %v464_v26, 0.0 }
  0xe2   : > { %v466_v29 = vpop.f32.mrf.mxu0 }
  0xe3   : > { %v467_v30 = vadd.f32 %v1278_v24, %v466_v29  ;;  %v593_v31 = vmax.f32 %v475_v27, 0.0 }
  0xe4   : > { %v1079_v32 = vpop.f32.mrf.mxu0 }
  0xe5   : > { %v591_v34 = vmax.f32 %v467_v30, 0.0  ;;  %v623_v38 = vpack.c.bf16 %v593_v31, %v592_v35  ;;  %v488_v42 = vadd.f32 %v1079_v32, %v1278_v24 }
  0xe6   : > { %v479_v36 = vpop.f32.mrf.mxu0 }
  0xe7   : > { %v622_v37 = vpack.c.bf16 %v591_v34, %v590_v33  ;;  %v480_v40 = vadd.f32 %v1278_v24, %v479_v36  ;;  %v596_v49 = vmax.f32 %v488_v42, 0.0 }
  0xe8   : > { %v1080_v39 = vpop.f32.mrf.mxu0 }
  0xe9   : > { %v491_v41 = vadd.f32 %v1080_v39, %v1278_v24  ;;  %1109 = vmatprep.mubr.msk.bf16.mxu1 %vm661_vm1, %v622_v37  ;;  %v594_v47 = vmax.f32 %v480_v40, 0.0 }
  0xea   : > { %v482_v43 = vpop.f32.mrf.mxu0  ;;  %1110 = vmatmul.mubr.msk.bf16.vlgmr.msra.gmra.mxu1 %vm661_vm1, %v623_v38 }
  0xeb   : > { %v483_v44 = vadd.f32 %v1278_v24, %v482_v43  ;;  %v597_v45 = vmax.f32 %v491_v41, 0.0 }
  0xec   : > { %v1083_v46 = vpop.f32.mrf.mxu0 }
  0xed   : > { %v595_v48 = vmax.f32 %v483_v44, 0.0  ;;  %v625_v52 = vpack.c.bf16 %v597_v45, %v596_v49  ;;  %v504_v56 = vadd.f32 %v1083_v46, %v1278_v24 }
  0xee   : > { %v495_v50 = vpop.f32.mrf.mxu0 }
  0xef   : > { %v624_v51 = vpack.c.bf16 %v595_v48, %v594_v47  ;;  %v496_v54 = vadd.f32 %v1278_v24, %v495_v50  ;;  %v600_v63 = vmax.f32 %v504_v56, 0.0 }
  0xf0   : > { %v1084_v53 = vpop.f32.mrf.mxu0 }
  0xf1   : > { %v507_v55 = vadd.f32 %v1084_v53, %v1278_v24  ;;  %1113 = vmatprep.mubr.msk.bf16.mxu1 %vm661_vm1, %v624_v51  ;;  %v598_v61 = vmax.f32 %v496_v54, 0.0 }
  0xf2   : > { %v498_v57 = vpop.f32.mrf.mxu0  ;;  %1114 = vmatmul.mubr.msk.bf16.gmra.mxu1 %vm661_vm1, %v625_v52 }
  0xf3   : > { %v499_v58 = vadd.f32 %v1278_v24, %v498_v57  ;;  %v601_v59 = vmax.f32 %v507_v55, 0.0 }
  0xf4   : > { %v1087_v60 = vpop.f32.mrf.mxu0 }
  0xf5   : > { %v599_v62 = vmax.f32 %v499_v58, 0.0  ;;  %v627_v2 = vpack.c.bf16 %v601_v59, %v600_v63  ;;  %v520_v6 = vadd.f32 %v1087_v60, %v1278_v24 }
  0xf6   : > { %v511_v0 = vpop.f32.mrf.mxu0 }
  0xf7   : > { %v626_v1 = vpack.c.bf16 %v599_v62, %v598_v61  ;;  %v512_v4 = vadd.f32 %v1278_v24, %v511_v0  ;;  %v604_v13 = vmax.f32 %v520_v6, 0.0 }
  0xf8   : > { %v1088_v3 = vpop.f32.mrf.mxu0 }
  0xf9   : > { %v523_v5 = vadd.f32 %v1088_v3, %v1278_v24  ;;  %1117 = vmatprep.mubr.msk.bf16.mxu1 %vm661_vm1, %v626_v1  ;;  %v602_v11 = vmax.f32 %v512_v4, 0.0 }
  0xfa   : > { %v514_v7 = vpop.f32.mrf.mxu0  ;;  %1118 = vmatmul.mubr.msk.bf16.gmra.mxu1 %vm661_vm1, %v627_v2 }
  0xfb   : > { %v515_v8 = vadd.f32 %v1278_v24, %v514_v7  ;;  %v605_v9 = vmax.f32 %v523_v5, 0.0 }
  0xfc   : > { %v1091_v10 = vpop.f32.mrf.mxu0 }
  0xfd   : > { %v603_v12 = vmax.f32 %v515_v8, 0.0  ;;  %v629_v16 = vpack.c.bf16 %v605_v9, %v604_v13  ;;  %v536_v20 = vadd.f32 %v1091_v10, %v1278_v24  ;;  %v1332_v8 = vld [vmem:[%s1442_s4] ss:$0 sm:$0xff] }
  0xfe   : > { %v527_v14 = vpop.f32.mrf.mxu0 }
  0xff   : > { %v628_v15 = vpack.c.bf16 %v603_v12, %v602_v11  ;;  %v528_v18 = vadd.f32 %v1278_v24, %v527_v14  ;;  %v608_v28 = vmax.f32 %v536_v20, 0.0 }
 0x100   : > { %v1092_v17 = vpop.f32.mrf.mxu0 }
 0x101   : > { %v539_v19 = vadd.f32 %v1092_v17, %v1278_v24  ;;  %1121 = vmatprep.mubr.msk.bf16.mxu1 %vm661_vm1, %v628_v15  ;;  %v606_v26 = vmax.f32 %v528_v18, 0.0 }
 0x102   : > { %v530_v21 = vpop.f32.mrf.mxu0  ;;  %1122 = vmatmul.mubr.msk.bf16.gmra.mxu1 %vm661_vm1, %v629_v16 }
 0x103   : > { %v531_v22 = vadd.f32 %v1278_v24, %v530_v21  ;;  %v609_v23 = vmax.f32 %v539_v19, 0.0 }
 0x104   : > { %v1095_v25 = vpop.f32.mrf.mxu0 }
 0x105   : > { %v607_v27 = vmax.f32 %v531_v22, 0.0  ;;  %v631_v31 = vpack.c.bf16 %v609_v23, %v608_v28  ;;  %v552_v35 = vadd.f32 %v1095_v25, %v1278_v24 }
 0x106   : > { %v543_v29 = vpop.f32.mrf.mxu0 }
 0x107   : > { %v630_v30 = vpack.c.bf16 %v607_v27, %v606_v26  ;;  %v544_v33 = vadd.f32 %v1278_v24, %v543_v29  ;;  %v612_v42 = vmax.f32 %v552_v35, 0.0 }
 0x108   : > { %v1096_v32 = vpop.f32.mrf.mxu0 }
 0x109   : > { %v555_v34 = vadd.f32 %v1096_v32, %v1278_v24  ;;  %1125 = vmatprep.mubr.msk.bf16.mxu1 %vm661_vm1, %v630_v30  ;;  %v610_v40 = vmax.f32 %v544_v33, 0.0 }
 0x10a   : > { %v546_v36 = vpop.f32.mrf.mxu0  ;;  %1126 = vmatmul.mubr.msk.bf16.gmra.mxu1 %vm661_vm1, %v631_v31 }
 0x10b   : > { %v547_v37 = vadd.f32 %v1278_v24, %v546_v36  ;;  %v613_v38 = vmax.f32 %v555_v34, 0.0 }
 0x10c   : > { %v1099_v39 = vpop.f32.mrf.mxu0 }
 0x10d   : > { %v611_v41 = vmax.f32 %v547_v37, 0.0  ;;  %v633_v45 = vpack.c.bf16 %v613_v38, %v612_v42  ;;  %v568_v49 = vadd.f32 %v1099_v39, %v1278_v24 }
 0x10e   : > { %v559_v43 = vpop.f32.mrf.mxu0 }
 0x10f   : > { %v632_v44 = vpack.c.bf16 %v611_v41, %v610_v40  ;;  %v560_v47 = vadd.f32 %v1278_v24, %v559_v43  ;;  %v616_v56 = vmax.f32 %v568_v49, 0.0 }
 0x110   : > { %v1100_v46 = vpop.f32.mrf.mxu0 }
 0x111   : > { %v571_v48 = vadd.f32 %v1100_v46, %v1278_v24  ;;  %1129 = vmatprep.mubr.msk.bf16.mxu1 %vm661_vm1, %v632_v44  ;;  %v614_v54 = vmax.f32 %v560_v47, 0.0 }
 0x112   : > { %v562_v50 = vpop.f32.mrf.mxu0  ;;  %1130 = vmatmul.mubr.msk.bf16.gmra.mxu1 %vm661_vm1, %v633_v45 }
 0x113   : > { %v563_v51 = vadd.f32 %v1278_v24, %v562_v50  ;;  %v617_v52 = vmax.f32 %v571_v48, 0.0 }
 0x114   : > { %v1103_v53 = vpop.f32.mrf.mxu0 }
 0x115   : > { %v615_v55 = vmax.f32 %v563_v51, 0.0  ;;  %v635_v59 = vpack.c.bf16 %v617_v52, %v616_v56  ;;  %v584_v63 = vadd.f32 %v1103_v53, %v1278_v24 }
 0x116   : > { %v575_v57 = vpop.f32.mrf.mxu0 }
 0x117   : > { %v634_v58 = vpack.c.bf16 %v615_v55, %v614_v54  ;;  %v576_v61 = vadd.f32 %v1278_v24, %v575_v57  ;;  %v620_v5 = vmax.f32 %v584_v63, 0.0 }
 0x118   : > { %v1104_v60 = vpop.f32.mrf.mxu0 }
 0x119   : > { %v587_v62 = vadd.f32 %v1104_v60, %v1278_v24  ;;  %1133 = vmatprep.mubr.msk.bf16.mxu1 %vm661_vm1, %v634_v58  ;;  %v618_v3 = vmax.f32 %v576_v61, 0.0 }
 0x11a   : > { %v578_v0 = vpop.f32.mrf.mxu0  ;;  %1134 = vmatmul.mubr.msk.bf16.gmra.mxu1 %vm661_vm1, %v635_v59 }
 0x11b   : > { %v579_v1 = vadd.f32 %v1278_v24, %v578_v0  ;;  %v621_v2 = vmax.f32 %v587_v62, 0.0 }
 0x11d   : > { %v619_v4 = vmax.f32 %v579_v1, 0.0  ;;  %v637_v7 = vpack.c.bf16 %v621_v2, %v620_v5 }
 0x11f   : > { %v636_v6 = vpack.c.bf16 %v619_v4, %v618_v3 }
 0x121   : > { %1137 = vmatprep.mubr.msk.bf16.mxu1 %vm661_vm1, %v636_v6 }
 0x122   : > { %1138 = vmatmul.mubr.msk.bf16.gmra.mxu1 %vm661_vm1, %v637_v7 }
 0x1aa   : > { %v1111_v24 = vpop.f32.mrf.mxu1 }
 0x1ab   : > { %v753_v9 = vadd.f32 %v1111_v24, %v1332_v8 }
 0x1ac   : > { %v744_v10 = vpop.f32.mrf.mxu1 }
 0x1ad   : > { %874 = vst.msk [vmem:[%s1337_s20 + $0x10] sm:$0xff] %vm871_vm2, %v753_v9  ;;  %v745_v11 = vadd.f32 %v1332_v8, %v744_v10 }
 0x1ae   : > { %v1112_v12 = vpop.f32.mrf.mxu1 }
 0x1af   : > { %872 = vst.msk [vmem:[%s1337_s20] sm:$0xff] %vm871_vm2, %v745_v11  ;;  %v756_v13 = vadd.f32 %v1112_v12, %v1332_v8 }
 0x1b0   : > { %v747_v14 = vpop.f32.mrf.mxu1 }
 0x1b1   : > { %875 = vst.msk [vmem:[%s1337_s20 + $0x18] sm:$0xff] %vm871_vm2, %v756_v13  ;;  %v748_v15 = vadd.f32 %v1332_v8, %v747_v14 }
 0x1b2   : > { %v1115_v16 = vpop.f32.mrf.mxu1 }
 0x1b3   : > { %873 = vst.msk [vmem:[%s1337_s20 + $0x8] sm:$0xff] %vm871_vm2, %v748_v15  ;;  %v769_v17 = vadd.f32 %v1115_v16, %v1332_v8 }
 0x1b4   : > { %v760_v18 = vpop.f32.mrf.mxu1 }
 0x1b5   : > { %878 = vst.msk [vmem:[%s1337_s20 + $0x30] sm:$0xff] %vm871_vm2, %v769_v17  ;;  %v761_v19 = vadd.f32 %v1332_v8, %v760_v18 }
 0x1b6   : > { %v1116_v20 = vpop.f32.mrf.mxu1 }
 0x1b7   : > { %876 = vst.msk [vmem:[%s1337_s20 + $0x20] sm:$0xff] %vm871_vm2, %v761_v19  ;;  %v772_v21 = vadd.f32 %v1116_v20, %v1332_v8 }
 0x1b8   : > { %v763_v22 = vpop.f32.mrf.mxu1 }
 0x1b9   : > { %879 = vst.msk [vmem:[%s1337_s20 + $0x38] sm:$0xff] %vm871_vm2, %v772_v21  ;;  %v764_v23 = vadd.f32 %v1332_v8, %v763_v22 }
 0x1ba   : > { %v1119_v25 = vpop.f32.mrf.mxu1 }
 0x1bb   : > { %877 = vst.msk [vmem:[%s1337_s20 + $0x28] sm:$0xff] %vm871_vm2, %v764_v23  ;;  %v785_v26 = vadd.f32 %v1119_v25, %v1332_v8 }
 0x1bc   : > { %v776_v27 = vpop.f32.mrf.mxu1 }
 0x1bd   : > { %882 = vst.msk [vmem:[%s1337_s20 + $0x50] sm:$0xff] %vm871_vm2, %v785_v26  ;;  %v777_v28 = vadd.f32 %v1332_v8, %v776_v27 }
 0x1be   : > { %v1120_v29 = vpop.f32.mrf.mxu1 }
 0x1bf   : > { %880 = vst.msk [vmem:[%s1337_s20 + $0x40] sm:$0xff] %vm871_vm2, %v777_v28  ;;  %v788_v30 = vadd.f32 %v1120_v29, %v1332_v8 }
 0x1c0   : > { %v779_v31 = vpop.f32.mrf.mxu1 }
 0x1c1   : > { %883 = vst.msk [vmem:[%s1337_s20 + $0x58] sm:$0xff] %vm871_vm2, %v788_v30  ;;  %v780_v32 = vadd.f32 %v1332_v8, %v779_v31 }
 0x1c2   : > { %v1123_v33 = vpop.f32.mrf.mxu1 }
 0x1c3   : > { %881 = vst.msk [vmem:[%s1337_s20 + $0x48] sm:$0xff] %vm871_vm2, %v780_v32  ;;  %v801_v34 = vadd.f32 %v1123_v33, %v1332_v8 }
 0x1c4   : > { %v792_v35 = vpop.f32.mrf.mxu1 }
 0x1c5   : > { %886 = vst.msk [vmem:[%s1337_s20 + $0x70] sm:$0xff] %vm871_vm2, %v801_v34  ;;  %v793_v36 = vadd.f32 %v1332_v8, %v792_v35 }
 0x1c6   : > { %v1124_v37 = vpop.f32.mrf.mxu1 }
 0x1c7   : > { %884 = vst.msk [vmem:[%s1337_s20 + $0x60] sm:$0xff] %vm871_vm2, %v793_v36  ;;  %v804_v38 = vadd.f32 %v1124_v37, %v1332_v8 }
 0x1c8   : > { %v795_v39 = vpop.f32.mrf.mxu1 }
 0x1c9   : > { %887 = vst.msk [vmem:[%s1337_s20 + $0x78] sm:$0xff] %vm871_vm2, %v804_v38  ;;  %v796_v40 = vadd.f32 %v1332_v8, %v795_v39 }
 0x1ca   : > { %v1127_v41 = vpop.f32.mrf.mxu1 }
 0x1cb   : > { %885 = vst.msk [vmem:[%s1337_s20 + $0x68] sm:$0xff] %vm871_vm2, %v796_v40  ;;  %v817_v42 = vadd.f32 %v1127_v41, %v1332_v8 }
 0x1cc   : > { %v808_v43 = vpop.f32.mrf.mxu1 }
 0x1cd   : > { %890 = vst.msk [vmem:[%s1337_s20 + $0x90] sm:$0xff] %vm871_vm2, %v817_v42  ;;  %v809_v44 = vadd.f32 %v1332_v8, %v808_v43 }
 0x1ce   : > { %v1128_v45 = vpop.f32.mrf.mxu1 }
 0x1cf   : > { %888 = vst.msk [vmem:[%s1337_s20 + $0x80] sm:$0xff] %vm871_vm2, %v809_v44  ;;  %v820_v46 = vadd.f32 %v1128_v45, %v1332_v8 }
 0x1d0   : > { %v811_v47 = vpop.f32.mrf.mxu1 }
 0x1d1   : > { %891 = vst.msk [vmem:[%s1337_s20 + $0x98] sm:$0xff] %vm871_vm2, %v820_v46  ;;  %v812_v48 = vadd.f32 %v1332_v8, %v811_v47 }
 0x1d2   : > { %v1131_v49 = vpop.f32.mrf.mxu1 }
 0x1d3   : > { %889 = vst.msk [vmem:[%s1337_s20 + $0x88] sm:$0xff] %vm871_vm2, %v812_v48  ;;  %v833_v50 = vadd.f32 %v1131_v49, %v1332_v8 }
 0x1d4   : > { %v824_v51 = vpop.f32.mrf.mxu1 }
 0x1d5   : > { %894 = vst.msk [vmem:[%s1337_s20 + $0xb0] sm:$0xff] %vm871_vm2, %v833_v50  ;;  %v825_v52 = vadd.f32 %v1332_v8, %v824_v51 }
 0x1d6   : > { %v1132_v53 = vpop.f32.mrf.mxu1 }
 0x1d7   : > { %892 = vst.msk [vmem:[%s1337_s20 + $0xa0] sm:$0xff] %vm871_vm2, %v825_v52  ;;  %v836_v54 = vadd.f32 %v1132_v53, %v1332_v8 }
 0x1d8   : > { %v827_v55 = vpop.f32.mrf.mxu1 }
 0x1d9   : > { %895 = vst.msk [vmem:[%s1337_s20 + $0xb8] sm:$0xff] %vm871_vm2, %v836_v54  ;;  %v828_v56 = vadd.f32 %v1332_v8, %v827_v55 }
 0x1da   : > { %v1135_v57 = vpop.f32.mrf.mxu1 }
 0x1db   : > { %893 = vst.msk [vmem:[%s1337_s20 + $0xa8] sm:$0xff] %vm871_vm2, %v828_v56  ;;  %v849_v58 = vadd.f32 %v1135_v57, %v1332_v8 }
 0x1dc   : > { %v840_v59 = vpop.f32.mrf.mxu1 }
 0x1dd   : > { %898 = vst.msk [vmem:[%s1337_s20 + $0xd0] sm:$0xff] %vm871_vm2, %v849_v58  ;;  %v841_v60 = vadd.f32 %v1332_v8, %v840_v59 }
 0x1de   : > { %v1136_v61 = vpop.f32.mrf.mxu1 }
 0x1df   : > { %896 = vst.msk [vmem:[%s1337_s20 + $0xc0] sm:$0xff] %vm871_vm2, %v841_v60  ;;  %v852_v62 = vadd.f32 %v1136_v61, %v1332_v8 }
 0x1e0   : > { %v843_v63 = vpop.f32.mrf.mxu1 }
 0x1e1   : > { %899 = vst.msk [vmem:[%s1337_s20 + $0xd8] sm:$0xff] %vm871_vm2, %v852_v62  ;;  %v844_v0 = vadd.f32 %v1332_v8, %v843_v63 }
 0x1e2   : > { %v1139_v1 = vpop.f32.mrf.mxu1 }
 0x1e3   : > { %897 = vst.msk [vmem:[%s1337_s20 + $0xc8] sm:$0xff] %vm871_vm2, %v844_v0  ;;  %v865_v2 = vadd.f32 %v1139_v1, %v1332_v8 }
 0x1e4   : > { %v856_v3 = vpop.f32.mrf.mxu1 }
 0x1e5   : > { %902 = vst.msk [vmem:[%s1337_s20 + $0xf0] sm:$0xff] %vm871_vm2, %v865_v2  ;;  %v857_v4 = vadd.f32 %v1332_v8, %v856_v3 }
 0x1e6   : > { %v1140_v5 = vpop.f32.mrf.mxu1 }
 0x1e7   : > { %900 = vst.msk [vmem:[%s1337_s20 + $0xe0] sm:$0xff] %vm871_vm2, %v857_v4  ;;  %v868_v6 = vadd.f32 %v1140_v5, %v1332_v8 }
 0x1e8   : > { %v859_v7 = vpop.f32.mrf.mxu1 }
 0x1e9   : > { %903 = vst.msk [vmem:[%s1337_s20 + $0xf8] sm:$0xff] %vm871_vm2, %v868_v6  ;;  %v860_v24 = vadd.f32 %v1332_v8, %v859_v7 }
 0x1eb   : > { %901 = vst.msk [vmem:[%s1337_s20 + $0xe8] sm:$0xff] %vm871_vm2, %v860_v24 }
 0x1ec PF: > { %s15_s18 = sadd.s32 1, %s1177_s18  }
 0x1ed   : > { %p12_p4 = scmp.ge.s32.totalorder %s15_s18, 6  }
 0x1ef   :  { %14 = sbr.rel (!%p12_p4) target bundleno = 1 (0x1), region = 70 }

</bundles_post_ra>
